<compile_context>
chip_gen: v7x
topology: tpu7x:2x2x1
jax: 0.10.0
libtpu: 0.0.40
codegen_flags: <defaults>
</compile_context>

<pallas_src>
import functools

import jax
import jax.numpy as jnp
from jax.experimental import pallas as pl
from jax.experimental.pallas import tpu as pltpu

KH = KW = 3
CIN = 3
COUT = 6


def _conv3x3_kernel(x_ref, w_ref, b_ref, o_ref, *, width):
    # x_ref: (N, CIN, H*W) f32 in VMEM
    # w_ref: (COUT*CIN*KH*KW,) f32 in SMEM   (row-major [co, cin, kh, kw])
    # b_ref: (COUT,) f32 in SMEM
    # o_ref: (N, COUT, H*W) f32 in VMEM      (full-width result incl. halo columns)
    n = x_ref.shape[0]
    hw = x_ref.shape[2]

    x = x_ref[...]                                        # (N, CIN, HW)

    # One (N, HW) accumulator per output channel, initialised with the bias scalar.
    acc = [jnp.full((n, hw), b_ref[co], dtype=jnp.float32) for co in range(COUT)]

    for cin in range(CIN):
        xc = x[:, cin, :]                                 # (N, HW): lanes = flattened spatial
        for kh in range(KH):
            for kw in range(KW):
                d = kh * width + kw                       # flat tap offset
                # plane[p] == xc[p + d]; wrap-around only lands on halo outputs that
                # the wrapper discards.
                plane = xc if d == 0 else pltpu.roll(xc, shift=hw - d, axis=1)
                for co in range(COUT):
                    w = w_ref[((co * CIN + cin) * KH + kh) * KW + kw]   # SMEM scalar
                    acc[co] = acc[co] + w * plane

    # Single full-block, lane-dense store.
    o_ref[...] = jnp.stack(acc, axis=1).astype(o_ref.dtype)             # (N, COUT, HW)


def conv2d_3x3_pallas(x_nchw, weight, bias):
    """x_nchw: (N, 3, H, W) f32; weight: (6, 3, 3, 3) [Cout, Cin, KH, KW]; bias: (6,)."""
    N, C, H, W = x_nchw.shape
    assert C == CIN
    Ho, Wo = H - KH + 1, W - KW + 1
    HW = H * W

    # Contiguous reshapes only (free in row-major layout) -- no transposes.
    x_flat = x_nchw.reshape(N, CIN, HW)
    w_flat = weight.reshape(-1)

    kernel = functools.partial(_conv3x3_kernel, width=W)

    out_flat = pl.pallas_call(
        kernel,
        out_shape=jax.ShapeDtypeStruct((N, COUT, HW), x_nchw.dtype),
        grid=(1,),
        in_specs=[
            pl.BlockSpec((N, CIN, HW), lambda i: (0, 0, 0)),
            pl.BlockSpec(memory_space=pltpu.MemorySpace.SMEM),
            pl.BlockSpec(memory_space=pltpu.MemorySpace.SMEM),
        ],
        out_specs=pl.BlockSpec((N, COUT, HW), lambda i: (0, 0, 0)),
        compiler_params=pltpu.CompilerParams(
            dimension_semantics=("arbitrary",)),
    )(x_flat, w_flat, bias)

    # Free reshape back to (N, Cout, H, W), then drop the right/bottom halo -> valid conv.
    return out_flat.reshape(N, COUT, H, W)[:, :, :Ho, :Wo]


if __name__ == "__main__":
    key = jax.random.PRNGKey(0)
    kx, kwt, kb = jax.random.split(key, 3)

    # Small shapes consistent with the module: batch=2, Cin=3, 16x16 spatial.
    x = jax.random.normal(kx, (2, CIN, 16, 16), dtype=jnp.float32)

    # Deterministic parameter init (PyTorch-style uniform bound 1/sqrt(fan_in)).
    fan_in = CIN * KH * KW
    bound = 1.0 / (fan_in ** 0.5)
    weight = jax.random.uniform(kwt, (COUT, CIN, KH, KW),
                                minval=-bound, maxval=bound, dtype=jnp.float32)
    bias = jax.random.uniform(kb, (COUT,),
                              minval=-bound, maxval=bound, dtype=jnp.float32)

    out = conv2d_3x3_pallas(x, weight, bias)
    out = jax.block_until_ready(out)

    # Quiet correctness check against XLA's conv (NCHW, OIHW, valid padding).
    ref = jax.lax.conv_general_dilated(
        x, weight, window_strides=(1, 1), padding="VALID",
        dimension_numbers=("NCHW", "OIHW", "NCHW")) + bias.reshape(1, COUT, 1, 1)
    assert out.shape == (2, COUT, 14, 14)
    assert jnp.allclose(out, ref, atol=1e-4, rtol=1e-4)

    print("KERNEL_OK")
</pallas_src>

<mosaic_0001>
module attributes {stable_mosaic.version = 11 : i64} {
  func.func @_conv3x3_kernel(%arg0: i32, %arg1: memref<2x3x256xf32, #tpu.memory_space<vmem>>, %arg2: memref<162xf32, #tpu.memory_space<smem>>, %arg3: memref<6xf32, #tpu.memory_space<smem>>, %arg4: memref<2x6x256xf32, #tpu.memory_space<vmem>>) attributes {dimension_semantics = [#tpu.dimension_semantics<arbitrary>], iteration_bounds = array<i64: 1>, scalar_prefetch = 0 : i64, scratch_operands = 0 : i64, tpu.core_type = #tpu.core_type<tc>, window_params = [{pipeline_mode = #tpu.pipeline_mode<synchronous>, transform_indices = @transform_0, window_bounds = array<i64: 2, 3, 256>}, {transform_indices = @transform_1, window_bounds = array<i64: 162>}, {transform_indices = @transform_2, window_bounds = array<i64: 6>}, {pipeline_mode = #tpu.pipeline_mode<synchronous>, transform_indices = @transform_3, window_bounds = array<i64: 2, 6, 256>}]} {
    %c0 = arith.constant 0 : index
    %c0_0 = arith.constant 0 : index
    %c0_1 = arith.constant 0 : index
    %0 = vector.load %arg1[%c0, %c0_0, %c0_1] : memref<2x3x256xf32, #tpu.memory_space<vmem>>, vector<2x3x256xf32>
    %c0_2 = arith.constant 0 : index
    %1 = memref.load %arg3[%c0_2] : memref<6xf32, #tpu.memory_space<smem>>
    %2 = vector.broadcast %1 : f32 to vector<2x256xf32>
    %c1 = arith.constant 1 : index
    %3 = memref.load %arg3[%c1] : memref<6xf32, #tpu.memory_space<smem>>
    %4 = vector.broadcast %3 : f32 to vector<2x256xf32>
    %c2 = arith.constant 2 : index
    %5 = memref.load %arg3[%c2] : memref<6xf32, #tpu.memory_space<smem>>
    %6 = vector.broadcast %5 : f32 to vector<2x256xf32>
    %c3 = arith.constant 3 : index
    %7 = memref.load %arg3[%c3] : memref<6xf32, #tpu.memory_space<smem>>
    %8 = vector.broadcast %7 : f32 to vector<2x256xf32>
    %c4 = arith.constant 4 : index
    %9 = memref.load %arg3[%c4] : memref<6xf32, #tpu.memory_space<smem>>
    %10 = vector.broadcast %9 : f32 to vector<2x256xf32>
    %c5 = arith.constant 5 : index
    %11 = memref.load %arg3[%c5] : memref<6xf32, #tpu.memory_space<smem>>
    %12 = vector.broadcast %11 : f32 to vector<2x256xf32>
    %13 = vector.extract_strided_slice %0 {offsets = [0, 0, 0], sizes = [2, 1, 256], strides = [1, 1, 1]} : vector<2x3x256xf32> to vector<2x1x256xf32>
    %14 = vector.shape_cast %13 : vector<2x1x256xf32> to vector<2x256xf32>
    %c0_3 = arith.constant 0 : index
    %15 = memref.load %arg2[%c0_3] : memref<162xf32, #tpu.memory_space<smem>>
    %16 = vector.broadcast %15 : f32 to vector<2x256xf32>
    %17 = arith.mulf %16, %14 : vector<2x256xf32>
    %18 = arith.addf %2, %17 : vector<2x256xf32>
    %c27 = arith.constant 27 : index
    %19 = memref.load %arg2[%c27] : memref<162xf32, #tpu.memory_space<smem>>
    %20 = vector.broadcast %19 : f32 to vector<2x256xf32>
    %21 = arith.mulf %20, %14 : vector<2x256xf32>
    %22 = arith.addf %4, %21 : vector<2x256xf32>
    %c54 = arith.constant 54 : index
    %23 = memref.load %arg2[%c54] : memref<162xf32, #tpu.memory_space<smem>>
    %24 = vector.broadcast %23 : f32 to vector<2x256xf32>
    %25 = arith.mulf %24, %14 : vector<2x256xf32>
    %26 = arith.addf %6, %25 : vector<2x256xf32>
    %c81 = arith.constant 81 : index
    %27 = memref.load %arg2[%c81] : memref<162xf32, #tpu.memory_space<smem>>
    %28 = vector.broadcast %27 : f32 to vector<2x256xf32>
    %29 = arith.mulf %28, %14 : vector<2x256xf32>
    %30 = arith.addf %8, %29 : vector<2x256xf32>
    %c108 = arith.constant 108 : index
    %31 = memref.load %arg2[%c108] : memref<162xf32, #tpu.memory_space<smem>>
    %32 = vector.broadcast %31 : f32 to vector<2x256xf32>
    %33 = arith.mulf %32, %14 : vector<2x256xf32>
    %34 = arith.addf %10, %33 : vector<2x256xf32>
    %c135 = arith.constant 135 : index
    %35 = memref.load %arg2[%c135] : memref<162xf32, #tpu.memory_space<smem>>
    %36 = vector.broadcast %35 : f32 to vector<2x256xf32>
    %37 = arith.mulf %36, %14 : vector<2x256xf32>
    %38 = arith.addf %12, %37 : vector<2x256xf32>
    %c255_i32 = arith.constant 255 : i32
    %39 = tpu.dynamic_rotate %14 by %c255_i32 dim 1 : vector<2x256xf32>, i32 -> vector<2x256xf32>
    %c1_4 = arith.constant 1 : index
    %40 = memref.load %arg2[%c1_4] : memref<162xf32, #tpu.memory_space<smem>>
    %41 = vector.broadcast %40 : f32 to vector<2x256xf32>
    %42 = arith.mulf %41, %39 : vector<2x256xf32>
    %43 = arith.addf %18, %42 : vector<2x256xf32>
    %c28 = arith.constant 28 : index
    %44 = memref.load %arg2[%c28] : memref<162xf32, #tpu.memory_space<smem>>
    %45 = vector.broadcast %44 : f32 to vector<2x256xf32>
    %46 = arith.mulf %45, %39 : vector<2x256xf32>
    %47 = arith.addf %22, %46 : vector<2x256xf32>
    %c55 = arith.constant 55 : index
    %48 = memref.load %arg2[%c55] : memref<162xf32, #tpu.memory_space<smem>>
    %49 = vector.broadcast %48 : f32 to vector<2x256xf32>
    %50 = arith.mulf %49, %39 : vector<2x256xf32>
    %51 = arith.addf %26, %50 : vector<2x256xf32>
    %c82 = arith.constant 82 : index
    %52 = memref.load %arg2[%c82] : memref<162xf32, #tpu.memory_space<smem>>
    %53 = vector.broadcast %52 : f32 to vector<2x256xf32>
    %54 = arith.mulf %53, %39 : vector<2x256xf32>
    %55 = arith.addf %30, %54 : vector<2x256xf32>
    %c109 = arith.constant 109 : index
    %56 = memref.load %arg2[%c109] : memref<162xf32, #tpu.memory_space<smem>>
    %57 = vector.broadcast %56 : f32 to vector<2x256xf32>
    %58 = arith.mulf %57, %39 : vector<2x256xf32>
    %59 = arith.addf %34, %58 : vector<2x256xf32>
    %c136 = arith.constant 136 : index
    %60 = memref.load %arg2[%c136] : memref<162xf32, #tpu.memory_space<smem>>
    %61 = vector.broadcast %60 : f32 to vector<2x256xf32>
    %62 = arith.mulf %61, %39 : vector<2x256xf32>
    %63 = arith.addf %38, %62 : vector<2x256xf32>
    %c254_i32 = arith.constant 254 : i32
    %64 = tpu.dynamic_rotate %14 by %c254_i32 dim 1 : vector<2x256xf32>, i32 -> vector<2x256xf32>
    %c2_5 = arith.constant 2 : index
    %65 = memref.load %arg2[%c2_5] : memref<162xf32, #tpu.memory_space<smem>>
    %66 = vector.broadcast %65 : f32 to vector<2x256xf32>
    %67 = arith.mulf %66, %64 : vector<2x256xf32>
    %68 = arith.addf %43, %67 : vector<2x256xf32>
    %c29 = arith.constant 29 : index
    %69 = memref.load %arg2[%c29] : memref<162xf32, #tpu.memory_space<smem>>
    %70 = vector.broadcast %69 : f32 to vector<2x256xf32>
    %71 = arith.mulf %70, %64 : vector<2x256xf32>
    %72 = arith.addf %47, %71 : vector<2x256xf32>
    %c56 = arith.constant 56 : index
    %73 = memref.load %arg2[%c56] : memref<162xf32, #tpu.memory_space<smem>>
    %74 = vector.broadcast %73 : f32 to vector<2x256xf32>
    %75 = arith.mulf %74, %64 : vector<2x256xf32>
    %76 = arith.addf %51, %75 : vector<2x256xf32>
    %c83 = arith.constant 83 : index
    %77 = memref.load %arg2[%c83] : memref<162xf32, #tpu.memory_space<smem>>
    %78 = vector.broadcast %77 : f32 to vector<2x256xf32>
    %79 = arith.mulf %78, %64 : vector<2x256xf32>
    %80 = arith.addf %55, %79 : vector<2x256xf32>
    %c110 = arith.constant 110 : index
    %81 = memref.load %arg2[%c110] : memref<162xf32, #tpu.memory_space<smem>>
    %82 = vector.broadcast %81 : f32 to vector<2x256xf32>
    %83 = arith.mulf %82, %64 : vector<2x256xf32>
    %84 = arith.addf %59, %83 : vector<2x256xf32>
    %c137 = arith.constant 137 : index
    %85 = memref.load %arg2[%c137] : memref<162xf32, #tpu.memory_space<smem>>
    %86 = vector.broadcast %85 : f32 to vector<2x256xf32>
    %87 = arith.mulf %86, %64 : vector<2x256xf32>
    %88 = arith.addf %63, %87 : vector<2x256xf32>
    %c240_i32 = arith.constant 240 : i32
    %89 = tpu.dynamic_rotate %14 by %c240_i32 dim 1 : vector<2x256xf32>, i32 -> vector<2x256xf32>
    %c3_6 = arith.constant 3 : index
    %90 = memref.load %arg2[%c3_6] : memref<162xf32, #tpu.memory_space<smem>>
    %91 = vector.broadcast %90 : f32 to vector<2x256xf32>
    %92 = arith.mulf %91, %89 : vector<2x256xf32>
    %93 = arith.addf %68, %92 : vector<2x256xf32>
    %c30 = arith.constant 30 : index
    %94 = memref.load %arg2[%c30] : memref<162xf32, #tpu.memory_space<smem>>
    %95 = vector.broadcast %94 : f32 to vector<2x256xf32>
    %96 = arith.mulf %95, %89 : vector<2x256xf32>
    %97 = arith.addf %72, %96 : vector<2x256xf32>
    %c57 = arith.constant 57 : index
    %98 = memref.load %arg2[%c57] : memref<162xf32, #tpu.memory_space<smem>>
    %99 = vector.broadcast %98 : f32 to vector<2x256xf32>
    %100 = arith.mulf %99, %89 : vector<2x256xf32>
    %101 = arith.addf %76, %100 : vector<2x256xf32>
    %c84 = arith.constant 84 : index
    %102 = memref.load %arg2[%c84] : memref<162xf32, #tpu.memory_space<smem>>
    %103 = vector.broadcast %102 : f32 to vector<2x256xf32>
    %104 = arith.mulf %103, %89 : vector<2x256xf32>
    %105 = arith.addf %80, %104 : vector<2x256xf32>
    %c111 = arith.constant 111 : index
    %106 = memref.load %arg2[%c111] : memref<162xf32, #tpu.memory_space<smem>>
    %107 = vector.broadcast %106 : f32 to vector<2x256xf32>
    %108 = arith.mulf %107, %89 : vector<2x256xf32>
    %109 = arith.addf %84, %108 : vector<2x256xf32>
    %c138 = arith.constant 138 : index
    %110 = memref.load %arg2[%c138] : memref<162xf32, #tpu.memory_space<smem>>
    %111 = vector.broadcast %110 : f32 to vector<2x256xf32>
    %112 = arith.mulf %111, %89 : vector<2x256xf32>
    %113 = arith.addf %88, %112 : vector<2x256xf32>
    %c239_i32 = arith.constant 239 : i32
    %114 = tpu.dynamic_rotate %14 by %c239_i32 dim 1 : vector<2x256xf32>, i32 -> vector<2x256xf32>
    %c4_7 = arith.constant 4 : index
    %115 = memref.load %arg2[%c4_7] : memref<162xf32, #tpu.memory_space<smem>>
    %116 = vector.broadcast %115 : f32 to vector<2x256xf32>
    %117 = arith.mulf %116, %114 : vector<2x256xf32>
    %118 = arith.addf %93, %117 : vector<2x256xf32>
    %c31 = arith.constant 31 : index
    %119 = memref.load %arg2[%c31] : memref<162xf32, #tpu.memory_space<smem>>
    %120 = vector.broadcast %119 : f32 to vector<2x256xf32>
    %121 = arith.mulf %120, %114 : vector<2x256xf32>
    %122 = arith.addf %97, %121 : vector<2x256xf32>
    %c58 = arith.constant 58 : index
    %123 = memref.load %arg2[%c58] : memref<162xf32, #tpu.memory_space<smem>>
    %124 = vector.broadcast %123 : f32 to vector<2x256xf32>
    %125 = arith.mulf %124, %114 : vector<2x256xf32>
    %126 = arith.addf %101, %125 : vector<2x256xf32>
    %c85 = arith.constant 85 : index
    %127 = memref.load %arg2[%c85] : memref<162xf32, #tpu.memory_space<smem>>
    %128 = vector.broadcast %127 : f32 to vector<2x256xf32>
    %129 = arith.mulf %128, %114 : vector<2x256xf32>
    %130 = arith.addf %105, %129 : vector<2x256xf32>
    %c112 = arith.constant 112 : index
    %131 = memref.load %arg2[%c112] : memref<162xf32, #tpu.memory_space<smem>>
    %132 = vector.broadcast %131 : f32 to vector<2x256xf32>
    %133 = arith.mulf %132, %114 : vector<2x256xf32>
    %134 = arith.addf %109, %133 : vector<2x256xf32>
    %c139 = arith.constant 139 : index
    %135 = memref.load %arg2[%c139] : memref<162xf32, #tpu.memory_space<smem>>
    %136 = vector.broadcast %135 : f32 to vector<2x256xf32>
    %137 = arith.mulf %136, %114 : vector<2x256xf32>
    %138 = arith.addf %113, %137 : vector<2x256xf32>
    %c238_i32 = arith.constant 238 : i32
    %139 = tpu.dynamic_rotate %14 by %c238_i32 dim 1 : vector<2x256xf32>, i32 -> vector<2x256xf32>
    %c5_8 = arith.constant 5 : index
    %140 = memref.load %arg2[%c5_8] : memref<162xf32, #tpu.memory_space<smem>>
    %141 = vector.broadcast %140 : f32 to vector<2x256xf32>
    %142 = arith.mulf %141, %139 : vector<2x256xf32>
    %143 = arith.addf %118, %142 : vector<2x256xf32>
    %c32 = arith.constant 32 : index
    %144 = memref.load %arg2[%c32] : memref<162xf32, #tpu.memory_space<smem>>
    %145 = vector.broadcast %144 : f32 to vector<2x256xf32>
    %146 = arith.mulf %145, %139 : vector<2x256xf32>
    %147 = arith.addf %122, %146 : vector<2x256xf32>
    %c59 = arith.constant 59 : index
    %148 = memref.load %arg2[%c59] : memref<162xf32, #tpu.memory_space<smem>>
    %149 = vector.broadcast %148 : f32 to vector<2x256xf32>
    %150 = arith.mulf %149, %139 : vector<2x256xf32>
    %151 = arith.addf %126, %150 : vector<2x256xf32>
    %c86 = arith.constant 86 : index
    %152 = memref.load %arg2[%c86] : memref<162xf32, #tpu.memory_space<smem>>
    %153 = vector.broadcast %152 : f32 to vector<2x256xf32>
    %154 = arith.mulf %153, %139 : vector<2x256xf32>
    %155 = arith.addf %130, %154 : vector<2x256xf32>
    %c113 = arith.constant 113 : index
    %156 = memref.load %arg2[%c113] : memref<162xf32, #tpu.memory_space<smem>>
    %157 = vector.broadcast %156 : f32 to vector<2x256xf32>
    %158 = arith.mulf %157, %139 : vector<2x256xf32>
    %159 = arith.addf %134, %158 : vector<2x256xf32>
    %c140 = arith.constant 140 : index
    %160 = memref.load %arg2[%c140] : memref<162xf32, #tpu.memory_space<smem>>
    %161 = vector.broadcast %160 : f32 to vector<2x256xf32>
    %162 = arith.mulf %161, %139 : vector<2x256xf32>
    %163 = arith.addf %138, %162 : vector<2x256xf32>
    %c224_i32 = arith.constant 224 : i32
    %164 = tpu.dynamic_rotate %14 by %c224_i32 dim 1 : vector<2x256xf32>, i32 -> vector<2x256xf32>
    %c6 = arith.constant 6 : index
    %165 = memref.load %arg2[%c6] : memref<162xf32, #tpu.memory_space<smem>>
    %166 = vector.broadcast %165 : f32 to vector<2x256xf32>
    %167 = arith.mulf %166, %164 : vector<2x256xf32>
    %168 = arith.addf %143, %167 : vector<2x256xf32>
    %c33 = arith.constant 33 : index
    %169 = memref.load %arg2[%c33] : memref<162xf32, #tpu.memory_space<smem>>
    %170 = vector.broadcast %169 : f32 to vector<2x256xf32>
    %171 = arith.mulf %170, %164 : vector<2x256xf32>
    %172 = arith.addf %147, %171 : vector<2x256xf32>
    %c60 = arith.constant 60 : index
    %173 = memref.load %arg2[%c60] : memref<162xf32, #tpu.memory_space<smem>>
    %174 = vector.broadcast %173 : f32 to vector<2x256xf32>
    %175 = arith.mulf %174, %164 : vector<2x256xf32>
    %176 = arith.addf %151, %175 : vector<2x256xf32>
    %c87 = arith.constant 87 : index
    %177 = memref.load %arg2[%c87] : memref<162xf32, #tpu.memory_space<smem>>
    %178 = vector.broadcast %177 : f32 to vector<2x256xf32>
    %179 = arith.mulf %178, %164 : vector<2x256xf32>
    %180 = arith.addf %155, %179 : vector<2x256xf32>
    %c114 = arith.constant 114 : index
    %181 = memref.load %arg2[%c114] : memref<162xf32, #tpu.memory_space<smem>>
    %182 = vector.broadcast %181 : f32 to vector<2x256xf32>
    %183 = arith.mulf %182, %164 : vector<2x256xf32>
    %184 = arith.addf %159, %183 : vector<2x256xf32>
    %c141 = arith.constant 141 : index
    %185 = memref.load %arg2[%c141] : memref<162xf32, #tpu.memory_space<smem>>
    %186 = vector.broadcast %185 : f32 to vector<2x256xf32>
    %187 = arith.mulf %186, %164 : vector<2x256xf32>
    %188 = arith.addf %163, %187 : vector<2x256xf32>
    %c223_i32 = arith.constant 223 : i32
    %189 = tpu.dynamic_rotate %14 by %c223_i32 dim 1 : vector<2x256xf32>, i32 -> vector<2x256xf32>
    %c7 = arith.constant 7 : index
    %190 = memref.load %arg2[%c7] : memref<162xf32, #tpu.memory_space<smem>>
    %191 = vector.broadcast %190 : f32 to vector<2x256xf32>
    %192 = arith.mulf %191, %189 : vector<2x256xf32>
    %193 = arith.addf %168, %192 : vector<2x256xf32>
    %c34 = arith.constant 34 : index
    %194 = memref.load %arg2[%c34] : memref<162xf32, #tpu.memory_space<smem>>
    %195 = vector.broadcast %194 : f32 to vector<2x256xf32>
    %196 = arith.mulf %195, %189 : vector<2x256xf32>
    %197 = arith.addf %172, %196 : vector<2x256xf32>
    %c61 = arith.constant 61 : index
    %198 = memref.load %arg2[%c61] : memref<162xf32, #tpu.memory_space<smem>>
    %199 = vector.broadcast %198 : f32 to vector<2x256xf32>
    %200 = arith.mulf %199, %189 : vector<2x256xf32>
    %201 = arith.addf %176, %200 : vector<2x256xf32>
    %c88 = arith.constant 88 : index
    %202 = memref.load %arg2[%c88] : memref<162xf32, #tpu.memory_space<smem>>
    %203 = vector.broadcast %202 : f32 to vector<2x256xf32>
    %204 = arith.mulf %203, %189 : vector<2x256xf32>
    %205 = arith.addf %180, %204 : vector<2x256xf32>
    %c115 = arith.constant 115 : index
    %206 = memref.load %arg2[%c115] : memref<162xf32, #tpu.memory_space<smem>>
    %207 = vector.broadcast %206 : f32 to vector<2x256xf32>
    %208 = arith.mulf %207, %189 : vector<2x256xf32>
    %209 = arith.addf %184, %208 : vector<2x256xf32>
    %c142 = arith.constant 142 : index
    %210 = memref.load %arg2[%c142] : memref<162xf32, #tpu.memory_space<smem>>
    %211 = vector.broadcast %210 : f32 to vector<2x256xf32>
    %212 = arith.mulf %211, %189 : vector<2x256xf32>
    %213 = arith.addf %188, %212 : vector<2x256xf32>
    %c222_i32 = arith.constant 222 : i32
    %214 = tpu.dynamic_rotate %14 by %c222_i32 dim 1 : vector<2x256xf32>, i32 -> vector<2x256xf32>
    %c8 = arith.constant 8 : index
    %215 = memref.load %arg2[%c8] : memref<162xf32, #tpu.memory_space<smem>>
    %216 = vector.broadcast %215 : f32 to vector<2x256xf32>
    %217 = arith.mulf %216, %214 : vector<2x256xf32>
    %218 = arith.addf %193, %217 : vector<2x256xf32>
    %c35 = arith.constant 35 : index
    %219 = memref.load %arg2[%c35] : memref<162xf32, #tpu.memory_space<smem>>
    %220 = vector.broadcast %219 : f32 to vector<2x256xf32>
    %221 = arith.mulf %220, %214 : vector<2x256xf32>
    %222 = arith.addf %197, %221 : vector<2x256xf32>
    %c62 = arith.constant 62 : index
    %223 = memref.load %arg2[%c62] : memref<162xf32, #tpu.memory_space<smem>>
    %224 = vector.broadcast %223 : f32 to vector<2x256xf32>
    %225 = arith.mulf %224, %214 : vector<2x256xf32>
    %226 = arith.addf %201, %225 : vector<2x256xf32>
    %c89 = arith.constant 89 : index
    %227 = memref.load %arg2[%c89] : memref<162xf32, #tpu.memory_space<smem>>
    %228 = vector.broadcast %227 : f32 to vector<2x256xf32>
    %229 = arith.mulf %228, %214 : vector<2x256xf32>
    %230 = arith.addf %205, %229 : vector<2x256xf32>
    %c116 = arith.constant 116 : index
    %231 = memref.load %arg2[%c116] : memref<162xf32, #tpu.memory_space<smem>>
    %232 = vector.broadcast %231 : f32 to vector<2x256xf32>
    %233 = arith.mulf %232, %214 : vector<2x256xf32>
    %234 = arith.addf %209, %233 : vector<2x256xf32>
    %c143 = arith.constant 143 : index
    %235 = memref.load %arg2[%c143] : memref<162xf32, #tpu.memory_space<smem>>
    %236 = vector.broadcast %235 : f32 to vector<2x256xf32>
    %237 = arith.mulf %236, %214 : vector<2x256xf32>
    %238 = arith.addf %213, %237 : vector<2x256xf32>
    %239 = vector.extract_strided_slice %0 {offsets = [0, 1, 0], sizes = [2, 1, 256], strides = [1, 1, 1]} : vector<2x3x256xf32> to vector<2x1x256xf32>
    %240 = vector.shape_cast %239 : vector<2x1x256xf32> to vector<2x256xf32>
    %c9 = arith.constant 9 : index
    %241 = memref.load %arg2[%c9] : memref<162xf32, #tpu.memory_space<smem>>
    %242 = vector.broadcast %241 : f32 to vector<2x256xf32>
    %243 = arith.mulf %242, %240 : vector<2x256xf32>
    %244 = arith.addf %218, %243 : vector<2x256xf32>
    %c36 = arith.constant 36 : index
    %245 = memref.load %arg2[%c36] : memref<162xf32, #tpu.memory_space<smem>>
    %246 = vector.broadcast %245 : f32 to vector<2x256xf32>
    %247 = arith.mulf %246, %240 : vector<2x256xf32>
    %248 = arith.addf %222, %247 : vector<2x256xf32>
    %c63 = arith.constant 63 : index
    %249 = memref.load %arg2[%c63] : memref<162xf32, #tpu.memory_space<smem>>
    %250 = vector.broadcast %249 : f32 to vector<2x256xf32>
    %251 = arith.mulf %250, %240 : vector<2x256xf32>
    %252 = arith.addf %226, %251 : vector<2x256xf32>
    %c90 = arith.constant 90 : index
    %253 = memref.load %arg2[%c90] : memref<162xf32, #tpu.memory_space<smem>>
    %254 = vector.broadcast %253 : f32 to vector<2x256xf32>
    %255 = arith.mulf %254, %240 : vector<2x256xf32>
    %256 = arith.addf %230, %255 : vector<2x256xf32>
    %c117 = arith.constant 117 : index
    %257 = memref.load %arg2[%c117] : memref<162xf32, #tpu.memory_space<smem>>
    %258 = vector.broadcast %257 : f32 to vector<2x256xf32>
    %259 = arith.mulf %258, %240 : vector<2x256xf32>
    %260 = arith.addf %234, %259 : vector<2x256xf32>
    %c144 = arith.constant 144 : index
    %261 = memref.load %arg2[%c144] : memref<162xf32, #tpu.memory_space<smem>>
    %262 = vector.broadcast %261 : f32 to vector<2x256xf32>
    %263 = arith.mulf %262, %240 : vector<2x256xf32>
    %264 = arith.addf %238, %263 : vector<2x256xf32>
    %c255_i32_9 = arith.constant 255 : i32
    %265 = tpu.dynamic_rotate %240 by %c255_i32_9 dim 1 : vector<2x256xf32>, i32 -> vector<2x256xf32>
    %c10 = arith.constant 10 : index
    %266 = memref.load %arg2[%c10] : memref<162xf32, #tpu.memory_space<smem>>
    %267 = vector.broadcast %266 : f32 to vector<2x256xf32>
    %268 = arith.mulf %267, %265 : vector<2x256xf32>
    %269 = arith.addf %244, %268 : vector<2x256xf32>
    %c37 = arith.constant 37 : index
    %270 = memref.load %arg2[%c37] : memref<162xf32, #tpu.memory_space<smem>>
    %271 = vector.broadcast %270 : f32 to vector<2x256xf32>
    %272 = arith.mulf %271, %265 : vector<2x256xf32>
    %273 = arith.addf %248, %272 : vector<2x256xf32>
    %c64 = arith.constant 64 : index
    %274 = memref.load %arg2[%c64] : memref<162xf32, #tpu.memory_space<smem>>
    %275 = vector.broadcast %274 : f32 to vector<2x256xf32>
    %276 = arith.mulf %275, %265 : vector<2x256xf32>
    %277 = arith.addf %252, %276 : vector<2x256xf32>
    %c91 = arith.constant 91 : index
    %278 = memref.load %arg2[%c91] : memref<162xf32, #tpu.memory_space<smem>>
    %279 = vector.broadcast %278 : f32 to vector<2x256xf32>
    %280 = arith.mulf %279, %265 : vector<2x256xf32>
    %281 = arith.addf %256, %280 : vector<2x256xf32>
    %c118 = arith.constant 118 : index
    %282 = memref.load %arg2[%c118] : memref<162xf32, #tpu.memory_space<smem>>
    %283 = vector.broadcast %282 : f32 to vector<2x256xf32>
    %284 = arith.mulf %283, %265 : vector<2x256xf32>
    %285 = arith.addf %260, %284 : vector<2x256xf32>
    %c145 = arith.constant 145 : index
    %286 = memref.load %arg2[%c145] : memref<162xf32, #tpu.memory_space<smem>>
    %287 = vector.broadcast %286 : f32 to vector<2x256xf32>
    %288 = arith.mulf %287, %265 : vector<2x256xf32>
    %289 = arith.addf %264, %288 : vector<2x256xf32>
    %c254_i32_10 = arith.constant 254 : i32
    %290 = tpu.dynamic_rotate %240 by %c254_i32_10 dim 1 : vector<2x256xf32>, i32 -> vector<2x256xf32>
    %c11 = arith.constant 11 : index
    %291 = memref.load %arg2[%c11] : memref<162xf32, #tpu.memory_space<smem>>
    %292 = vector.broadcast %291 : f32 to vector<2x256xf32>
    %293 = arith.mulf %292, %290 : vector<2x256xf32>
    %294 = arith.addf %269, %293 : vector<2x256xf32>
    %c38 = arith.constant 38 : index
    %295 = memref.load %arg2[%c38] : memref<162xf32, #tpu.memory_space<smem>>
    %296 = vector.broadcast %295 : f32 to vector<2x256xf32>
    %297 = arith.mulf %296, %290 : vector<2x256xf32>
    %298 = arith.addf %273, %297 : vector<2x256xf32>
    %c65 = arith.constant 65 : index
    %299 = memref.load %arg2[%c65] : memref<162xf32, #tpu.memory_space<smem>>
    %300 = vector.broadcast %299 : f32 to vector<2x256xf32>
    %301 = arith.mulf %300, %290 : vector<2x256xf32>
    %302 = arith.addf %277, %301 : vector<2x256xf32>
    %c92 = arith.constant 92 : index
    %303 = memref.load %arg2[%c92] : memref<162xf32, #tpu.memory_space<smem>>
    %304 = vector.broadcast %303 : f32 to vector<2x256xf32>
    %305 = arith.mulf %304, %290 : vector<2x256xf32>
    %306 = arith.addf %281, %305 : vector<2x256xf32>
    %c119 = arith.constant 119 : index
    %307 = memref.load %arg2[%c119] : memref<162xf32, #tpu.memory_space<smem>>
    %308 = vector.broadcast %307 : f32 to vector<2x256xf32>
    %309 = arith.mulf %308, %290 : vector<2x256xf32>
    %310 = arith.addf %285, %309 : vector<2x256xf32>
    %c146 = arith.constant 146 : index
    %311 = memref.load %arg2[%c146] : memref<162xf32, #tpu.memory_space<smem>>
    %312 = vector.broadcast %311 : f32 to vector<2x256xf32>
    %313 = arith.mulf %312, %290 : vector<2x256xf32>
    %314 = arith.addf %289, %313 : vector<2x256xf32>
    %c240_i32_11 = arith.constant 240 : i32
    %315 = tpu.dynamic_rotate %240 by %c240_i32_11 dim 1 : vector<2x256xf32>, i32 -> vector<2x256xf32>
    %c12 = arith.constant 12 : index
    %316 = memref.load %arg2[%c12] : memref<162xf32, #tpu.memory_space<smem>>
    %317 = vector.broadcast %316 : f32 to vector<2x256xf32>
    %318 = arith.mulf %317, %315 : vector<2x256xf32>
    %319 = arith.addf %294, %318 : vector<2x256xf32>
    %c39 = arith.constant 39 : index
    %320 = memref.load %arg2[%c39] : memref<162xf32, #tpu.memory_space<smem>>
    %321 = vector.broadcast %320 : f32 to vector<2x256xf32>
    %322 = arith.mulf %321, %315 : vector<2x256xf32>
    %323 = arith.addf %298, %322 : vector<2x256xf32>
    %c66 = arith.constant 66 : index
    %324 = memref.load %arg2[%c66] : memref<162xf32, #tpu.memory_space<smem>>
    %325 = vector.broadcast %324 : f32 to vector<2x256xf32>
    %326 = arith.mulf %325, %315 : vector<2x256xf32>
    %327 = arith.addf %302, %326 : vector<2x256xf32>
    %c93 = arith.constant 93 : index
    %328 = memref.load %arg2[%c93] : memref<162xf32, #tpu.memory_space<smem>>
    %329 = vector.broadcast %328 : f32 to vector<2x256xf32>
    %330 = arith.mulf %329, %315 : vector<2x256xf32>
    %331 = arith.addf %306, %330 : vector<2x256xf32>
    %c120 = arith.constant 120 : index
    %332 = memref.load %arg2[%c120] : memref<162xf32, #tpu.memory_space<smem>>
    %333 = vector.broadcast %332 : f32 to vector<2x256xf32>
    %334 = arith.mulf %333, %315 : vector<2x256xf32>
    %335 = arith.addf %310, %334 : vector<2x256xf32>
    %c147 = arith.constant 147 : index
    %336 = memref.load %arg2[%c147] : memref<162xf32, #tpu.memory_space<smem>>
    %337 = vector.broadcast %336 : f32 to vector<2x256xf32>
    %338 = arith.mulf %337, %315 : vector<2x256xf32>
    %339 = arith.addf %314, %338 : vector<2x256xf32>
    %c239_i32_12 = arith.constant 239 : i32
    %340 = tpu.dynamic_rotate %240 by %c239_i32_12 dim 1 : vector<2x256xf32>, i32 -> vector<2x256xf32>
    %c13 = arith.constant 13 : index
    %341 = memref.load %arg2[%c13] : memref<162xf32, #tpu.memory_space<smem>>
    %342 = vector.broadcast %341 : f32 to vector<2x256xf32>
    %343 = arith.mulf %342, %340 : vector<2x256xf32>
    %344 = arith.addf %319, %343 : vector<2x256xf32>
    %c40 = arith.constant 40 : index
    %345 = memref.load %arg2[%c40] : memref<162xf32, #tpu.memory_space<smem>>
    %346 = vector.broadcast %345 : f32 to vector<2x256xf32>
    %347 = arith.mulf %346, %340 : vector<2x256xf32>
    %348 = arith.addf %323, %347 : vector<2x256xf32>
    %c67 = arith.constant 67 : index
    %349 = memref.load %arg2[%c67] : memref<162xf32, #tpu.memory_space<smem>>
    %350 = vector.broadcast %349 : f32 to vector<2x256xf32>
    %351 = arith.mulf %350, %340 : vector<2x256xf32>
    %352 = arith.addf %327, %351 : vector<2x256xf32>
    %c94 = arith.constant 94 : index
    %353 = memref.load %arg2[%c94] : memref<162xf32, #tpu.memory_space<smem>>
    %354 = vector.broadcast %353 : f32 to vector<2x256xf32>
    %355 = arith.mulf %354, %340 : vector<2x256xf32>
    %356 = arith.addf %331, %355 : vector<2x256xf32>
    %c121 = arith.constant 121 : index
    %357 = memref.load %arg2[%c121] : memref<162xf32, #tpu.memory_space<smem>>
    %358 = vector.broadcast %357 : f32 to vector<2x256xf32>
    %359 = arith.mulf %358, %340 : vector<2x256xf32>
    %360 = arith.addf %335, %359 : vector<2x256xf32>
    %c148 = arith.constant 148 : index
    %361 = memref.load %arg2[%c148] : memref<162xf32, #tpu.memory_space<smem>>
    %362 = vector.broadcast %361 : f32 to vector<2x256xf32>
    %363 = arith.mulf %362, %340 : vector<2x256xf32>
    %364 = arith.addf %339, %363 : vector<2x256xf32>
    %c238_i32_13 = arith.constant 238 : i32
    %365 = tpu.dynamic_rotate %240 by %c238_i32_13 dim 1 : vector<2x256xf32>, i32 -> vector<2x256xf32>
    %c14 = arith.constant 14 : index
    %366 = memref.load %arg2[%c14] : memref<162xf32, #tpu.memory_space<smem>>
    %367 = vector.broadcast %366 : f32 to vector<2x256xf32>
    %368 = arith.mulf %367, %365 : vector<2x256xf32>
    %369 = arith.addf %344, %368 : vector<2x256xf32>
    %c41 = arith.constant 41 : index
    %370 = memref.load %arg2[%c41] : memref<162xf32, #tpu.memory_space<smem>>
    %371 = vector.broadcast %370 : f32 to vector<2x256xf32>
    %372 = arith.mulf %371, %365 : vector<2x256xf32>
    %373 = arith.addf %348, %372 : vector<2x256xf32>
    %c68 = arith.constant 68 : index
    %374 = memref.load %arg2[%c68] : memref<162xf32, #tpu.memory_space<smem>>
    %375 = vector.broadcast %374 : f32 to vector<2x256xf32>
    %376 = arith.mulf %375, %365 : vector<2x256xf32>
    %377 = arith.addf %352, %376 : vector<2x256xf32>
    %c95 = arith.constant 95 : index
    %378 = memref.load %arg2[%c95] : memref<162xf32, #tpu.memory_space<smem>>
    %379 = vector.broadcast %378 : f32 to vector<2x256xf32>
    %380 = arith.mulf %379, %365 : vector<2x256xf32>
    %381 = arith.addf %356, %380 : vector<2x256xf32>
    %c122 = arith.constant 122 : index
    %382 = memref.load %arg2[%c122] : memref<162xf32, #tpu.memory_space<smem>>
    %383 = vector.broadcast %382 : f32 to vector<2x256xf32>
    %384 = arith.mulf %383, %365 : vector<2x256xf32>
    %385 = arith.addf %360, %384 : vector<2x256xf32>
    %c149 = arith.constant 149 : index
    %386 = memref.load %arg2[%c149] : memref<162xf32, #tpu.memory_space<smem>>
    %387 = vector.broadcast %386 : f32 to vector<2x256xf32>
    %388 = arith.mulf %387, %365 : vector<2x256xf32>
    %389 = arith.addf %364, %388 : vector<2x256xf32>
    %c224_i32_14 = arith.constant 224 : i32
    %390 = tpu.dynamic_rotate %240 by %c224_i32_14 dim 1 : vector<2x256xf32>, i32 -> vector<2x256xf32>
    %c15 = arith.constant 15 : index
    %391 = memref.load %arg2[%c15] : memref<162xf32, #tpu.memory_space<smem>>
    %392 = vector.broadcast %391 : f32 to vector<2x256xf32>
    %393 = arith.mulf %392, %390 : vector<2x256xf32>
    %394 = arith.addf %369, %393 : vector<2x256xf32>
    %c42 = arith.constant 42 : index
    %395 = memref.load %arg2[%c42] : memref<162xf32, #tpu.memory_space<smem>>
    %396 = vector.broadcast %395 : f32 to vector<2x256xf32>
    %397 = arith.mulf %396, %390 : vector<2x256xf32>
    %398 = arith.addf %373, %397 : vector<2x256xf32>
    %c69 = arith.constant 69 : index
    %399 = memref.load %arg2[%c69] : memref<162xf32, #tpu.memory_space<smem>>
    %400 = vector.broadcast %399 : f32 to vector<2x256xf32>
    %401 = arith.mulf %400, %390 : vector<2x256xf32>
    %402 = arith.addf %377, %401 : vector<2x256xf32>
    %c96 = arith.constant 96 : index
    %403 = memref.load %arg2[%c96] : memref<162xf32, #tpu.memory_space<smem>>
    %404 = vector.broadcast %403 : f32 to vector<2x256xf32>
    %405 = arith.mulf %404, %390 : vector<2x256xf32>
    %406 = arith.addf %381, %405 : vector<2x256xf32>
    %c123 = arith.constant 123 : index
    %407 = memref.load %arg2[%c123] : memref<162xf32, #tpu.memory_space<smem>>
    %408 = vector.broadcast %407 : f32 to vector<2x256xf32>
    %409 = arith.mulf %408, %390 : vector<2x256xf32>
    %410 = arith.addf %385, %409 : vector<2x256xf32>
    %c150 = arith.constant 150 : index
    %411 = memref.load %arg2[%c150] : memref<162xf32, #tpu.memory_space<smem>>
    %412 = vector.broadcast %411 : f32 to vector<2x256xf32>
    %413 = arith.mulf %412, %390 : vector<2x256xf32>
    %414 = arith.addf %389, %413 : vector<2x256xf32>
    %c223_i32_15 = arith.constant 223 : i32
    %415 = tpu.dynamic_rotate %240 by %c223_i32_15 dim 1 : vector<2x256xf32>, i32 -> vector<2x256xf32>
    %c16 = arith.constant 16 : index
    %416 = memref.load %arg2[%c16] : memref<162xf32, #tpu.memory_space<smem>>
    %417 = vector.broadcast %416 : f32 to vector<2x256xf32>
    %418 = arith.mulf %417, %415 : vector<2x256xf32>
    %419 = arith.addf %394, %418 : vector<2x256xf32>
    %c43 = arith.constant 43 : index
    %420 = memref.load %arg2[%c43] : memref<162xf32, #tpu.memory_space<smem>>
    %421 = vector.broadcast %420 : f32 to vector<2x256xf32>
    %422 = arith.mulf %421, %415 : vector<2x256xf32>
    %423 = arith.addf %398, %422 : vector<2x256xf32>
    %c70 = arith.constant 70 : index
    %424 = memref.load %arg2[%c70] : memref<162xf32, #tpu.memory_space<smem>>
    %425 = vector.broadcast %424 : f32 to vector<2x256xf32>
    %426 = arith.mulf %425, %415 : vector<2x256xf32>
    %427 = arith.addf %402, %426 : vector<2x256xf32>
    %c97 = arith.constant 97 : index
    %428 = memref.load %arg2[%c97] : memref<162xf32, #tpu.memory_space<smem>>
    %429 = vector.broadcast %428 : f32 to vector<2x256xf32>
    %430 = arith.mulf %429, %415 : vector<2x256xf32>
    %431 = arith.addf %406, %430 : vector<2x256xf32>
    %c124 = arith.constant 124 : index
    %432 = memref.load %arg2[%c124] : memref<162xf32, #tpu.memory_space<smem>>
    %433 = vector.broadcast %432 : f32 to vector<2x256xf32>
    %434 = arith.mulf %433, %415 : vector<2x256xf32>
    %435 = arith.addf %410, %434 : vector<2x256xf32>
    %c151 = arith.constant 151 : index
    %436 = memref.load %arg2[%c151] : memref<162xf32, #tpu.memory_space<smem>>
    %437 = vector.broadcast %436 : f32 to vector<2x256xf32>
    %438 = arith.mulf %437, %415 : vector<2x256xf32>
    %439 = arith.addf %414, %438 : vector<2x256xf32>
    %c222_i32_16 = arith.constant 222 : i32
    %440 = tpu.dynamic_rotate %240 by %c222_i32_16 dim 1 : vector<2x256xf32>, i32 -> vector<2x256xf32>
    %c17 = arith.constant 17 : index
    %441 = memref.load %arg2[%c17] : memref<162xf32, #tpu.memory_space<smem>>
    %442 = vector.broadcast %441 : f32 to vector<2x256xf32>
    %443 = arith.mulf %442, %440 : vector<2x256xf32>
    %444 = arith.addf %419, %443 : vector<2x256xf32>
    %c44 = arith.constant 44 : index
    %445 = memref.load %arg2[%c44] : memref<162xf32, #tpu.memory_space<smem>>
    %446 = vector.broadcast %445 : f32 to vector<2x256xf32>
    %447 = arith.mulf %446, %440 : vector<2x256xf32>
    %448 = arith.addf %423, %447 : vector<2x256xf32>
    %c71 = arith.constant 71 : index
    %449 = memref.load %arg2[%c71] : memref<162xf32, #tpu.memory_space<smem>>
    %450 = vector.broadcast %449 : f32 to vector<2x256xf32>
    %451 = arith.mulf %450, %440 : vector<2x256xf32>
    %452 = arith.addf %427, %451 : vector<2x256xf32>
    %c98 = arith.constant 98 : index
    %453 = memref.load %arg2[%c98] : memref<162xf32, #tpu.memory_space<smem>>
    %454 = vector.broadcast %453 : f32 to vector<2x256xf32>
    %455 = arith.mulf %454, %440 : vector<2x256xf32>
    %456 = arith.addf %431, %455 : vector<2x256xf32>
    %c125 = arith.constant 125 : index
    %457 = memref.load %arg2[%c125] : memref<162xf32, #tpu.memory_space<smem>>
    %458 = vector.broadcast %457 : f32 to vector<2x256xf32>
    %459 = arith.mulf %458, %440 : vector<2x256xf32>
    %460 = arith.addf %435, %459 : vector<2x256xf32>
    %c152 = arith.constant 152 : index
    %461 = memref.load %arg2[%c152] : memref<162xf32, #tpu.memory_space<smem>>
    %462 = vector.broadcast %461 : f32 to vector<2x256xf32>
    %463 = arith.mulf %462, %440 : vector<2x256xf32>
    %464 = arith.addf %439, %463 : vector<2x256xf32>
    %465 = vector.extract_strided_slice %0 {offsets = [0, 2, 0], sizes = [2, 1, 256], strides = [1, 1, 1]} : vector<2x3x256xf32> to vector<2x1x256xf32>
    %466 = vector.shape_cast %465 : vector<2x1x256xf32> to vector<2x256xf32>
    %c18 = arith.constant 18 : index
    %467 = memref.load %arg2[%c18] : memref<162xf32, #tpu.memory_space<smem>>
    %468 = vector.broadcast %467 : f32 to vector<2x256xf32>
    %469 = arith.mulf %468, %466 : vector<2x256xf32>
    %470 = arith.addf %444, %469 : vector<2x256xf32>
    %c45 = arith.constant 45 : index
    %471 = memref.load %arg2[%c45] : memref<162xf32, #tpu.memory_space<smem>>
    %472 = vector.broadcast %471 : f32 to vector<2x256xf32>
    %473 = arith.mulf %472, %466 : vector<2x256xf32>
    %474 = arith.addf %448, %473 : vector<2x256xf32>
    %c72 = arith.constant 72 : index
    %475 = memref.load %arg2[%c72] : memref<162xf32, #tpu.memory_space<smem>>
    %476 = vector.broadcast %475 : f32 to vector<2x256xf32>
    %477 = arith.mulf %476, %466 : vector<2x256xf32>
    %478 = arith.addf %452, %477 : vector<2x256xf32>
    %c99 = arith.constant 99 : index
    %479 = memref.load %arg2[%c99] : memref<162xf32, #tpu.memory_space<smem>>
    %480 = vector.broadcast %479 : f32 to vector<2x256xf32>
    %481 = arith.mulf %480, %466 : vector<2x256xf32>
    %482 = arith.addf %456, %481 : vector<2x256xf32>
    %c126 = arith.constant 126 : index
    %483 = memref.load %arg2[%c126] : memref<162xf32, #tpu.memory_space<smem>>
    %484 = vector.broadcast %483 : f32 to vector<2x256xf32>
    %485 = arith.mulf %484, %466 : vector<2x256xf32>
    %486 = arith.addf %460, %485 : vector<2x256xf32>
    %c153 = arith.constant 153 : index
    %487 = memref.load %arg2[%c153] : memref<162xf32, #tpu.memory_space<smem>>
    %488 = vector.broadcast %487 : f32 to vector<2x256xf32>
    %489 = arith.mulf %488, %466 : vector<2x256xf32>
    %490 = arith.addf %464, %489 : vector<2x256xf32>
    %c255_i32_17 = arith.constant 255 : i32
    %491 = tpu.dynamic_rotate %466 by %c255_i32_17 dim 1 : vector<2x256xf32>, i32 -> vector<2x256xf32>
    %c19 = arith.constant 19 : index
    %492 = memref.load %arg2[%c19] : memref<162xf32, #tpu.memory_space<smem>>
    %493 = vector.broadcast %492 : f32 to vector<2x256xf32>
    %494 = arith.mulf %493, %491 : vector<2x256xf32>
    %495 = arith.addf %470, %494 : vector<2x256xf32>
    %c46 = arith.constant 46 : index
    %496 = memref.load %arg2[%c46] : memref<162xf32, #tpu.memory_space<smem>>
    %497 = vector.broadcast %496 : f32 to vector<2x256xf32>
    %498 = arith.mulf %497, %491 : vector<2x256xf32>
    %499 = arith.addf %474, %498 : vector<2x256xf32>
    %c73 = arith.constant 73 : index
    %500 = memref.load %arg2[%c73] : memref<162xf32, #tpu.memory_space<smem>>
    %501 = vector.broadcast %500 : f32 to vector<2x256xf32>
    %502 = arith.mulf %501, %491 : vector<2x256xf32>
    %503 = arith.addf %478, %502 : vector<2x256xf32>
    %c100 = arith.constant 100 : index
    %504 = memref.load %arg2[%c100] : memref<162xf32, #tpu.memory_space<smem>>
    %505 = vector.broadcast %504 : f32 to vector<2x256xf32>
    %506 = arith.mulf %505, %491 : vector<2x256xf32>
    %507 = arith.addf %482, %506 : vector<2x256xf32>
    %c127 = arith.constant 127 : index
    %508 = memref.load %arg2[%c127] : memref<162xf32, #tpu.memory_space<smem>>
    %509 = vector.broadcast %508 : f32 to vector<2x256xf32>
    %510 = arith.mulf %509, %491 : vector<2x256xf32>
    %511 = arith.addf %486, %510 : vector<2x256xf32>
    %c154 = arith.constant 154 : index
    %512 = memref.load %arg2[%c154] : memref<162xf32, #tpu.memory_space<smem>>
    %513 = vector.broadcast %512 : f32 to vector<2x256xf32>
    %514 = arith.mulf %513, %491 : vector<2x256xf32>
    %515 = arith.addf %490, %514 : vector<2x256xf32>
    %c254_i32_18 = arith.constant 254 : i32
    %516 = tpu.dynamic_rotate %466 by %c254_i32_18 dim 1 : vector<2x256xf32>, i32 -> vector<2x256xf32>
    %c20 = arith.constant 20 : index
    %517 = memref.load %arg2[%c20] : memref<162xf32, #tpu.memory_space<smem>>
    %518 = vector.broadcast %517 : f32 to vector<2x256xf32>
    %519 = arith.mulf %518, %516 : vector<2x256xf32>
    %520 = arith.addf %495, %519 : vector<2x256xf32>
    %c47 = arith.constant 47 : index
    %521 = memref.load %arg2[%c47] : memref<162xf32, #tpu.memory_space<smem>>
    %522 = vector.broadcast %521 : f32 to vector<2x256xf32>
    %523 = arith.mulf %522, %516 : vector<2x256xf32>
    %524 = arith.addf %499, %523 : vector<2x256xf32>
    %c74 = arith.constant 74 : index
    %525 = memref.load %arg2[%c74] : memref<162xf32, #tpu.memory_space<smem>>
    %526 = vector.broadcast %525 : f32 to vector<2x256xf32>
    %527 = arith.mulf %526, %516 : vector<2x256xf32>
    %528 = arith.addf %503, %527 : vector<2x256xf32>
    %c101 = arith.constant 101 : index
    %529 = memref.load %arg2[%c101] : memref<162xf32, #tpu.memory_space<smem>>
    %530 = vector.broadcast %529 : f32 to vector<2x256xf32>
    %531 = arith.mulf %530, %516 : vector<2x256xf32>
    %532 = arith.addf %507, %531 : vector<2x256xf32>
    %c128 = arith.constant 128 : index
    %533 = memref.load %arg2[%c128] : memref<162xf32, #tpu.memory_space<smem>>
    %534 = vector.broadcast %533 : f32 to vector<2x256xf32>
    %535 = arith.mulf %534, %516 : vector<2x256xf32>
    %536 = arith.addf %511, %535 : vector<2x256xf32>
    %c155 = arith.constant 155 : index
    %537 = memref.load %arg2[%c155] : memref<162xf32, #tpu.memory_space<smem>>
    %538 = vector.broadcast %537 : f32 to vector<2x256xf32>
    %539 = arith.mulf %538, %516 : vector<2x256xf32>
    %540 = arith.addf %515, %539 : vector<2x256xf32>
    %c240_i32_19 = arith.constant 240 : i32
    %541 = tpu.dynamic_rotate %466 by %c240_i32_19 dim 1 : vector<2x256xf32>, i32 -> vector<2x256xf32>
    %c21 = arith.constant 21 : index
    %542 = memref.load %arg2[%c21] : memref<162xf32, #tpu.memory_space<smem>>
    %543 = vector.broadcast %542 : f32 to vector<2x256xf32>
    %544 = arith.mulf %543, %541 : vector<2x256xf32>
    %545 = arith.addf %520, %544 : vector<2x256xf32>
    %c48 = arith.constant 48 : index
    %546 = memref.load %arg2[%c48] : memref<162xf32, #tpu.memory_space<smem>>
    %547 = vector.broadcast %546 : f32 to vector<2x256xf32>
    %548 = arith.mulf %547, %541 : vector<2x256xf32>
    %549 = arith.addf %524, %548 : vector<2x256xf32>
    %c75 = arith.constant 75 : index
    %550 = memref.load %arg2[%c75] : memref<162xf32, #tpu.memory_space<smem>>
    %551 = vector.broadcast %550 : f32 to vector<2x256xf32>
    %552 = arith.mulf %551, %541 : vector<2x256xf32>
    %553 = arith.addf %528, %552 : vector<2x256xf32>
    %c102 = arith.constant 102 : index
    %554 = memref.load %arg2[%c102] : memref<162xf32, #tpu.memory_space<smem>>
    %555 = vector.broadcast %554 : f32 to vector<2x256xf32>
    %556 = arith.mulf %555, %541 : vector<2x256xf32>
    %557 = arith.addf %532, %556 : vector<2x256xf32>
    %c129 = arith.constant 129 : index
    %558 = memref.load %arg2[%c129] : memref<162xf32, #tpu.memory_space<smem>>
    %559 = vector.broadcast %558 : f32 to vector<2x256xf32>
    %560 = arith.mulf %559, %541 : vector<2x256xf32>
    %561 = arith.addf %536, %560 : vector<2x256xf32>
    %c156 = arith.constant 156 : index
    %562 = memref.load %arg2[%c156] : memref<162xf32, #tpu.memory_space<smem>>
    %563 = vector.broadcast %562 : f32 to vector<2x256xf32>
    %564 = arith.mulf %563, %541 : vector<2x256xf32>
    %565 = arith.addf %540, %564 : vector<2x256xf32>
    %c239_i32_20 = arith.constant 239 : i32
    %566 = tpu.dynamic_rotate %466 by %c239_i32_20 dim 1 : vector<2x256xf32>, i32 -> vector<2x256xf32>
    %c22 = arith.constant 22 : index
    %567 = memref.load %arg2[%c22] : memref<162xf32, #tpu.memory_space<smem>>
    %568 = vector.broadcast %567 : f32 to vector<2x256xf32>
    %569 = arith.mulf %568, %566 : vector<2x256xf32>
    %570 = arith.addf %545, %569 : vector<2x256xf32>
    %c49 = arith.constant 49 : index
    %571 = memref.load %arg2[%c49] : memref<162xf32, #tpu.memory_space<smem>>
    %572 = vector.broadcast %571 : f32 to vector<2x256xf32>
    %573 = arith.mulf %572, %566 : vector<2x256xf32>
    %574 = arith.addf %549, %573 : vector<2x256xf32>
    %c76 = arith.constant 76 : index
    %575 = memref.load %arg2[%c76] : memref<162xf32, #tpu.memory_space<smem>>
    %576 = vector.broadcast %575 : f32 to vector<2x256xf32>
    %577 = arith.mulf %576, %566 : vector<2x256xf32>
    %578 = arith.addf %553, %577 : vector<2x256xf32>
    %c103 = arith.constant 103 : index
    %579 = memref.load %arg2[%c103] : memref<162xf32, #tpu.memory_space<smem>>
    %580 = vector.broadcast %579 : f32 to vector<2x256xf32>
    %581 = arith.mulf %580, %566 : vector<2x256xf32>
    %582 = arith.addf %557, %581 : vector<2x256xf32>
    %c130 = arith.constant 130 : index
    %583 = memref.load %arg2[%c130] : memref<162xf32, #tpu.memory_space<smem>>
    %584 = vector.broadcast %583 : f32 to vector<2x256xf32>
    %585 = arith.mulf %584, %566 : vector<2x256xf32>
    %586 = arith.addf %561, %585 : vector<2x256xf32>
    %c157 = arith.constant 157 : index
    %587 = memref.load %arg2[%c157] : memref<162xf32, #tpu.memory_space<smem>>
    %588 = vector.broadcast %587 : f32 to vector<2x256xf32>
    %589 = arith.mulf %588, %566 : vector<2x256xf32>
    %590 = arith.addf %565, %589 : vector<2x256xf32>
    %c238_i32_21 = arith.constant 238 : i32
    %591 = tpu.dynamic_rotate %466 by %c238_i32_21 dim 1 : vector<2x256xf32>, i32 -> vector<2x256xf32>
    %c23 = arith.constant 23 : index
    %592 = memref.load %arg2[%c23] : memref<162xf32, #tpu.memory_space<smem>>
    %593 = vector.broadcast %592 : f32 to vector<2x256xf32>
    %594 = arith.mulf %593, %591 : vector<2x256xf32>
    %595 = arith.addf %570, %594 : vector<2x256xf32>
    %c50 = arith.constant 50 : index
    %596 = memref.load %arg2[%c50] : memref<162xf32, #tpu.memory_space<smem>>
    %597 = vector.broadcast %596 : f32 to vector<2x256xf32>
    %598 = arith.mulf %597, %591 : vector<2x256xf32>
    %599 = arith.addf %574, %598 : vector<2x256xf32>
    %c77 = arith.constant 77 : index
    %600 = memref.load %arg2[%c77] : memref<162xf32, #tpu.memory_space<smem>>
    %601 = vector.broadcast %600 : f32 to vector<2x256xf32>
    %602 = arith.mulf %601, %591 : vector<2x256xf32>
    %603 = arith.addf %578, %602 : vector<2x256xf32>
    %c104 = arith.constant 104 : index
    %604 = memref.load %arg2[%c104] : memref<162xf32, #tpu.memory_space<smem>>
    %605 = vector.broadcast %604 : f32 to vector<2x256xf32>
    %606 = arith.mulf %605, %591 : vector<2x256xf32>
    %607 = arith.addf %582, %606 : vector<2x256xf32>
    %c131 = arith.constant 131 : index
    %608 = memref.load %arg2[%c131] : memref<162xf32, #tpu.memory_space<smem>>
    %609 = vector.broadcast %608 : f32 to vector<2x256xf32>
    %610 = arith.mulf %609, %591 : vector<2x256xf32>
    %611 = arith.addf %586, %610 : vector<2x256xf32>
    %c158 = arith.constant 158 : index
    %612 = memref.load %arg2[%c158] : memref<162xf32, #tpu.memory_space<smem>>
    %613 = vector.broadcast %612 : f32 to vector<2x256xf32>
    %614 = arith.mulf %613, %591 : vector<2x256xf32>
    %615 = arith.addf %590, %614 : vector<2x256xf32>
    %c224_i32_22 = arith.constant 224 : i32
    %616 = tpu.dynamic_rotate %466 by %c224_i32_22 dim 1 : vector<2x256xf32>, i32 -> vector<2x256xf32>
    %c24 = arith.constant 24 : index
    %617 = memref.load %arg2[%c24] : memref<162xf32, #tpu.memory_space<smem>>
    %618 = vector.broadcast %617 : f32 to vector<2x256xf32>
    %619 = arith.mulf %618, %616 : vector<2x256xf32>
    %620 = arith.addf %595, %619 : vector<2x256xf32>
    %c51 = arith.constant 51 : index
    %621 = memref.load %arg2[%c51] : memref<162xf32, #tpu.memory_space<smem>>
    %622 = vector.broadcast %621 : f32 to vector<2x256xf32>
    %623 = arith.mulf %622, %616 : vector<2x256xf32>
    %624 = arith.addf %599, %623 : vector<2x256xf32>
    %c78 = arith.constant 78 : index
    %625 = memref.load %arg2[%c78] : memref<162xf32, #tpu.memory_space<smem>>
    %626 = vector.broadcast %625 : f32 to vector<2x256xf32>
    %627 = arith.mulf %626, %616 : vector<2x256xf32>
    %628 = arith.addf %603, %627 : vector<2x256xf32>
    %c105 = arith.constant 105 : index
    %629 = memref.load %arg2[%c105] : memref<162xf32, #tpu.memory_space<smem>>
    %630 = vector.broadcast %629 : f32 to vector<2x256xf32>
    %631 = arith.mulf %630, %616 : vector<2x256xf32>
    %632 = arith.addf %607, %631 : vector<2x256xf32>
    %c132 = arith.constant 132 : index
    %633 = memref.load %arg2[%c132] : memref<162xf32, #tpu.memory_space<smem>>
    %634 = vector.broadcast %633 : f32 to vector<2x256xf32>
    %635 = arith.mulf %634, %616 : vector<2x256xf32>
    %636 = arith.addf %611, %635 : vector<2x256xf32>
    %c159 = arith.constant 159 : index
    %637 = memref.load %arg2[%c159] : memref<162xf32, #tpu.memory_space<smem>>
    %638 = vector.broadcast %637 : f32 to vector<2x256xf32>
    %639 = arith.mulf %638, %616 : vector<2x256xf32>
    %640 = arith.addf %615, %639 : vector<2x256xf32>
    %c223_i32_23 = arith.constant 223 : i32
    %641 = tpu.dynamic_rotate %466 by %c223_i32_23 dim 1 : vector<2x256xf32>, i32 -> vector<2x256xf32>
    %c25 = arith.constant 25 : index
    %642 = memref.load %arg2[%c25] : memref<162xf32, #tpu.memory_space<smem>>
    %643 = vector.broadcast %642 : f32 to vector<2x256xf32>
    %644 = arith.mulf %643, %641 : vector<2x256xf32>
    %645 = arith.addf %620, %644 : vector<2x256xf32>
    %c52 = arith.constant 52 : index
    %646 = memref.load %arg2[%c52] : memref<162xf32, #tpu.memory_space<smem>>
    %647 = vector.broadcast %646 : f32 to vector<2x256xf32>
    %648 = arith.mulf %647, %641 : vector<2x256xf32>
    %649 = arith.addf %624, %648 : vector<2x256xf32>
    %c79 = arith.constant 79 : index
    %650 = memref.load %arg2[%c79] : memref<162xf32, #tpu.memory_space<smem>>
    %651 = vector.broadcast %650 : f32 to vector<2x256xf32>
    %652 = arith.mulf %651, %641 : vector<2x256xf32>
    %653 = arith.addf %628, %652 : vector<2x256xf32>
    %c106 = arith.constant 106 : index
    %654 = memref.load %arg2[%c106] : memref<162xf32, #tpu.memory_space<smem>>
    %655 = vector.broadcast %654 : f32 to vector<2x256xf32>
    %656 = arith.mulf %655, %641 : vector<2x256xf32>
    %657 = arith.addf %632, %656 : vector<2x256xf32>
    %c133 = arith.constant 133 : index
    %658 = memref.load %arg2[%c133] : memref<162xf32, #tpu.memory_space<smem>>
    %659 = vector.broadcast %658 : f32 to vector<2x256xf32>
    %660 = arith.mulf %659, %641 : vector<2x256xf32>
    %661 = arith.addf %636, %660 : vector<2x256xf32>
    %c160 = arith.constant 160 : index
    %662 = memref.load %arg2[%c160] : memref<162xf32, #tpu.memory_space<smem>>
    %663 = vector.broadcast %662 : f32 to vector<2x256xf32>
    %664 = arith.mulf %663, %641 : vector<2x256xf32>
    %665 = arith.addf %640, %664 : vector<2x256xf32>
    %c222_i32_24 = arith.constant 222 : i32
    %666 = tpu.dynamic_rotate %466 by %c222_i32_24 dim 1 : vector<2x256xf32>, i32 -> vector<2x256xf32>
    %c26 = arith.constant 26 : index
    %667 = memref.load %arg2[%c26] : memref<162xf32, #tpu.memory_space<smem>>
    %668 = vector.broadcast %667 : f32 to vector<2x256xf32>
    %669 = arith.mulf %668, %666 : vector<2x256xf32>
    %670 = arith.addf %645, %669 : vector<2x256xf32>
    %c53 = arith.constant 53 : index
    %671 = memref.load %arg2[%c53] : memref<162xf32, #tpu.memory_space<smem>>
    %672 = vector.broadcast %671 : f32 to vector<2x256xf32>
    %673 = arith.mulf %672, %666 : vector<2x256xf32>
    %674 = arith.addf %649, %673 : vector<2x256xf32>
    %c80 = arith.constant 80 : index
    %675 = memref.load %arg2[%c80] : memref<162xf32, #tpu.memory_space<smem>>
    %676 = vector.broadcast %675 : f32 to vector<2x256xf32>
    %677 = arith.mulf %676, %666 : vector<2x256xf32>
    %678 = arith.addf %653, %677 : vector<2x256xf32>
    %c107 = arith.constant 107 : index
    %679 = memref.load %arg2[%c107] : memref<162xf32, #tpu.memory_space<smem>>
    %680 = vector.broadcast %679 : f32 to vector<2x256xf32>
    %681 = arith.mulf %680, %666 : vector<2x256xf32>
    %682 = arith.addf %657, %681 : vector<2x256xf32>
    %c134 = arith.constant 134 : index
    %683 = memref.load %arg2[%c134] : memref<162xf32, #tpu.memory_space<smem>>
    %684 = vector.broadcast %683 : f32 to vector<2x256xf32>
    %685 = arith.mulf %684, %666 : vector<2x256xf32>
    %686 = arith.addf %661, %685 : vector<2x256xf32>
    %c161 = arith.constant 161 : index
    %687 = memref.load %arg2[%c161] : memref<162xf32, #tpu.memory_space<smem>>
    %688 = vector.broadcast %687 : f32 to vector<2x256xf32>
    %689 = arith.mulf %688, %666 : vector<2x256xf32>
    %690 = arith.addf %665, %689 : vector<2x256xf32>
    %691 = vector.shape_cast %670 : vector<2x256xf32> to vector<2x1x256xf32>
    %692 = vector.shape_cast %674 : vector<2x256xf32> to vector<2x1x256xf32>
    %693 = vector.shape_cast %678 : vector<2x256xf32> to vector<2x1x256xf32>
    %694 = vector.shape_cast %682 : vector<2x256xf32> to vector<2x1x256xf32>
    %695 = vector.shape_cast %686 : vector<2x256xf32> to vector<2x1x256xf32>
    %696 = vector.shape_cast %690 : vector<2x256xf32> to vector<2x1x256xf32>
    %697 = tpu.concatenate %691, %692, %693, %694, %695, %696 in 1 : vector<2x1x256xf32>, vector<2x1x256xf32>, vector<2x1x256xf32>, vector<2x1x256xf32>, vector<2x1x256xf32>, vector<2x1x256xf32> -> vector<2x6x256xf32>
    %c0_25 = arith.constant 0 : index
    %c0_26 = arith.constant 0 : index
    %c0_27 = arith.constant 0 : index
    %698 = vector.load %arg4[%c0_25, %c0_26, %c0_27] : memref<2x6x256xf32, #tpu.memory_space<vmem>>, vector<2x6x256xf32>
    tpu.vector_store %arg4[%c0_25, %c0_26, %c0_27], %697 {strides = array<i32>} : memref<2x6x256xf32, #tpu.memory_space<vmem>>, vector<2x6x256xf32>,
    return
  }
  func.func @transform_0(%arg0: i32) -> (i32, i32, i32) {
    %c0_i32 = arith.constant 0 : i32
    %c0_i32_0 = arith.constant 0 : i32
    %c0_i32_1 = arith.constant 0 : i32
    %c0_i32_2 = arith.constant 0 : i32
    return %c0_i32, %c0_i32_0, %c0_i32_1 : i32, i32, i32
  }
  func.func @transform_1(%arg0: i32) -> i32 {
    %c0_i32 = arith.constant 0 : i32
    %c0_i32_0 = arith.constant 0 : i32
    return %c0_i32 : i32
  }
  func.func @transform_2(%arg0: i32) -> i32 {
    %c0_i32 = arith.constant 0 : i32
    %c0_i32_0 = arith.constant 0 : i32
    return %c0_i32 : i32
  }
  func.func @transform_3(%arg0: i32) -> (i32, i32, i32) {
    %c0_i32 = arith.constant 0 : i32
    %c0_i32_0 = arith.constant 0 : i32
    %c0_i32_1 = arith.constant 0 : i32
    %c0_i32_2 = arith.constant 0 : i32
    return %c0_i32, %c0_i32_0, %c0_i32_1 : i32, i32, i32
  }
}

</mosaic_0001>

<bundles_post_ra>
// kernel: tpu_custom_call.1
= control target key start
LH: loop header
LB: loop body
LE: loop exit
PB: predicated region body
PF: predicated region fallthrough
CT: control target
= control target key end

     0   :  { %s3907_s0 = inlined_call_operand.vmem [shape: f32[2,3,256], index: 0, kind: input, shape index: {}]   ;;  %s3908_s1 = inlined_call_operand.vmem [shape: f32[162], index: 1, kind: input, shape index: {}]   ;;  %s3909_s2 = inlined_call_operand.vmem [shape: f32[6], index: 2, kind: input, shape index: {}]   ;;  %s3910_s3 = inlined_call_operand.vmem [shape: f32[2,6,256], index: 3, kind: output, shape index: {}]  }
   0x1   :  { %4020 = sst [smem:[#allocation65_spill]] %s3907_s0 }
   0x2   :  { %4021 = sst [smem:[#allocation66_spill]] %s3910_s3 }
   0x3   :  { %8 = vsyncpa [#allocation3], 0  ;;  %s18_s14 = sshll.u32 %s3908_s1, 4  ;;  %s19_s14 = int_to_ptr.vmem [resolvable:$true] %s18_s14 }
   0x4   :  { %9 = vsyncpa [#allocation5], 0  ;;  %s28_s17 = sshll.u32 %s3909_s2, 4  ;;  %s2571_s18 = scalar_lea.vmem %s19_s14, 32  ;;  %s29_s17 = int_to_ptr.vmem [resolvable:$true] %s28_s17 }
   0x5   :  { %p2572_p0 = scmp.ne.s32.totalorder %s19_s14, %s2571_s18  ;;  %p2576_p1 = scmp.lt.s32.totalorder %s19_s14, %s19_s14 }
   0x6   :  { %p2577_p2 = scmp.lt.s32.totalorder %s2571_s18, %s2571_s18 }
   0x8   :  { %p2578_p3 = por %p2577_p2, %p2576_p1 }
   0xa   :  { %p2579_p4 = pnand %p2578_p3, %p2572_p0 }
   0xc   :  { %2582 = shalt.err (!%p2579_p4)
}
   0xd   :  { %s2599_s19 = smov [#allocation2]   ;;  %s2583_s20 = scalar_lea.vmem %s29_s17, 16 }
   0xe   :  { %21 = dma.vmem_to_smem %s19_s14, 32, %s2599_s19, [#allocation3]  }
   0xf   :  { %p2584_p5 = scmp.ne.s32.totalorder %s29_s17, %s2583_s20  ;;  %p2588_p6 = scmp.lt.s32.totalorder %s29_s17, %s29_s17 }
  0x10   :  { %p2589_p7 = scmp.lt.s32.totalorder %s2583_s20, %s2583_s20 }
  0x12   :  { %p2590_p8 = por %p2589_p7, %p2588_p6 }
  0x14   :  { %p2591_p9 = pnand %p2590_p8, %p2584_p5 }
  0x16   :  { %2594 = shalt.err (!%p2591_p9)
}
  0x17   :  { %s2600_s1 = smov [#allocation4]  }
  0x18   :  { %31 = dma.vmem_to_smem %s29_s17, 16, %s2600_s1, [#allocation5]  }
  0x19   :  { %2595 = dma.done.wait [#allocation3], 32  }
  0x1a   :  { %2596 = vsyncadd [#allocation3], 4294967264 }
  0x1b   :  { %2597 = dma.done.wait [#allocation5], 16  }
  0x1c   :  { %2598 = vsyncadd [#allocation5], 4294967280 }
  0x1d   :  { %38 = sfence }
  0x1e   :  { %v91_v0 = vlaneseq  ;;  %v2639_v2 = vld [vmem:[%s3907_s0] sm:$0x77]  ;;  %v2644_v3 = vld [vmem:[%s3907_s0 + $0x8] sm:$0x77]  ;;  %vm107_vm0 = vcmask 1041409   ;;  %s2601_s24 = smov 126  }
  0x1f   :  { %s2602_s25 = smov 127   ;;  %s2603_s26 = smov 112   ;;  %vm2334_vm9 = vcmask 1040384   ;;  %vm2339_vm10 = vcmask 1041408   ;;  %vm2344_vm11 = vcmask 1042432   ;;  %vm2349_vm12 = vcmask 1043456  }
  0x20   :  { %v92_v1 = vshrl.u32 %v91_v0, 7  ;;  %s2604_s27 = smov 111   ;;  %s3917_s28 = smov 110   ;;  %v2846_v45 = vand.u32 127, %v91_v0  ;;  %vm2354_vm13 = vcmask 1044480  }
  0x21   :  { %s3915_s29 = smov 96   ;;  %s3913_s30 = smov 95  }
  0x22   :  { %v2646_v4 = vsub.s32 0, %v92_v1  ;;  %v2648_v5 = vsub.s32 4, %v92_v1  ;;  %v1564_v6 = vsub.s32 6, %v92_v1  ;;  %v1560_v7 = vsub.s32 2, %v92_v1  ;;  %s3911_s4 = smov 94   ;;  %s2712_s5 = sld [smem:[#allocation2 + $0x2]] }
  0x23   :  { %v836_v20 = vsub.s32 5, %v92_v1  ;;  %v832_v21 = vsub.s32 1, %v92_v1  ;;  %s2714_s6 = sld [smem:[#allocation2 + $0x1d]]  ;;  %s2716_s7 = sld [smem:[#allocation2 + $0x38]]  ;;  %vm197_vm1 = vcmp.lt.s32.totalorder %v2846_v45, 126  ;;  %vm118_vm2 = vcmp.lt.s32.totalorder %v2846_v45, 127 }
  0x24   :  { %v94_v8 = vrot.slane %v2639_v2, %v2646_v4  ;;  %v102_v9 = vrot.slane %v2644_v3, %v2646_v4  ;;  %v98_v10 = vrot.slane %v2639_v2, %v2648_v5  ;;  %v106_v11 = vrot.slane %v2644_v3, %v2648_v5  ;;  %s2718_s8 = sld [smem:[#allocation2 + $0x53]]  ;;  %s2720_s9 = sld [smem:[#allocation2 + $0x6e]] }
  0x25   :  { %v1565_v13 = vrot.slane %v2639_v2, %v1564_v6  ;;  %v1573_v14 = vrot.slane %v2644_v3, %v1564_v6  ;;  %v1561_v15 = vrot.slane %v2639_v2, %v1560_v7  ;;  %v1569_v18 = vrot.slane %v2644_v3, %v1560_v7  ;;  %s2722_s10 = sld [smem:[#allocation2 + $0x89]]  ;;  %s2728_s11 = sld [smem:[#allocation4]] }
  0x26   :  { %v108_v12 = vsel %vm107_vm0, %v102_v9, %v94_v8  ;;  %v109_v16 = vsel %vm107_vm0, %v106_v11, %v98_v10  ;;  %v837_v22 = vrot.slane %v2639_v2, %v836_v20  ;;  %v845_v23 = vrot.slane %v2644_v3, %v836_v20  ;;  %s2730_s12 = sld [smem:[#allocation4 + $0x1]]  ;;  %s2732_s13 = sld [smem:[#allocation4 + $0x2]] }
  0x27   :  { %193 = vrot.lane.b32.xlu1 %v108_v12, %s2601_s24  ;;  %112 = vrot.lane.b32.xlu0 %v108_v12, %s2602_s25  ;;  %v2666_v17 = vsel %vm107_vm0, %v1573_v14, %v1565_v13  ;;  %v2670_v19 = vsel %vm107_vm0, %v1569_v18, %v1561_v15  ;;  %v833_v24 = vrot.slane %v2639_v2, %v832_v21  ;;  %s2734_s14 = sld [smem:[#allocation4 + $0x3]]  ;;  %s2736_s15 = sld [smem:[#allocation4 + $0x4]]  ;;  %vm276_vm3 = vcmp.lt.s32.totalorder %v2846_v45, 112 }
  0x28   :  { %v841_v25 = vrot.slane %v2644_v3, %v832_v21  ;;  %v847_v26 = vsel %vm107_vm0, %v845_v23, %v837_v22  ;;  %4022 = sst [smem:[#allocation8_spill]] %s2712_s5  ;;  %s2738_s16 = sld [smem:[#allocation4 + $0x5]]  ;;  %v201_v28 = vstv %s2712_s5  ;;  %vm355_vm4 = vcmp.lt.s32.totalorder %v2846_v45, 111 }
  0x29   :  { %4023 = sst [smem:[#allocation9_spill]] %s2714_s6  ;;  %s2740_s17 = sld [smem:[#allocation2]]  ;;  %v213_v29 = vstv %s2714_s6  ;;  %v225_v30 = vstv %s2716_s7  ;;  %vm434_vm5 = vcmp.lt.s32.totalorder %v2846_v45, 110  ;;  %vm513_vm6 = vcmp.lt.s32.totalorder %v2846_v45, 96 }
  0x2a   :  { %v846_v27 = vsel %vm107_vm0, %v841_v25, %v833_v24  ;;  %4024 = sst [smem:[#allocation10_spill]] %s2716_s7  ;;  %s2742_s18 = sld [smem:[#allocation2 + $0x1b]]  ;;  %v237_v31 = vstv %s2718_s8  ;;  %v249_v32 = vstv %s2720_s9  ;;  %vm592_vm7 = vcmp.lt.s32.totalorder %v2846_v45, 95 }
  0x2b   :  { %195 = vrot.lane.b32.xlu1 %v109_v16, %s2601_s24  ;;  %114 = vrot.lane.b32.xlu0 %v109_v16, %s2602_s25  ;;  %4025 = sst [smem:[#allocation11_spill]] %s2718_s8  ;;  %s2748_s19 = sld [smem:[#allocation2 + $0x36]]  ;;  %v261_v33 = vstv %s2722_s10  ;;  %v42_v41 = vstv %s2728_s11  ;;  %vm671_vm8 = vcmp.lt.s32.totalorder %v2846_v45, 94 }
  0x2c   :  { %4026 = sst [smem:[#allocation12_spill]] %s2720_s9  ;;  %s2750_s20 = sld [smem:[#allocation2 + $0x51]]  ;;  %v44_v42 = vstv %s2730_s12  ;;  %v46_v46 = vstv %s2732_s13 }
  0x2d   :  { %4027 = sst [smem:[#allocation13_spill]] %s2722_s10  ;;  %s2752_s1 = sld [smem:[#allocation2 + $0x6c]]  ;;  %v48_v49 = vstv %s2734_s14  ;;  %v50_v50 = vstv %s2736_s15 }
  0x2e   :  { %s2754_s2 = sld [smem:[#allocation2 + $0x87]]  ;;  %s2756_s21 = sld [smem:[#allocation2 + $0x1]]  ;;  %v52_v51 = vstv %s2738_s16 }
  0x2f   :  { %274 = vrot.lane.b32.xlu1 %v109_v16, %s2603_s26  ;;  %272 = vrot.lane.b32.xlu0 %v108_v12, %s2603_s26  ;;  %s2758_s22 = sld [smem:[#allocation2 + $0x1c]]  ;;  %s2760_s23 = sld [smem:[#allocation2 + $0x37]]  ;;  %v54_v34 = vstv %s2740_s17 }
  0x30   :  { %s2780_s3 = sld [smem:[#allocation2 + $0x6f]]  ;;  %s2782_s0 = sld [smem:[#allocation2 + $0x8a]]  ;;  %v60_v35 = vstv %s2742_s18  ;;  %v56_v37 = vmul.f32 %v54_v34, %v2644_v3  ;;  %v55_v56 = vmul.f32 %v54_v34, %v2639_v2 }
  0x31   :  { %s2815_s5 = sld [smem:[#allocation2 + $0x56]]  ;;  %v66_v36 = vstv %s2748_s19  ;;  %s2821_s7 = sld [smem:[#allocation2 + $0x71]]  ;;  %v62_v38 = vmul.f32 %v60_v35, %v2644_v3  ;;  %v61_v58 = vmul.f32 %v60_v35, %v2639_v2 }
  0x32   :  { %s2823_s6 = sld [smem:[#allocation2 + $0x8c]]  ;;  %v68_v39 = vmul.f32 %v66_v36, %v2644_v3  ;;  %v72_v40 = vstv %s2750_s20  ;;  %s2831_s10 = sld [smem:[#allocation2 + $0x21]]  ;;  %v2863_v53 = vadd.f32 %v56_v37, %v42_v41  ;;  %v67_v59 = vmul.f32 %v66_v36, %v2639_v2 }
  0x33   :  { %353 = vrot.lane.b32.xlu1 %v109_v16, %s2604_s27  ;;  %351 = vrot.lane.b32.xlu0 %v108_v12, %s2604_s27  ;;  %v74_v43 = vmul.f32 %v72_v40, %v2644_v3  ;;  %v78_v44 = vstv %s2752_s1  ;;  %s2837_s17 = sld [smem:[#allocation2 + $0x3c]]  ;;  %s2839_s18 = sld [smem:[#allocation2 + $0x57]]  ;;  %v2865_v54 = vadd.f32 %v62_v38, %v44_v42  ;;  %v73_v60 = vmul.f32 %v72_v40, %v2639_v2 }
  0x34   :  { %4028 = sst [smem:[#allocation14_spill]] %s2756_s21  ;;  %s4057_s19 = smov 95   ;;  %v80_v47 = vmul.f32 %v78_v44, %v2644_v3  ;;  %v84_v48 = vstv %s2754_s2  ;;  %v2867_v55 = vadd.f32 %v68_v39, %v46_v46  ;;  %v122_v62 = vstv %s2756_s21 }
  0x35   :  { %4029 = sst [smem:[#allocation15_spill]] %s2758_s22  ;;  %s2851_s11 = sld [smem:[#allocation2 + $0x72]]  ;;  %v86_v52 = vmul.f32 %v84_v48, %v2644_v3  ;;  %v2874_v57 = vadd.f32 %v74_v43, %v48_v49  ;;  %v79_v63 = vmul.f32 %v78_v44, %v2639_v2  ;;  %v85_v0 = vmul.f32 %v84_v48, %v2639_v2 }
  0x36   :  { %4030 = sst [smem:[#allocation16_spill]] %s2760_s23  ;;  %s2853_s12 = sld [smem:[#allocation2 + $0x8d]]  ;;  %v2887_v61 = vadd.f32 %v80_v47, %v50_v50  ;;  %v134_v6 = vstv %s2758_s22  ;;  %v146_v7 = vstv %s2760_s23  ;;  %v2907_v11 = vadd.f32 %v55_v56, %v42_v41 }
  0x37   :  { %432 = vrot.lane.b32.xlu1 %v109_v16, %s3917_s28  ;;  %430 = vrot.lane.b32.xlu0 %v108_v12, %s3917_s28  ;;  %4038 = sst [smem:[#allocation24_spill]] %s2780_s3  ;;  %s2798_s3 = sld [smem:[#allocation2 + $0x8b]]  ;;  %v2896_v1 = vadd.f32 %v86_v52, %v52_v51  ;;  %v2914_v13 = vadd.f32 %v61_v58, %v44_v42  ;;  %v2916_v14 = vadd.f32 %v67_v59, %v46_v46 }
  0x38   :  { %4039 = sst [smem:[#allocation25_spill]] %s2782_s0  ;;  %s2796_s0 = sld [smem:[#allocation2 + $0x70]]  ;;  %v2918_v15 = vadd.f32 %v73_v60, %v48_v49  ;;  %v2927_v18 = vadd.f32 %v85_v0, %v52_v51 }
  0x39   :  { %4051 = sst [smem:[#allocation35_spill]] %s2815_s5  ;;  %s2859_s20 = sld [smem:[#allocation2 + $0x7]] }
  0x3a   :  { %4052 = sst [smem:[#allocation36_spill]] %s2823_s6  ;;  %s2861_s1 = sld [smem:[#allocation2 + $0x22]] }
  0x3b   :  { %511 = vrot.lane.b32.xlu1 %v109_v16, %s3915_s29  ;;  %509 = vrot.lane.b32.xlu0 %v108_v12, %s3915_s29  ;;  %4054 = sst [smem:[#allocation38_spill]] %s2831_s10  ;;  %s2870_s13 = sld [smem:[#allocation2 + $0x3d]] }
  0x3c   :  { %4055 = sst [smem:[#allocation39_spill]] %s2837_s17  ;;  %s2872_s14 = sld [smem:[#allocation2 + $0x58]] }
  0x3d   :  { %4046 = sst [smem:[#allocation31_spill]] %s2798_s3  ;;  %s2879_s15 = sld [smem:[#allocation2 + $0x73]] }
  0x3e   :  { %4045 = sst [smem:[#allocation30_spill]] %s2796_s0  ;;  %s2813_s0 = sld [smem:[#allocation2 + $0x3b]] }
  0x3f   :  { %590 = vrot.lane.b32.xlu1 %v109_v16, %s3913_s30  ;;  %588 = vrot.lane.b32.xlu0 %v108_v12, %s3913_s30  ;;  %4056 = sst [smem:[#allocation40_spill]] %s2839_s18  ;;  %s2881_s16 = sld [smem:[#allocation2 + $0x8e]] }
  0x40   :  { %4058 = sst [smem:[#allocation41_spill]] %s2853_s12  ;;  %s4065_s2 = smov 94  }
  0x41   :  { %4059 = sst [smem:[#allocation42_spill]] %s2859_s20  ;;  %s2892_s8 = sld [smem:[#allocation2 + $0x8]] }
  0x42   :  { %4060 = sst [smem:[#allocation43_spill]] %s2861_s1  ;;  %s2912_s20 = sld [smem:[#allocation2 + $0x5a]] }
  0x43   :  { %669 = vrot.lane.b32.xlu1 %v109_v16, %s3911_s4  ;;  %667 = vrot.lane.b32.xlu0 %v108_v12, %s3911_s4  ;;  %4061 = sst [smem:[#allocation44_spill]] %s2870_s13  ;;  %s2933_s22 = sld [smem:[#allocation2 + $0x75]] }
  0x44   :  { %4050 = sst [smem:[#allocation34_spill]] %s2813_s0  ;;  %s2955_s23 = sld [smem:[#allocation2 + $0x40]] }
  0x45   :  { %4062 = sst [smem:[#allocation45_spill]] %s2872_s14  ;;  %s2903_s14 = sld [smem:[#allocation2 + $0x24]] }
  0x46   :  { %4063 = sst [smem:[#allocation46_spill]] %s2879_s15  ;;  %s2894_s15 = sld [smem:[#allocation2 + $0x23]] }
  0x47   :  { %852 = vrot.lane.b32.xlu1 %v847_v26, %s2602_s25  ;;  %850 = vrot.lane.b32.xlu0 %v846_v27, %s2602_s25  ;;  %4064 = sst [smem:[#allocation47_spill]] %s2881_s16  ;;  %s2901_s16 = sld [smem:[#allocation2 + $0x9]] }
  0x48   :  { %4068 = sst [smem:[#allocation48_spill]] %s2892_s8  ;;  %s2947_s21 = sld [smem:[#allocation2 + $0xa]]  ;;  %v789_v51 = vstv %s2912_s20 }
  0x49   :  { %s2949_s8 = sld [smem:[#allocation2 + $0x25]]  ;;  %s2971_s1 = sld [smem:[#allocation2 + $0xb]]  ;;  %v803_v49 = vstv %s2933_s22  ;;  %v3008_v56 = vmul.f32 %v789_v51, %v2639_v2  ;;  %v3031_v42 = vmul.f32 %v789_v51, %v2644_v3 }
  0x4a   :  { %4081 = sst [smem:[#allocation53_spill]] %s2955_s23  ;;  %s2973_s13 = sld [smem:[#allocation2 + $0x26]]  ;;  %v3034_v48 = vmul.f32 %v803_v49, %v2639_v2 }
  0x4b   :  { %930 = vrot.lane.b32.xlu1 %v847_v26, %s2601_s24  ;;  %928 = vrot.lane.b32.xlu0 %v846_v27, %s2601_s24  ;;  %v761_v47 = vstv %s2903_s14  ;;  %s2981_s6 = sld [smem:[#allocation2 + $0x5c]]  ;;  %s2987_s18 = sld [smem:[#allocation2 + $0x77]] }
  0x4c   :  { %4069 = sst [smem:[#allocation49_spill]] %s2894_s15  ;;  %s2910_s15 = sld [smem:[#allocation2 + $0x3f]]  ;;  %v2996_v0 = vmul.f32 %v761_v47, %v2639_v2  ;;  %v3021_v43 = vmul.f32 %v761_v47, %v2644_v3 }
  0x4d   :  { %v747_v46 = vstv %s2901_s16  ;;  %s2989_s17 = sld [smem:[#allocation2 + $0x92]]  ;;  %s2999_s20 = sld [smem:[#allocation2 + $0xc]] }
  0x4e   :  { %s3011_s5 = sld [smem:[#allocation2 + $0x42]]  ;;  %s3013_s0 = sld [smem:[#allocation2 + $0x5d]]  ;;  %v3018_v44 = vmul.f32 %v747_v46, %v2644_v3 }
  0x4f   :  { %1008 = vrot.lane.b32.xlu1 %v847_v26, %s2603_s26  ;;  %1006 = vrot.lane.b32.xlu0 %v846_v27, %s2603_s26  ;;  %4088 = sst [smem:[#allocation55_spill]] %s2971_s1  ;;  %s3023_s22 = sld [smem:[#allocation2 + $0x78]] }
  0x50   :  { %4089 = sst [smem:[#allocation56_spill]] %s2973_s13  ;;  %s3025_s10 = sld [smem:[#allocation2 + $0x93]] }
  0x51   :  { %4091 = sst [smem:[#allocation57_spill]] %s2981_s6  ;;  %s3041_s14 = sld [smem:[#allocation2 + $0x28]] }
  0x52   :  { %4094 = sst [smem:[#allocation58_spill]] %s2987_s18  ;;  %s3053_s16 = sld [smem:[#allocation2 + $0x43]] }
  0x53   :  { %1086 = vrot.lane.b32.xlu1 %v847_v26, %s2604_s27  ;;  %1084 = vrot.lane.b32.xlu0 %v846_v27, %s2604_s27  ;;  %4095 = sst [smem:[#allocation59_spill]] %s2999_s20  ;;  %s3061_s3 = sld [smem:[#allocation2 + $0x79]] }
  0x54   :  { %s3063_s12 = sld [smem:[#allocation2 + $0x94]]  ;;  %s3093_s23 = sld [smem:[#allocation2 + $0x7a]] }
  0x55   :  { %s3101_s1 = sld [smem:[#allocation2 + $0xf]]  ;;  %s3103_s13 = sld [smem:[#allocation2 + $0x2a]] }
  0x56   :  { %s4119_s6 = sld [smem:[#allocation25_spill]] }
  0x57   :  { %1164 = vrot.lane.b32.xlu1 %v847_v26, %s3917_s28  ;;  %1162 = vrot.lane.b32.xlu0 %v846_v27, %s3917_s28  ;;  %s2778_s28 = sld [smem:[#allocation2 + $0x54]] }
  0x5a   :  { %4098 = sst [smem:[#allocation61_spill]] %s3063_s12  ;;  %s4141_s12 = sld [smem:[#allocation31_spill]] }
  0x5b   :  { %1242 = vrot.lane.b32.xlu1 %v847_v26, %s3915_s29  ;;  %1240 = vrot.lane.b32.xlu0 %v846_v27, %s3915_s29  ;;  %s2776_s29 = sld [smem:[#allocation2 + $0x39]]  ;;  %4101 = sst [smem:[#allocation64_spill]] %s3103_s13 }
  0x5d   :  { %4037 = sst [smem:[#allocation23_spill]] %s2778_s28  ;;  %s2794_s28 = sld [smem:[#allocation2 + $0x55]] }
  0x5e   :  { %s4116_s13 = sld [smem:[#allocation23_spill]] }
  0x5f   :  { %1320 = vrot.lane.b32.xlu1 %v847_v26, %s3913_s30  ;;  %1318 = vrot.lane.b32.xlu0 %v846_v27, %s3913_s30  ;;  %s2774_s30 = sld [smem:[#allocation2 + $0x1e]] }
  0x61   :  { %4036 = sst [smem:[#allocation22_spill]] %s2776_s29  ;;  %s2792_s29 = sld [smem:[#allocation2 + $0x3a]] }
  0x63   :  { %1398 = vrot.lane.b32.xlu1 %v847_v26, %s3911_s4  ;;  %1396 = vrot.lane.b32.xlu0 %v846_v27, %s3911_s4  ;;  %s2772_s4 = sld [smem:[#allocation2 + $0x3]]  ;;  %4044 = sst [smem:[#allocation29_spill]] %s2794_s28 }
  0x64   :  { %s2957_s28 = sld [smem:[#allocation2 + $0x5b]] }
  0x65   :  { %4035 = sst [smem:[#allocation21_spill]] %s2774_s30  ;;  %v292_v16 = vstv %s2774_s30  ;;  %s2939_s30 = sld [smem:[#allocation2 + $0x8f]] }
  0x67   :  { %1580 = vrot.lane.b32.xlu1 %v2666_v17, %s2602_s25  ;;  %1578 = vrot.lane.b32.xlu0 %v2670_v19, %s2602_s25  ;;  %s2768_s25 = sld [smem:[#allocation2 + $0x6d]]  ;;  %4043 = sst [smem:[#allocation28_spill]] %s2792_s29 }
  0x68   :  { %s2963_s29 = sld [smem:[#allocation2 + $0x76]]  ;;  %s4129_s20 = sld [smem:[#allocation28_spill]] }
  0x69   :  { %4034 = sst [smem:[#allocation20_spill]] %s2772_s4 }
  0x6a   :  { %s2788_s4 = sld [smem:[#allocation2 + $0x4]] }
  0x6b   :  { %1658 = vrot.lane.b32.xlu1 %v2666_v17, %s2601_s24  ;;  %1656 = vrot.lane.b32.xlu0 %v2670_v19, %s2601_s24  ;;  %s2762_s24 = sld [smem:[#allocation2 + $0x52]]  ;;  %s4067_s9 = sld [smem:[#allocation20_spill]] }
  0x6c   :  { %4080 = sst [smem:[#allocation52_spill]] %s2939_s30 }
  0x6d   :  { %4032 = sst [smem:[#allocation18_spill]] %s2768_s25  ;;  %v170_v9 = vstv %s2768_s25  ;;  %s3055_s25 = sld [smem:[#allocation2 + $0x5e]] }
  0x6e   :  { %4084 = sst [smem:[#allocation54_spill]] %s2963_s29  ;;  %s3077_s30 = sld [smem:[#allocation2 + $0x44]] }
  0x6f   :  { %1736 = vrot.lane.b32.xlu1 %v2666_v17, %s2603_s26  ;;  %1734 = vrot.lane.b32.xlu0 %v2670_v19, %s2603_s26  ;;  %s2770_s26 = sld [smem:[#allocation2 + $0x88]]  ;;  %s3095_s29 = sld [smem:[#allocation2 + $0x95]] }
  0x70   :  { %4041 = sst [smem:[#allocation26_spill]] %s2788_s4  ;;  %s2805_s4 = sld [smem:[#allocation2 + $0x20]] }
  0x71   :  { %4031 = sst [smem:[#allocation17_spill]] %s2762_s24  ;;  %v158_v8 = vstv %s2762_s24  ;;  %v280_v12 = vstv %s4067_s9  ;;  %s2931_s24 = sld [smem:[#allocation2 + $0x74]] }
  0x72   :  { %s2923_s9 = sld [smem:[#allocation2 + $0x59]] }
  0x73   :  { %1814 = vrot.lane.b32.xlu1 %v2666_v17, %s2604_s27  ;;  %1812 = vrot.lane.b32.xlu0 %v2670_v19, %s2604_s27  ;;  %s4040_s27 = smov 110  }
  0x75   :  { %4033 = sst [smem:[#allocation19_spill]] %s2770_s26  ;;  %s2790_s26 = sld [smem:[#allocation2 + $0x1f]] }
  0x76   :  { %4048 = sst [smem:[#allocation33_spill]] %s2805_s4 }
  0x77   :  { %1892 = vrot.lane.b32.xlu1 %v2666_v17, %s4040_s27  ;;  %1890 = vrot.lane.b32.xlu0 %v2670_v19, %s4040_s27  ;;  %s2803_s27 = sld [smem:[#allocation2 + $0x5]]  ;;  %4079 = sst [smem:[#allocation51_spill]] %s2931_s24 }
  0x78   :  { %4078 = sst [smem:[#allocation50_spill]] %s2923_s9  ;;  %s2941_s9 = sld [smem:[#allocation2 + $0x90]] }
  0x79   :  { %s2965_s4 = sld [smem:[#allocation2 + $0x91]]  ;;  %s3087_s24 = sld [smem:[#allocation2 + $0x5f]] }
  0x7b   :  { %4042 = sst [smem:[#allocation27_spill]] %s2790_s26  ;;  %s4049_s26 = smov 96  }
  0x7c   :  { %1970 = vrot.lane.b32.xlu1 %v2666_v17, %s4049_s26  ;;  %1968 = vrot.lane.b32.xlu0 %v2670_v19, %s4049_s26  ;;  %s2829_s26 = sld [smem:[#allocation2 + $0x6]]  ;;  %s4128_s18 = sld [smem:[#allocation27_spill]] }
  0x7d   :  { %4047 = sst [smem:[#allocation32_spill]] %s2803_s27  ;;  %s3069_s27 = sld [smem:[#allocation2 + $0xe]] }
  0x7e   :  { %v817_v52 = vstv %s2941_s9  ;;  %s3039_s9 = sld [smem:[#allocation2 + $0xd]] }
  0x7f   :  { %v3048_v51 = vmul.f32 %v817_v52, %v2639_v2 }
  0x80   :  { %2048 = vrot.lane.b32.xlu1 %v2666_v17, %s4057_s19  ;;  %2046 = vrot.lane.b32.xlu0 %v2670_v19, %s4057_s19  ;;  %s4066_s19 = sld [smem:[#allocation19_spill]] }
  0x82   :  { %4053 = sst [smem:[#allocation37_spill]] %s2829_s26  ;;  %s2979_s26 = sld [smem:[#allocation2 + $0x41]] }
  0x83   :  { %4099 = sst [smem:[#allocation62_spill]] %s3069_s27 }
  0x84   :  { %2126 = vrot.lane.b32.xlu1 %v2666_v17, %s4065_s2  ;;  %2124 = vrot.lane.b32.xlu0 %v2670_v19, %s4065_s2  ;;  %s4070_s2 = sld [smem:[#allocation22_spill]]  ;;  %v2925_v17 = vadd.f32 %v79_v63, %v50_v50  ;;  %v775_v50 = vstv %s2910_s15  ;;  %v2993_v63 = vmul.f32 %v747_v46, %v2639_v2  ;;  %s3001_s15 = sld [smem:[#allocation2 + $0x27]]  ;;  %v3037_v46 = vmul.f32 %v803_v49, %v2644_v3 }
  0x85   :  { %v3005_v59 = vmul.f32 %v775_v50, %v2639_v2  ;;  %v3028_v58 = vmul.f32 %v775_v50, %v2644_v3  ;;  %v3051_v49 = vmul.f32 %v817_v52, %v2644_v3  ;;  %s4131_s27 = sld [smem:[#allocation30_spill]] }
  0x86   :  { %v182_v10 = vstv %s4066_s19  ;;  %s2921_s19 = sld [smem:[#allocation2 + $0x3e]] }
  0x8a   :  { %4096 = sst [smem:[#allocation60_spill]] %s3001_s15  ;;  %s4130_s15 = sld [smem:[#allocation29_spill]] }
  0x8c   :  { %4076 = sst [smem:[#allocation22_spill]] %s2921_s19  ;;  %s3071_s19 = sld [smem:[#allocation2 + $0x29]] }
  0x92   :  { %4100 = sst [smem:[#allocation63_spill]] %s3071_s19  ;;  %s4117_s19 = sld [smem:[#allocation24_spill]] }
  0x99   :  { %v194_v3 = vpop.permute.xlu1 %193  ;;  %v113_v38 = vpop.permute.xlu0 %112 }
  0x9d   :  { %v196_v41 = vpop.permute.xlu1 %195  ;;  %v115_v36 = vpop.permute.xlu0 %114 }
  0x9e   :  { %v198_v37 = vsel %vm197_vm1, %v194_v3, %v196_v41  ;;  %v199_v47 = vsel %vm197_vm1, %v196_v41, %v194_v3  ;;  %v119_v40 = vsel %vm118_vm2, %v113_v38, %v115_v36 }
  0x9f   :  { %v202_v35 = vmul.f32 %v201_v28, %v198_v37  ;;  %v203_v52 = vmul.f32 %v201_v28, %v199_v47  ;;  %v214_v39 = vmul.f32 %v213_v29, %v198_v37  ;;  %v215_v2 = vmul.f32 %v213_v29, %v199_v47 }
  0xa0   :  { %v226_v41 = vmul.f32 %v225_v30, %v198_v37  ;;  %v227_v3 = vmul.f32 %v225_v30, %v199_v47  ;;  %v238_v50 = vmul.f32 %v237_v31, %v198_v37  ;;  %v239_v60 = vmul.f32 %v237_v31, %v199_v47 }
  0xa1   :  { %v3140_v34 = vcombine.low %v202_v35, %v203_v52  ;;  %v120_v28 = vsel %vm118_vm2, %v115_v36, %v113_v38  ;;  %v218_v26 = vcombine.low %v214_v39, %v215_v2  ;;  %v250_v31 = vmul.f32 %v249_v32, %v198_v37 }
  0xa2   :  { %v3149_v23 = vcombine.low %v226_v41, %v227_v3  ;;  %v251_v35 = vmul.f32 %v249_v32, %v199_v47  ;;  %v123_v36 = vmul.f32 %v122_v62, %v119_v40  ;;  %v3157_v38 = vcombine.low %v238_v50, %v239_v60 }
  0xa3   :  { %v262_v39 = vmul.f32 %v261_v33, %v198_v37  ;;  %v263_v2 = vmul.f32 %v261_v33, %v199_v47  ;;  %v124_v52 = vmul.f32 %v122_v62, %v120_v28  ;;  %v207_v41 = vrot.slane %v3140_v34, 1 }
  0xa4   :  { %v135_v3 = vmul.f32 %v134_v6, %v119_v40  ;;  %v136_v32 = vmul.f32 %v134_v6, %v120_v28  ;;  %v147_v24 = vmul.f32 %v146_v7, %v119_v40  ;;  %v219_v60 = vrot.slane %v218_v26, 1 }
  0xa5   :  { %v127_v50 = vcombine.low %v123_v36, %v124_v52  ;;  %v148_v30 = vmul.f32 %v146_v7, %v120_v28  ;;  %v159_v37 = vmul.f32 %v158_v8, %v119_v40  ;;  %v160_v62 = vmul.f32 %v158_v8, %v120_v28 }
  0xa6   :  { %v139_v33 = vcombine.low %v135_v3, %v136_v32  ;;  %v171_v47 = vmul.f32 %v170_v9, %v119_v40  ;;  %v172_v25 = vmul.f32 %v170_v9, %v120_v28  ;;  %v254_v29 = vcombine.low %v250_v31, %v251_v35 }
  0xa7   :  { %v128_v6 = vrot.slane %v127_v50, 1  ;;  %v151_v27 = vcombine.low %v147_v24, %v148_v30  ;;  %v183_v22 = vmul.f32 %v182_v10, %v119_v40  ;;  %v266_v21 = vcombine.low %v262_v39, %v263_v2 }
  0xa8   :  { %v140_v20 = vrot.slane %v139_v33, 1  ;;  %v163_v36 = vcombine.low %v159_v37, %v160_v62  ;;  %v175_v52 = vcombine.low %v171_v47, %v172_v25  ;;  %v231_v7 = vrot.slane %v3149_v23, 1 }
  0xa9   :  { %v132_v19 = vadd.f32 %v128_v6, %v2863_v53  ;;  %v152_v3 = vrot.slane %v151_v27, 1  ;;  %v184_v8 = vmul.f32 %v182_v10, %v120_v28  ;;  %v131_v32 = vadd.f32 %v127_v50, %v2907_v11  ;;  %v275_v11 = vpop.permute.xlu1 %274 }
  0xaa   :  { %v144_v9 = vadd.f32 %v140_v20, %v2865_v54  ;;  %v164_v31 = vrot.slane %v163_v36, 1  ;;  %v176_v35 = vrot.slane %v175_v52, 1  ;;  %v243_v24 = vrot.slane %v3157_v38, 1  ;;  %v273_v54 = vpop.permute.xlu0 %272 }
  0xab   :  { %v143_v40 = vadd.f32 %v139_v33, %v2914_v13  ;;  %v156_v30 = vadd.f32 %v152_v3, %v2867_v55  ;;  %v187_v25 = vcombine.low %v183_v22, %v184_v8  ;;  %v255_v39 = vrot.slane %v254_v29, 1 }
  0xac   :  { %v267_v53 = vrot.slane %v266_v21, 1  ;;  %v155_v2 = vadd.f32 %v151_v27, %v2916_v14  ;;  %v168_v10 = vadd.f32 %v164_v31, %v2874_v57  ;;  %v167_v20 = vadd.f32 %v163_v36, %v2918_v15 }
  0xad   :  { %v179_v13 = vadd.f32 %v175_v52, %v2925_v17  ;;  %v188_v55 = vrot.slane %v187_v25, 1  ;;  %v211_v22 = vadd.f32 %v207_v41, %v132_v19  ;;  %v180_v28 = vadd.f32 %v176_v35, %v2887_v61 }
  0xae   :  { %v191_v14 = vadd.f32 %v187_v25, %v2927_v18  ;;  %v223_v57 = vadd.f32 %v219_v60, %v144_v9  ;;  %v210_v27 = vadd.f32 %v3140_v34, %v131_v32  ;;  %v3202_v50 = vadd.f32 %v231_v7, %v156_v30 }
  0xaf   :  { %v3204_v15 = vadd.f32 %v243_v24, %v168_v10  ;;  %v222_v17 = vadd.f32 %v218_v26, %v143_v40  ;;  %v277_v19 = vsel %vm276_vm3, %v273_v54, %v275_v11  ;;  %v278_v61 = vsel %vm276_vm3, %v275_v11, %v273_v54  ;;  %v354_v40 = vpop.permute.xlu1 %353 }
  0xb0   :  { %v281_v41 = vmul.f32 %v280_v12, %v277_v19  ;;  %v293_v18 = vmul.f32 %v292_v16, %v277_v19  ;;  %v4118_v60 = vstv %s4070_s2  ;;  %v192_v34 = vadd.f32 %v188_v55, %v2896_v1  ;;  %s4127_s2 = sld [smem:[#allocation26_spill]] }
  0xb1   :  { %v305_v37 = vmul.f32 %v4118_v60, %v277_v19  ;;  %v282_v33 = vmul.f32 %v280_v12, %v278_v61  ;;  %v294_v26 = vmul.f32 %v292_v16, %v278_v61  ;;  %v4120_v62 = vmov %v4118_v60  ;;  %v352_v12 = vpop.permute.xlu0 %351 }
  0xb2   :  { %v306_v47 = vmul.f32 %v4120_v62, %v278_v61  ;;  %v4121_v6 = vstv %s4116_s13  ;;  %v4123_v3 = vstv %s4117_s19  ;;  %v234_v31 = vadd.f32 %v3149_v23, %v155_v2  ;;  %s4143_s13 = sld [smem:[#allocation32_spill]]  ;;  %s4144_s19 = sld [smem:[#allocation33_spill]] }
  0xb3   :  { %v317_v36 = vmul.f32 %v4121_v6, %v277_v19  ;;  %v4122_v52 = vmov %v4121_v6  ;;  %v329_v8 = vmul.f32 %v4123_v3, %v277_v19  ;;  %v4124_v32 = vmov %v4123_v3 }
  0xb4   :  { %v318_v7 = vmul.f32 %v4122_v52, %v278_v61  ;;  %v330_v9 = vmul.f32 %v4124_v32, %v278_v61  ;;  %v285_v35 = vcombine.low %v281_v41, %v282_v33  ;;  %v297_v1 = vcombine.low %v293_v18, %v294_v26 }
  0xb5   :  { %v309_v24 = vcombine.low %v305_v37, %v306_v47  ;;  %v246_v30 = vadd.f32 %v3157_v38, %v167_v20  ;;  %v4125_v25 = vstv %s4119_s6  ;;  %v259_v55 = vadd.f32 %v255_v39, %v180_v28  ;;  %s4146_s6 = sld [smem:[#allocation34_spill]] }
  0xb6   :  { %v321_v16 = vcombine.low %v317_v36, %v318_v7  ;;  %v341_v10 = vmul.f32 %v4125_v25, %v277_v19  ;;  %v4126_v11 = vmov %v4125_v25  ;;  %v258_v60 = vadd.f32 %v254_v29, %v179_v13 }
  0xb7   :  { %v342_v54 = vmul.f32 %v4126_v11, %v278_v61  ;;  %v270_v62 = vadd.f32 %v266_v21, %v191_v14  ;;  %v286_v6 = vrot.slane %v285_v35, 1  ;;  %v271_v52 = vadd.f32 %v267_v53, %v192_v34 }
  0xb8   :  { %v289_v23 = vadd.f32 %v285_v35, %v210_v27  ;;  %v333_v2 = vcombine.low %v329_v8, %v330_v9  ;;  %v356_v41 = vsel %vm355_vm4, %v352_v12, %v354_v40  ;;  %v298_v38 = vrot.slane %v297_v1, 1 }
  0xb9   :  { %v301_v20 = vadd.f32 %v297_v1, %v222_v17  ;;  %v310_v39 = vrot.slane %v309_v24, 1  ;;  %v313_v21 = vadd.f32 %v309_v24, %v234_v31  ;;  %v322_v29 = vrot.slane %v321_v16, 1 }
  0xba   :  { %v325_v13 = vadd.f32 %v321_v16, %v246_v30  ;;  %v345_v53 = vcombine.low %v341_v10, %v342_v54  ;;  %v357_v28 = vsel %vm355_vm4, %v354_v40, %v352_v12  ;;  %v290_v14 = vadd.f32 %v286_v6, %v211_v22 }
  0xbb   :  { %v4132_v27 = vstv %s4127_s2  ;;  %v4134_v37 = vstv %s4128_s18  ;;  %v334_v34 = vrot.slane %v333_v2, 1  ;;  %v4136_v36 = vstv %s4129_s20  ;;  %s4147_s2 = sld [smem:[#allocation35_spill]]  ;;  %s4157_s18 = sld [smem:[#allocation36_spill]] }
  0xbc   :  { %v360_v19 = vmul.f32 %v4132_v27, %v356_v41  ;;  %v4133_v61 = vmov %v4132_v27  ;;  %v372_v17 = vmul.f32 %v4134_v37, %v356_v41  ;;  %v346_v33 = vrot.slane %v345_v53, 1  ;;  %s4160_s20 = sld [smem:[#allocation37_spill]] }
  0xbd   :  { %v361_v18 = vmul.f32 %v4133_v61, %v357_v28  ;;  %v4135_v26 = vmov %v4134_v37  ;;  %v384_v7 = vmul.f32 %v4136_v36, %v356_v41  ;;  %v4137_v8 = vmov %v4136_v36  ;;  %v431_v37 = vpop.permute.xlu0 %430 }
  0xbe   :  { %v373_v47 = vmul.f32 %v4135_v26, %v357_v28  ;;  %v385_v32 = vmul.f32 %v4137_v8, %v357_v28  ;;  %v4138_v9 = vstv %s4130_s15  ;;  %v302_v22 = vadd.f32 %v298_v38, %v223_v57  ;;  %s4162_s15 = sld [smem:[#allocation38_spill]] }
  0xbf   :  { %v364_v3 = vcombine.low %v360_v19, %v361_v18  ;;  %v396_v31 = vmul.f32 %v4138_v9, %v356_v41  ;;  %v4139_v35 = vmov %v4138_v9  ;;  %v4140_v40 = vstv %s4131_s27  ;;  %v433_v18 = vpop.permute.xlu1 %432  ;;  %s4164_s27 = sld [smem:[#allocation40_spill]] }
  0xc0   :  { %v397_v1 = vmul.f32 %v4139_v35, %v357_v28  ;;  %v376_v24 = vcombine.low %v372_v17, %v373_v47  ;;  %v408_v12 = vmul.f32 %v4140_v40, %v356_v41  ;;  %v4142_v30 = vmov %v4140_v40 }
  0xc1   :  { %v409_v16 = vmul.f32 %v4142_v30, %v357_v28  ;;  %v337_v25 = vadd.f32 %v333_v2, %v258_v60  ;;  %v365_v10 = vrot.slane %v364_v3, 1  ;;  %v388_v11 = vcombine.low %v384_v7, %v385_v32 }
  0xc2   :  { %v400_v54 = vcombine.low %v396_v31, %v397_v1  ;;  %v314_v6 = vadd.f32 %v310_v39, %v3202_v50  ;;  %v326_v27 = vadd.f32 %v322_v29, %v3204_v15  ;;  %v338_v19 = vadd.f32 %v334_v34, %v259_v55 }
  0xc3   :  { %v377_v61 = vrot.slane %v376_v24, 1  ;;  %v349_v57 = vadd.f32 %v345_v53, %v270_v62  ;;  %v350_v38 = vadd.f32 %v346_v33, %v271_v52  ;;  %v368_v17 = vadd.f32 %v364_v3, %v289_v23 }
  0xc4   :  { %v4145_v26 = vstv %s4141_s12  ;;  %v369_v50 = vadd.f32 %v365_v10, %v290_v14  ;;  %v380_v2 = vadd.f32 %v376_v24, %v301_v20  ;;  %v389_v15 = vrot.slane %v388_v11, 1  ;;  %s4175_s12 = sld [smem:[#allocation41_spill]] }
  0xc5   :  { %v420_v60 = vmul.f32 %v4145_v26, %v356_v41  ;;  %v412_v55 = vcombine.low %v408_v12, %v409_v16  ;;  %v392_v39 = vadd.f32 %v388_v11, %v313_v21  ;;  %v401_v29 = vrot.slane %v400_v54, 1 }
  0xc6   :  { %v4148_v62 = vmov %v4145_v26  ;;  %v435_v52 = vsel %vm434_vm5, %v431_v37, %v433_v18  ;;  %v381_v23 = vadd.f32 %v377_v61, %v302_v22  ;;  %v436_v41 = vsel %vm434_vm5, %v433_v18, %v431_v37 }
  0xc7   :  { %v421_v53 = vmul.f32 %v4148_v62, %v357_v28  ;;  %v4149_v34 = vstv %s4143_s13  ;;  %v4150_v20 = vstv %s4144_s19  ;;  %v4153_v8 = vstv %s4146_s6  ;;  %s4177_s13 = sld [smem:[#allocation42_spill]]  ;;  %s4179_s19 = sld [smem:[#allocation43_spill]] }
  0xc8   :  { %v439_v14 = vmul.f32 %v4149_v34, %v435_v52  ;;  %v451_v33 = vmul.f32 %v4150_v20, %v435_v52  ;;  %v4151_v36 = vmov %v4149_v34  ;;  %v4152_v21 = vmov %v4150_v20  ;;  %v512_v20 = vpop.permute.xlu1 %511  ;;  %s4182_s6 = sld [smem:[#allocation45_spill]] }
  0xc9   :  { %v424_v47 = vcombine.low %v420_v60, %v421_v53  ;;  %v440_v7 = vmul.f32 %v4151_v36, %v436_v41  ;;  %v452_v3 = vmul.f32 %v4152_v21, %v436_v41  ;;  %v463_v28 = vmul.f32 %v4153_v8, %v435_v52  ;;  %v510_v36 = vpop.permute.xlu0 %509 }
  0xca   :  { %v413_v32 = vrot.slane %v412_v55, 1  ;;  %v4154_v9 = vmov %v4153_v8  ;;  %v4155_v35 = vstv %s4147_s2  ;;  %v4158_v16 = vstv %s2821_s7  ;;  %s4163_s7 = sld [smem:[#allocation39_spill]]  ;;  %s4189_s2 = sld [smem:[#allocation46_spill]] }
  0xcb   :  { %v464_v31 = vmul.f32 %v4154_v9, %v436_v41  ;;  %v475_v1 = vmul.f32 %v4155_v35, %v435_v52  ;;  %v4156_v22 = vmov %v4155_v35  ;;  %v425_v40 = vrot.slane %v424_v47, 1 }
  0xcc   :  { %v476_v24 = vmul.f32 %v4156_v22, %v436_v41  ;;  %v443_v12 = vcombine.low %v439_v14, %v440_v7  ;;  %v455_v30 = vcombine.low %v451_v33, %v452_v3  ;;  %v487_v10 = vmul.f32 %v4158_v16, %v435_v52 }
  0xcd   :  { %v404_v11 = vadd.f32 %v400_v54, %v325_v13  ;;  %v416_v61 = vadd.f32 %v412_v55, %v337_v25  ;;  %v467_v18 = vcombine.low %v463_v28, %v464_v31  ;;  %v4159_v37 = vmov %v4158_v16 }
  0xce   :  { %v488_v26 = vmul.f32 %v4159_v37, %v436_v41  ;;  %v393_v60 = vadd.f32 %v389_v15, %v314_v6  ;;  %v405_v62 = vadd.f32 %v401_v29, %v326_v27  ;;  %v444_v53 = vrot.slane %v443_v12, 1 }
  0xcf   :  { %v479_v34 = vcombine.low %v475_v1, %v476_v24  ;;  %v417_v21 = vadd.f32 %v413_v32, %v338_v19  ;;  %v428_v8 = vadd.f32 %v424_v47, %v349_v57  ;;  %v429_v14 = vadd.f32 %v425_v40, %v350_v38 }
  0xd0   :  { %v4161_v7 = vstv %s4157_s18  ;;  %v447_v13 = vadd.f32 %v443_v12, %v368_v17  ;;  %v456_v25 = vrot.slane %v455_v30, 1  ;;  %v459_v54 = vadd.f32 %v455_v30, %v380_v2  ;;  %s4192_s18 = sld [smem:[#allocation47_spill]] }
  0xd1   :  { %v499_v33 = vmul.f32 %v4161_v7, %v435_v52  ;;  %v491_v6 = vcombine.low %v487_v10, %v488_v26  ;;  %v468_v27 = vrot.slane %v467_v18, 1  ;;  %v471_v15 = vadd.f32 %v467_v18, %v392_v39 }
  0xd2   :  { %v4165_v19 = vmov %v4161_v7  ;;  %v514_v57 = vsel %vm513_vm6, %v510_v36, %v512_v20  ;;  %v448_v38 = vadd.f32 %v444_v53, %v369_v50  ;;  %v480_v29 = vrot.slane %v479_v34, 1 }
  0xd3   :  { %v500_v55 = vmul.f32 %v4165_v19, %v436_v41  ;;  %v515_v17 = vsel %vm513_vm6, %v512_v20, %v510_v36  ;;  %v4166_v2 = vstv %s4160_s20  ;;  %v4168_v32 = vstv %s4162_s15  ;;  %s4193_s20 = sld [smem:[#allocation48_spill]]  ;;  %s4196_s15 = sld [smem:[#allocation49_spill]] }
  0xd4   :  { %v518_v52 = vmul.f32 %v4166_v2, %v514_v57  ;;  %v4167_v3 = vmov %v4166_v2  ;;  %v530_v39 = vmul.f32 %v4168_v32, %v514_v57  ;;  %v4169_v9 = vmov %v4168_v32 }
  0xd5   :  { %v503_v47 = vcombine.low %v499_v33, %v500_v55  ;;  %v519_v28 = vmul.f32 %v4167_v3, %v515_v17  ;;  %v531_v41 = vmul.f32 %v4169_v9, %v515_v17  ;;  %v492_v31 = vrot.slane %v491_v6, 1 }
  0xd6   :  { %v4170_v35 = vstv %s4163_s7  ;;  %v4172_v24 = vstv %s4164_s27  ;;  %v460_v12 = vadd.f32 %v456_v25, %v381_v23  ;;  %v4174_v53 = vstv %s2851_s11  ;;  %v591_v25 = vpop.permute.xlu1 %590  ;;  %s4180_s11 = sld [smem:[#allocation44_spill]]  ;;  %s4197_s7 = sld [smem:[#allocation22_spill]] }
  0xd7   :  { %v542_v1 = vmul.f32 %v4170_v35, %v514_v57  ;;  %v4171_v50 = vmov %v4170_v35  ;;  %v554_v40 = vmul.f32 %v4172_v24, %v514_v57  ;;  %v504_v30 = vrot.slane %v503_v47, 1  ;;  %s4199_s27 = sld [smem:[#allocation50_spill]] }
  0xd8   :  { %v543_v22 = vmul.f32 %v4171_v50, %v515_v17  ;;  %v522_v16 = vcombine.low %v518_v52, %v519_v28  ;;  %v534_v10 = vcombine.low %v530_v39, %v531_v41  ;;  %v4173_v37 = vmov %v4172_v24  ;;  %v589_v52 = vpop.permute.xlu0 %588 }
  0xd9   :  { %v555_v26 = vmul.f32 %v4173_v37, %v515_v17  ;;  %v566_v20 = vmul.f32 %v4174_v53, %v514_v57  ;;  %v4176_v36 = vmov %v4174_v53  ;;  %v472_v33 = vadd.f32 %v468_v27, %v393_v60 }
  0xda   :  { %v546_v18 = vcombine.low %v542_v1, %v543_v22  ;;  %v567_v7 = vmul.f32 %v4176_v36, %v515_v17  ;;  %v483_v19 = vadd.f32 %v479_v34, %v404_v11  ;;  %v484_v55 = vadd.f32 %v480_v29, %v405_v62 }
  0xdb   :  { %v523_v2 = vrot.slane %v522_v16, 1  ;;  %v495_v3 = vadd.f32 %v491_v6, %v416_v61  ;;  %v496_v32 = vadd.f32 %v492_v31, %v417_v21  ;;  %v507_v9 = vadd.f32 %v503_v47, %v428_v8 }
  0xdc   :  { %v558_v23 = vcombine.low %v554_v40, %v555_v26  ;;  %v508_v28 = vadd.f32 %v504_v30, %v429_v14  ;;  %v526_v39 = vadd.f32 %v522_v16, %v447_v13  ;;  %v570_v41 = vcombine.low %v566_v20, %v567_v7 }
  0xdd   :  { %v4178_v35 = vstv %s4175_s12  ;;  %v535_v11 = vrot.slane %v534_v10, 1  ;;  %v538_v60 = vadd.f32 %v534_v10, %v459_v54  ;;  %v547_v61 = vrot.slane %v546_v18, 1  ;;  %s4202_s12 = sld [smem:[#allocation51_spill]] }
  0xde   :  { %v578_v1 = vmul.f32 %v4178_v35, %v514_v57  ;;  %v4181_v62 = vmov %v4178_v35  ;;  %v527_v21 = vadd.f32 %v523_v2, %v448_v38  ;;  %v550_v8 = vadd.f32 %v546_v18, %v471_v15 }
  0xdf   :  { %v579_v34 = vmul.f32 %v4181_v62, %v515_v17  ;;  %v593_v14 = vsel %vm592_vm7, %v589_v52, %v591_v25  ;;  %v594_v13 = vsel %vm592_vm7, %v591_v25, %v589_v52  ;;  %v559_v6 = vrot.slane %v558_v23, 1 }
  0xe0   :  { %v4183_v57 = vstv %s4177_s13  ;;  %v571_v31 = vrot.slane %v570_v41, 1  ;;  %v4185_v50 = vstv %s4179_s19  ;;  %v4187_v15 = vstv %s4180_s11  ;;  %s4209_s13 = sld [smem:[#allocation52_spill]]  ;;  %s4217_s19 = sld [smem:[#allocation53_spill]] }
  0xe1   :  { %v582_v27 = vcombine.low %v578_v1, %v579_v34  ;;  %v597_v29 = vmul.f32 %v4183_v57, %v593_v14  ;;  %v4184_v47 = vmov %v4183_v57  ;;  %v609_v17 = vmul.f32 %v4185_v50, %v593_v14  ;;  %v670_v34 = vpop.permute.xlu1 %669  ;;  %v668_v57 = vpop.permute.xlu0 %667  ;;  %s4223_s11 = sld [smem:[#allocation54_spill]] }
  0xe2   :  { %v598_v54 = vmul.f32 %v4184_v47, %v594_v13  ;;  %v4186_v22 = vmov %v4185_v50  ;;  %v621_v24 = vmul.f32 %v4187_v15, %v593_v14  ;;  %v539_v40 = vadd.f32 %v535_v11, %v460_v12 }
  0xe3   :  { %v610_v38 = vmul.f32 %v4186_v22, %v594_v13  ;;  %v583_v30 = vrot.slane %v582_v27, 1  ;;  %v4188_v10 = vmov %v4187_v15  ;;  %v551_v37 = vadd.f32 %v547_v61, %v472_v33 }
  0xe4   :  { %v601_v16 = vcombine.low %v597_v29, %v598_v54  ;;  %v622_v18 = vmul.f32 %v4188_v10, %v594_v13  ;;  %v4190_v53 = vstv %s4182_s6  ;;  %v562_v2 = vadd.f32 %v558_v23, %v483_v19  ;;  %s4245_s6 = sld [smem:[#allocation58_spill]] }
  0xe5   :  { %v613_v26 = vcombine.low %v609_v17, %v610_v38  ;;  %v633_v20 = vmul.f32 %v4190_v53, %v593_v14  ;;  %v4191_v36 = vmov %v4190_v53  ;;  %v574_v25 = vadd.f32 %v570_v41, %v495_v3 }
  0xe6   :  { %v634_v7 = vmul.f32 %v4191_v36, %v594_v13  ;;  %v602_v52 = vrot.slane %v601_v16, 1  ;;  %v625_v35 = vcombine.low %v621_v24, %v622_v18  ;;  %v563_v1 = vadd.f32 %v559_v6, %v484_v55 }
  0xe7   :  { %v575_v12 = vadd.f32 %v571_v31, %v496_v32  ;;  %v614_v11 = vrot.slane %v613_v26, 1  ;;  %v586_v33 = vadd.f32 %v582_v27, %v507_v9  ;;  %v587_v61 = vadd.f32 %v583_v30, %v508_v28 }
  0xe8   :  { %v637_v62 = vcombine.low %v633_v20, %v634_v7  ;;  %v4194_v29 = vstv %s4189_s2  ;;  %v605_v3 = vadd.f32 %v601_v16, %v526_v39  ;;  %v606_v23 = vadd.f32 %v602_v52, %v527_v21  ;;  %s3601_s2 = sld [smem:[#allocation2 + $0x2c]] }
  0xe9   :  { %v645_v47 = vmul.f32 %v4194_v29, %v593_v14  ;;  %v4195_v54 = vmov %v4194_v29  ;;  %v617_v41 = vadd.f32 %v613_v26, %v538_v60  ;;  %v4198_v55 = vstv %s4192_s18  ;;  %s3603_s18 = sld [smem:[#allocation2 + $0x47]] }
  0xea   :  { %v646_v19 = vmul.f32 %v4195_v54, %v594_v13  ;;  %v657_v32 = vmul.f32 %v4198_v55, %v593_v14  ;;  %v626_v6 = vrot.slane %v625_v35, 1  ;;  %v4200_v31 = vmov %v4198_v55 }
  0xeb   :  { %v658_v50 = vmul.f32 %v4200_v31, %v594_v13  ;;  %v672_v9 = vsel %vm671_vm8, %v668_v57, %v670_v34  ;;  %v673_v28 = vsel %vm671_vm8, %v670_v34, %v668_v57  ;;  %v618_v27 = vadd.f32 %v614_v11, %v539_v40 }
  0xec   :  { %v629_v17 = vadd.f32 %v625_v35, %v550_v8  ;;  %v638_v39 = vrot.slane %v637_v62, 1  ;;  %v4201_v21 = vstv %s4193_s20  ;;  %v649_v22 = vcombine.low %v645_v47, %v646_v19  ;;  %s3605_s20 = sld [smem:[#allocation2 + $0x62]] }
  0xed   :  { %v676_v60 = vmul.f32 %v4201_v21, %v672_v9  ;;  %v4203_v14 = vmov %v4201_v21  ;;  %v4204_v15 = vstv %s4196_s15  ;;  %v661_v16 = vcombine.low %v657_v32, %v658_v50  ;;  %s3607_s15 = sld [smem:[#allocation2 + $0x7d]] }
  0xee   :  { %v677_v38 = vmul.f32 %v4203_v14, %v673_v28  ;;  %v688_v24 = vmul.f32 %v4204_v15, %v672_v9  ;;  %v4205_v13 = vmov %v4204_v15  ;;  %v4206_v10 = vstv %s4197_s7  ;;  %s3609_s7 = sld [smem:[#allocation2 + $0x98]] }
  0xef   :  { %v689_v30 = vmul.f32 %v4205_v13, %v673_v28  ;;  %v700_v18 = vmul.f32 %v4206_v10, %v672_v9  ;;  %v4207_v26 = vmov %v4206_v10  ;;  %v4208_v40 = vstv %s4199_s27  ;;  %s3621_s27 = sld [smem:[#allocation2 + $0x12]] }
  0xf0   :  { %v701_v53 = vmul.f32 %v4207_v26, %v673_v28  ;;  %v712_v8 = vmul.f32 %v4208_v40, %v672_v9  ;;  %v630_v20 = vadd.f32 %v626_v6, %v551_v37  ;;  %v641_v36 = vadd.f32 %v637_v62, %v562_v2 }
  0xf1   :  { %v680_v7 = vcombine.low %v676_v60, %v677_v38  ;;  %v692_v52 = vcombine.low %v688_v24, %v689_v30  ;;  %v4210_v11 = vmov %v4208_v40  ;;  %v4211_v57 = vstv %s4202_s12  ;;  %s3623_s12 = sld [smem:[#allocation2 + $0x2d]] }
  0xf2   :  { %v704_v35 = vcombine.low %v700_v18, %v701_v53  ;;  %v713_v34 = vmul.f32 %v4210_v11, %v673_v28  ;;  %v724_v29 = vmul.f32 %v4211_v57, %v672_v9  ;;  %v4212_v47 = vmov %v4211_v57  ;;  %v853_v11 = vpop.permute.xlu1 %852 }
  0xf3   :  { %v725_v54 = vmul.f32 %v4212_v47, %v673_v28  ;;  %v642_v19 = vadd.f32 %v638_v39, %v563_v1  ;;  %v650_v55 = vrot.slane %v649_v22, 1  ;;  %v681_v32 = vrot.slane %v680_v7, 1 }
  0xf4   :  { %v693_v31 = vrot.slane %v692_v52, 1  ;;  %v653_v50 = vadd.f32 %v649_v22, %v574_v25  ;;  %v662_v21 = vrot.slane %v661_v16, 1  ;;  %v705_v14 = vrot.slane %v704_v35, 1 }
  0xf5   :  { %v716_v37 = vcombine.low %v712_v8, %v713_v34  ;;  %v685_v2 = vadd.f32 %v681_v32, %v606_v23  ;;  %v728_v6 = vcombine.low %v724_v29, %v725_v54  ;;  %v4213_v60 = vstv %s4209_s13  ;;  %v851_v23 = vpop.permute.xlu0 %850  ;;  %s3625_s13 = sld [smem:[#allocation2 + $0x48]] }
  0xf6   :  { %v697_v62 = vadd.f32 %v693_v31, %v618_v27  ;;  %v736_v38 = vmul.f32 %v4213_v60, %v672_v9  ;;  %v684_v15 = vadd.f32 %v680_v7, %v605_v3  ;;  %v709_v24 = vadd.f32 %v705_v14, %v630_v20 }
  0xf7   :  { %v717_v13 = vrot.slane %v716_v37, 1  ;;  %v4214_v30 = vmov %v4213_v60  ;;  %v654_v18 = vadd.f32 %v650_v55, %v575_v12  ;;  %v696_v26 = vadd.f32 %v692_v52, %v617_v41  ;;  %v931_v60 = vpop.permute.xlu1 %930 }
  0xf8   :  { %v737_v10 = vmul.f32 %v4214_v30, %v673_v28  ;;  %v708_v1 = vadd.f32 %v704_v35, %v629_v17  ;;  %v729_v39 = vrot.slane %v728_v6, 1  ;;  %v665_v53 = vadd.f32 %v661_v16, %v586_v33 }
  0xf9   :  { %v666_v40 = vadd.f32 %v662_v21, %v587_v61  ;;  %v720_v25 = vadd.f32 %v716_v37, %v641_v36  ;;  %v721_v27 = vadd.f32 %v717_v13, %v642_v19  ;;  %v732_v9 = vadd.f32 %v728_v6, %v653_v50 }
  0xfa   :  { %v740_v22 = vcombine.low %v736_v38, %v737_v10  ;;  %v4215_v3 = vrot.slane %v3018_v44, 9  ;;  %v4216_v12 = vrot.slane %v3021_v43, 9  ;;  %v733_v33 = vadd.f32 %v729_v39, %v654_v18  ;;  %v929_v38 = vpop.permute.xlu0 %928 }
  0xfb   :  { %v4218_v28 = vrot.slane %v3028_v58, 9  ;;  %v4219_v16 = vrot.slane %v2993_v63, 9  ;;  %v4220_v36 = vrot.slane %v2996_v0, 9  ;;  %v4221_v7 = vrot.slane %v3005_v59, 9 }
  0xfc   :  { %v759_v8 = vadd.f32 %v4215_v3, %v685_v2  ;;  %v3387_v41 = vadd.f32 %v4216_v12, %v697_v62  ;;  %v741_v61 = vrot.slane %v740_v22, 1  ;;  %v854_v52 = vsel %vm118_vm2, %v851_v23, %v853_v11 }
  0xfd   :  { %v787_v17 = vadd.f32 %v4218_v28, %v709_v24  ;;  %v758_v20 = vadd.f32 %v4219_v16, %v684_v15  ;;  %v772_v44 = vadd.f32 %v4220_v36, %v696_v26  ;;  %v786_v43 = vadd.f32 %v4221_v7, %v708_v1 }
  0xfe   :  { %v855_v35 = vsel %vm118_vm2, %v853_v11, %v851_v23  ;;  %v744_v34 = vadd.f32 %v740_v22, %v665_v53  ;;  %v4222_v58 = vrot.slane %v3008_v56, 9  ;;  %v4224_v57 = vstv %s2947_s21  ;;  %s4243_s21 = sld [smem:[#allocation57_spill]] }
  0xff   :  { %v858_v29 = vmul.f32 %v4224_v57, %v854_v52  ;;  %v4225_v0 = vmov %v4224_v57  ;;  %v4226_v54 = vstv %s2949_s8  ;;  %v4228_v32 = vstv %s4217_s19  ;;  %s4240_s8 = sld [smem:[#allocation56_spill]]  ;;  %s3627_s19 = sld [smem:[#allocation2 + $0x63]] }
 0x100   :  { %v800_v63 = vadd.f32 %v4222_v58, %v720_v25  ;;  %v859_v47 = vmul.f32 %v4225_v0, %v855_v35  ;;  %v870_v19 = vmul.f32 %v4226_v54, %v854_v52  ;;  %v4227_v59 = vmov %v4226_v54 }
 0x101   :  { %v871_v55 = vmul.f32 %v4227_v59, %v855_v35  ;;  %v882_v31 = vmul.f32 %v4228_v32, %v854_v52  ;;  %v4229_v50 = vmov %v4228_v32  ;;  %v745_v14 = vadd.f32 %v741_v61, %v666_v40 }
 0x102   :  { %v883_v21 = vmul.f32 %v4229_v50, %v855_v35  ;;  %v862_v37 = vcombine.low %v858_v29, %v859_v47  ;;  %v4230_v2 = vstv %s2957_s28  ;;  %v4232_v13 = vstv %s4223_s11  ;;  %s4237_s28 = sld [smem:[#allocation55_spill]]  ;;  %s3629_s11 = sld [smem:[#allocation2 + $0x7e]] }
 0x103   :  { %v894_v56 = vmul.f32 %v4230_v2, %v854_v52  ;;  %v4231_v62 = vmov %v4230_v2  ;;  %v874_v15 = vcombine.low %v870_v19, %v871_v55  ;;  %v906_v30 = vmul.f32 %v4232_v13, %v854_v52 }
 0x104   :  { %v895_v6 = vmul.f32 %v4231_v62, %v855_v35  ;;  %v886_v24 = vcombine.low %v882_v31, %v883_v21  ;;  %v4233_v10 = vmov %v4232_v13  ;;  %v4234_v26 = vrot.slane %v3031_v42, 9 }
 0x105   :  { %v907_v18 = vmul.f32 %v4233_v10, %v855_v35  ;;  %v4235_v39 = vrot.slane %v3034_v48, 9  ;;  %v863_v40 = vrot.slane %v862_v37, 1  ;;  %v4236_v22 = vrot.slane %v3037_v46, 9 }
 0x106   :  { %v801_v1 = vadd.f32 %v4234_v26, %v721_v27  ;;  %v898_v25 = vcombine.low %v894_v56, %v895_v6  ;;  %v4238_v23 = vrot.slane %v3048_v51, 9  ;;  %v4239_v12 = vstv %s2965_s4  ;;  %s4255_s4 = sld [smem:[#allocation59_spill]] }
 0x107   :  { %v814_v53 = vadd.f32 %v4235_v39, %v732_v9  ;;  %v815_v11 = vadd.f32 %v4236_v22, %v733_v33  ;;  %v918_v61 = vmul.f32 %v4239_v12, %v854_v52  ;;  %v932_v42 = vsel %vm197_vm1, %v929_v38, %v931_v60 }
 0x108   :  { %v828_v3 = vadd.f32 %v4238_v23, %v744_v34  ;;  %v4241_v27 = vrot.slane %v3051_v49, 9  ;;  %v866_v9 = vadd.f32 %v862_v37, %v758_v20  ;;  %v875_v28 = vrot.slane %v874_v15, 1 }
 0x109   :  { %v910_v46 = vcombine.low %v906_v30, %v907_v18  ;;  %v878_v33 = vadd.f32 %v874_v15, %v772_v44  ;;  %v887_v16 = vrot.slane %v886_v24, 1  ;;  %v4242_v51 = vmov %v4239_v12 }
 0x10a   :  { %v829_v48 = vadd.f32 %v4241_v27, %v745_v14  ;;  %v919_v36 = vmul.f32 %v4242_v51, %v855_v35  ;;  %v933_v7 = vsel %vm197_vm1, %v931_v60, %v929_v38  ;;  %v867_v52 = vadd.f32 %v863_v40, %v759_v8  ;;  %v1009_v40 = vpop.permute.xlu1 %1008 }
 0x10b   :  { %v890_v34 = vadd.f32 %v886_v24, %v786_v43  ;;  %v899_v58 = vrot.slane %v898_v25, 1  ;;  %v4244_v49 = vstv %s4237_s28  ;;  %v4247_v47 = vstv %s4240_s8  ;;  %s3631_s28 = sld [smem:[#allocation2 + $0x99]]  ;;  %s3767_s8 = sld [smem:[#allocation2 + $0x4d]] }
 0x10c   :  { %v936_v57 = vmul.f32 %v4244_v49, %v932_v42  ;;  %v922_v20 = vcombine.low %v918_v61, %v919_v36  ;;  %v4246_v29 = vmov %v4244_v49  ;;  %v948_v44 = vmul.f32 %v4247_v47, %v932_v42 }
 0x10d   :  { %v937_v0 = vmul.f32 %v4246_v29, %v933_v7  ;;  %v4248_v54 = vmov %v4247_v47  ;;  %v902_v35 = vadd.f32 %v898_v25, %v800_v63  ;;  %v911_v59 = vrot.slane %v910_v46, 1  ;;  %v1007_v25 = vpop.permute.xlu0 %1006 }
 0x10e   :  { %v949_v19 = vmul.f32 %v4248_v54, %v933_v7  ;;  %v4249_v55 = vstv %s2979_s26  ;;  %v923_v43 = vrot.slane %v922_v20, 1  ;;  %v4251_v14 = vstv %s4243_s21  ;;  %s4256_s26 = sld [smem:[#allocation60_spill]]  ;;  %s3769_s21 = sld [smem:[#allocation2 + $0x68]] }
 0x10f   :  { %v960_v32 = vmul.f32 %v4249_v55, %v932_v42  ;;  %v4250_v31 = vmov %v4249_v55  ;;  %v940_v50 = vcombine.low %v936_v57, %v937_v0  ;;  %v972_v37 = vmul.f32 %v4251_v14, %v932_v42 }
 0x110   :  { %v961_v8 = vmul.f32 %v4250_v31, %v933_v7  ;;  %v952_v21 = vcombine.low %v948_v44, %v949_v19  ;;  %v4252_v56 = vmov %v4251_v14  ;;  %v4253_v6 = vstv %s4245_s6  ;;  %s4303_s6 = sld [smem:[#allocation65_spill]] }
 0x111   :  { %v973_v62 = vmul.f32 %v4252_v56, %v933_v7  ;;  %v984_v60 = vmul.f32 %v4253_v6, %v932_v42  ;;  %v4254_v38 = vmov %v4253_v6  ;;  %v879_v63 = vadd.f32 %v875_v28, %v3387_v41 }
 0x112   :  { %v964_v2 = vcombine.low %v960_v32, %v961_v8  ;;  %v985_v15 = vmul.f32 %v4254_v38, %v933_v7  ;;  %v891_v24 = vadd.f32 %v887_v16, %v787_v17  ;;  %v903_v13 = vadd.f32 %v899_v58, %v801_v1  ;;  %v1087_v38 = vpop.permute.xlu1 %1086 }
 0x113   :  { %v941_v30 = vrot.slane %v940_v50, 1  ;;  %v914_v10 = vadd.f32 %v910_v46, %v814_v53  ;;  %v915_v18 = vadd.f32 %v911_v59, %v815_v11  ;;  %v926_v26 = vadd.f32 %v922_v20, %v828_v3 }
 0x114   :  { %v953_v39 = vrot.slane %v952_v21, 1  ;;  %v927_v22 = vadd.f32 %v923_v43, %v829_v48  ;;  %v944_v23 = vadd.f32 %v940_v50, %v866_v9  ;;  %v976_v12 = vcombine.low %v972_v37, %v973_v62 }
 0x115   :  { %v4257_v61 = vstv %s2989_s17  ;;  %v956_v41 = vadd.f32 %v952_v21, %v878_v33  ;;  %v965_v17 = vrot.slane %v964_v2, 1  ;;  %v988_v1 = vcombine.low %v984_v60, %v985_v15  ;;  %v1085_v15 = vpop.permute.xlu0 %1084  ;;  %s3548_s17 = sld [smem:[#allocation2 + $0x7b]] }
 0x116   :  { %v996_v27 = vmul.f32 %v4257_v61, %v932_v42  ;;  %v4258_v28 = vmov %v4257_v61  ;;  %v945_v11 = vadd.f32 %v941_v30, %v867_v52  ;;  %v968_v3 = vadd.f32 %v964_v2, %v890_v34 }
 0x117   :  { %v997_v53 = vmul.f32 %v4258_v28, %v933_v7  ;;  %v1010_v46 = vsel %vm276_vm3, %v1007_v25, %v1009_v40  ;;  %v1011_v48 = vsel %vm276_vm3, %v1009_v40, %v1007_v25  ;;  %v957_v9 = vadd.f32 %v953_v39, %v879_v63 }
 0x118   :  { %v4259_v16 = vstv %s4255_s4  ;;  %v977_v58 = vrot.slane %v976_v12, 1  ;;  %v4261_v7 = vstv %s4256_s26  ;;  %v4263_v57 = vstv %s3011_s5  ;;  %s4282_s5 = sld [smem:[#allocation62_spill]]  ;;  %s3648_s4 = sld [smem:[#allocation2 + $0x13]] }
 0x119   :  { %v1000_v42 = vcombine.low %v996_v27, %v997_v53  ;;  %v1014_v33 = vmul.f32 %v4259_v16, %v1010_v46  ;;  %v4260_v51 = vmov %v4259_v16  ;;  %v1026_v49 = vmul.f32 %v4261_v7, %v1010_v46  ;;  %s3650_s26 = sld [smem:[#allocation2 + $0x2e]] }
 0x11a   :  { %v1015_v36 = vmul.f32 %v4260_v51, %v1011_v48  ;;  %v4262_v52 = vmov %v4261_v7  ;;  %v1038_v20 = vmul.f32 %v4263_v57, %v1010_v46  ;;  %v989_v29 = vrot.slane %v988_v1, 1 }
 0x11b   :  { %v1027_v34 = vmul.f32 %v4262_v52, %v1011_v48  ;;  %v1001_v0 = vrot.slane %v1000_v42, 1  ;;  %v4264_v44 = vmov %v4263_v57  ;;  %v4265_v59 = vstv %s3013_s0  ;;  %s4280_s0 = sld [smem:[#allocation61_spill]] }
 0x11c   :  { %v1018_v47 = vcombine.low %v1014_v33, %v1015_v36  ;;  %v1039_v54 = vmul.f32 %v4264_v44, %v1011_v48  ;;  %v1050_v55 = vmul.f32 %v4265_v59, %v1010_v46  ;;  %v4266_v32 = vmov %v4265_v59 }
 0x11d   :  { %v1030_v19 = vcombine.low %v1026_v49, %v1027_v34  ;;  %v1051_v31 = vmul.f32 %v4266_v32, %v1011_v48  ;;  %v4267_v8 = vstv %s3023_s22  ;;  %v969_v50 = vadd.f32 %v965_v17, %v891_v24  ;;  %s3587_s22 = sld [smem:[#allocation2 + $0x97]] }
 0x11e   :  { %v1062_v43 = vmul.f32 %v4267_v8, %v1010_v46  ;;  %v980_v21 = vadd.f32 %v976_v12, %v902_v35  ;;  %v992_v14 = vadd.f32 %v988_v1, %v914_v10  ;;  %v1019_v37 = vrot.slane %v1018_v47, 1 }
 0x11f   :  { %v981_v2 = vadd.f32 %v977_v58, %v903_v13  ;;  %v1042_v56 = vcombine.low %v1038_v20, %v1039_v54  ;;  %v1054_v62 = vcombine.low %v1050_v55, %v1051_v31  ;;  %v4268_v6 = vmov %v4267_v8 }
 0x120   :  { %v1063_v60 = vmul.f32 %v4268_v6, %v1011_v48  ;;  %v993_v63 = vadd.f32 %v989_v29, %v915_v18  ;;  %v1004_v30 = vadd.f32 %v1000_v42, %v926_v26  ;;  %v1005_v39 = vadd.f32 %v1001_v0, %v927_v22  ;;  %v1165_v6 = vpop.permute.xlu1 %1164 }
 0x121   :  { %v4269_v40 = vstv %s3025_s10  ;;  %v1022_v35 = vadd.f32 %v1018_v47, %v944_v23  ;;  %v1031_v24 = vrot.slane %v1030_v19, 1  ;;  %v1034_v10 = vadd.f32 %v1030_v19, %v956_v41  ;;  %s4283_s10 = sld [smem:[#allocation63_spill]] }
 0x122   :  { %v1074_v25 = vmul.f32 %v4269_v40, %v1010_v46  ;;  %v1066_v13 = vcombine.low %v1062_v43, %v1063_v60  ;;  %v1023_v12 = vadd.f32 %v1019_v37, %v945_v11  ;;  %v4270_v61 = vmov %v4269_v40  ;;  %v1163_v60 = vpop.permute.xlu0 %1162 }
 0x123   :  { %v1075_v27 = vmul.f32 %v4270_v61, %v1011_v48  ;;  %v1088_v17 = vsel %vm355_vm4, %v1085_v15, %v1087_v38  ;;  %v1089_v18 = vsel %vm355_vm4, %v1087_v38, %v1085_v15  ;;  %v1043_v26 = vrot.slane %v1042_v56, 1 }
 0x124   :  { %v1046_v22 = vadd.f32 %v1042_v56, %v968_v3  ;;  %v1055_v1 = vrot.slane %v1054_v62, 1  ;;  %v4271_v23 = vstv %s3039_s9  ;;  %v4273_v46 = vstv %s3041_s14  ;;  %s3583_s14 = sld [smem:[#allocation2 + $0x7c]]  ;;  %s3599_s9 = sld [smem:[#allocation2 + $0x11]] }
 0x125   :  { %v1092_v41 = vmul.f32 %v4271_v23, %v1088_v17  ;;  %v1078_v28 = vcombine.low %v1074_v25, %v1075_v27  ;;  %v4272_v53 = vmov %v4271_v23  ;;  %v1104_v48 = vmul.f32 %v4273_v46, %v1088_v17 }
 0x126   :  { %v1093_v11 = vmul.f32 %v4272_v53, %v1089_v18  ;;  %v4274_v42 = vmov %v4273_v46  ;;  %v1035_v33 = vadd.f32 %v1031_v24, %v957_v9  ;;  %v1067_v51 = vrot.slane %v1066_v13, 1 }
 0x127   :  { %v1105_v16 = vmul.f32 %v4274_v42, %v1089_v18  ;;  %v4275_v36 = vstv %s3053_s16  ;;  %v1079_v3 = vrot.slane %v1078_v28, 1  ;;  %v4277_v57 = vstv %s3055_s25  ;;  %s3542_s25 = sld [smem:[#allocation2 + $0x60]]  ;;  %s3579_s16 = sld [smem:[#allocation2 + $0x46]] }
 0x128   :  { %v1116_v58 = vmul.f32 %v4275_v36, %v1088_v17  ;;  %v4276_v7 = vmov %v4275_v36  ;;  %v1096_v52 = vcombine.low %v1092_v41, %v1093_v11  ;;  %v1128_v20 = vmul.f32 %v4277_v57, %v1088_v17 }
 0x129   :  { %v1117_v49 = vmul.f32 %v4276_v7, %v1089_v18  ;;  %v1108_v34 = vcombine.low %v1104_v48, %v1105_v16  ;;  %v4278_v0 = vmov %v4277_v57  ;;  %v4279_v44 = vstv %s3061_s3  ;;  %s3538_s3 = sld [smem:[#allocation2 + $0x45]] }
 0x12a   :  { %v1129_v47 = vmul.f32 %v4278_v0, %v1089_v18  ;;  %v1140_v54 = vmul.f32 %v4279_v44, %v1088_v17  ;;  %v4281_v19 = vmov %v4279_v44  ;;  %v1047_v55 = vadd.f32 %v1043_v26, %v969_v50 }
 0x12b   :  { %v1120_v29 = vcombine.low %v1116_v58, %v1117_v49  ;;  %v1141_v59 = vmul.f32 %v4281_v19, %v1089_v18  ;;  %v1058_v9 = vadd.f32 %v1054_v62, %v980_v21  ;;  %v1059_v32 = vadd.f32 %v1055_v1, %v981_v2 }
 0x12c   :  { %v1097_v31 = vrot.slane %v1096_v52, 1  ;;  %v1070_v8 = vadd.f32 %v1066_v13, %v992_v14  ;;  %v1071_v43 = vadd.f32 %v1067_v51, %v993_v63  ;;  %v1082_v37 = vadd.f32 %v1078_v28, %v1004_v30 }
 0x12d   :  { %v1109_v56 = vrot.slane %v1108_v34, 1  ;;  %v1083_v38 = vadd.f32 %v1079_v3, %v1005_v39  ;;  %v1100_v15 = vadd.f32 %v1096_v52, %v1022_v35  ;;  %v1121_v40 = vrot.slane %v1120_v29, 1 }
 0x12e   :  { %v4284_v25 = vstv %s4280_s0  ;;  %v1112_v50 = vadd.f32 %v1108_v34, %v1034_v10  ;;  %v1132_v21 = vcombine.low %v1128_v20, %v1129_v47  ;;  %v1144_v2 = vcombine.low %v1140_v54, %v1141_v59  ;;  %s3786_s0 = sld [smem:[#allocation2 + $0x33]] }
 0x12f   :  { %v1152_v24 = vmul.f32 %v4284_v25, %v1088_v17  ;;  %v4285_v62 = vmov %v4284_v25  ;;  %v1101_v63 = vadd.f32 %v1097_v31, %v1023_v12  ;;  %v1124_v30 = vadd.f32 %v1120_v29, %v1046_v22 }
 0x130   :  { %v1153_v14 = vmul.f32 %v4285_v62, %v1089_v18  ;;  %v1166_v13 = vsel %vm434_vm5, %v1163_v60, %v1165_v6  ;;  %v1167_v39 = vsel %vm434_vm5, %v1165_v6, %v1163_v60  ;;  %v1113_v35 = vadd.f32 %v1109_v56, %v1035_v33 }
 0x131   :  { %v4286_v27 = vstv %s4282_s5  ;;  %v3530_v1 = vadd.f32 %v1121_v40, %v1047_v55  ;;  %v4288_v18 = vstv %s4283_s10  ;;  %v4290_v41 = vstv %s3077_s30  ;;  %s3556_s30 = sld [smem:[#allocation2 + $0x96]]  ;;  %v1241_v40 = vpop.permute.xlu0 %1240  ;;  %s3659_s10 = sld [smem:[#allocation2 + $0x49]] }
 0x132   :  { %v1156_v61 = vcombine.low %v1152_v24, %v1153_v14  ;;  %v1170_v17 = vmul.f32 %v4286_v27, %v1166_v13  ;;  %v4287_v10 = vmov %v4286_v27  ;;  %v1182_v12 = vmul.f32 %v4288_v18, %v1166_v13  ;;  %s3789_s5 = sld [smem:[#allocation2 + $0x4e]] }
 0x133   :  { %v1171_v26 = vmul.f32 %v4287_v10, %v1167_v39  ;;  %v4289_v23 = vmov %v4288_v18  ;;  %v1194_v28 = vmul.f32 %v4290_v41, %v1166_v13  ;;  %v1133_v53 = vrot.slane %v1132_v21, 1 }
 0x134   :  { %v1183_v22 = vmul.f32 %v4289_v23, %v1167_v39  ;;  %v1145_v11 = vrot.slane %v1144_v2, 1  ;;  %v4291_v48 = vmov %v4290_v41  ;;  %v1157_v16 = vrot.slane %v1156_v61, 1 }
 0x135   :  { %v1174_v46 = vcombine.low %v1170_v17, %v1171_v26  ;;  %v1195_v42 = vmul.f32 %v4291_v48, %v1167_v39  ;;  %v4292_v51 = vstv %s3087_s24  ;;  %v1136_v49 = vadd.f32 %v1132_v21, %v1058_v9  ;;  %s3577_s24 = sld [smem:[#allocation2 + $0x2b]] }
 0x136   :  { %v1186_v33 = vcombine.low %v1182_v12, %v1183_v22  ;;  %v1206_v36 = vmul.f32 %v4292_v51, %v1166_v13  ;;  %v4293_v58 = vmov %v4292_v51  ;;  %v4294_v34 = vstv %s3093_s23  ;;  %s4297_s23 = sld [smem:[#allocation64_spill]] }
 0x137   :  { %v1207_v7 = vmul.f32 %v4293_v58, %v1167_v39  ;;  %v1175_v3 = vrot.slane %v1174_v46, 1  ;;  %v1198_v52 = vcombine.low %v1194_v28, %v1195_v42  ;;  %v1218_v57 = vmul.f32 %v4294_v34, %v1166_v13 }
 0x138   :  { %v1148_v20 = vadd.f32 %v1144_v2, %v1070_v8  ;;  %v1187_v29 = vrot.slane %v1186_v33, 1  ;;  %v4295_v47 = vmov %v4294_v34  ;;  %v1137_v54 = vadd.f32 %v1133_v53, %v1059_v32  ;;  %v1243_v8 = vpop.permute.xlu1 %1242 }
 0x139   :  { %v1210_v0 = vcombine.low %v1206_v36, %v1207_v7  ;;  %v1219_v44 = vmul.f32 %v4295_v47, %v1167_v39  ;;  %v1149_v19 = vadd.f32 %v1145_v11, %v1071_v43  ;;  %v1160_v59 = vadd.f32 %v1156_v61, %v1082_v37 }
 0x13a   :  { %v4296_v55 = vstv %s3095_s29  ;;  %v1161_v9 = vadd.f32 %v1157_v16, %v1083_v38  ;;  %v1178_v56 = vadd.f32 %v1174_v46, %v1100_v15  ;;  %v1179_v6 = vadd.f32 %v1175_v3, %v1101_v63  ;;  %s3573_s29 = sld [smem:[#allocation2 + $0x10]] }
 0x13b   :  { %v1230_v31 = vmul.f32 %v4296_v55, %v1166_v13  ;;  %v1190_v60 = vadd.f32 %v1186_v33, %v1112_v50  ;;  %v1199_v25 = vrot.slane %v1198_v52, 1  ;;  %v1202_v32 = vadd.f32 %v1198_v52, %v1124_v30 }
 0x13c   :  { %v1222_v43 = vcombine.low %v1218_v57, %v1219_v44  ;;  %v4298_v37 = vmov %v4296_v55  ;;  %v1191_v21 = vadd.f32 %v1187_v29, %v1113_v35  ;;  %v1211_v2 = vrot.slane %v1210_v0, 1  ;;  %v1321_v55 = vpop.permute.xlu1 %1320 }
 0x13d   :  { %v1231_v24 = vmul.f32 %v4298_v37, %v1167_v39  ;;  %v1214_v62 = vadd.f32 %v1210_v0, %v1136_v49  ;;  %v1271_v14 = vstv %s3538_s3  ;;  %v1283_v15 = vstv %s3542_s25  ;;  %s3661_s3 = sld [smem:[#allocation2 + $0x64]]  ;;  %s3663_s25 = sld [smem:[#allocation2 + $0x7f]] }
 0x13e   :  { %v1244_v50 = vsel %vm513_vm6, %v1241_v40, %v1243_v8  ;;  %v1245_v63 = vsel %vm513_vm6, %v1243_v8, %v1241_v40  ;;  %v1295_v13 = vstv %s3548_s17  ;;  %v4299_v61 = vstv %s3101_s1  ;;  %s3581_s1 = sld [smem:[#allocation2 + $0x61]]  ;;  %s3665_s17 = sld [smem:[#allocation2 + $0x9a]] }
 0x13f   :  { %v1234_v38 = vcombine.low %v1230_v31, %v1231_v24  ;;  %v1248_v27 = vmul.f32 %v4299_v61, %v1244_v50  ;;  %v4300_v30 = vmov %v4299_v61  ;;  %v4301_v39 = vstv %s4297_s23  ;;  %v1319_v31 = vpop.permute.xlu0 %1318  ;;  %s3683_s23 = sld [smem:[#allocation2 + $0x2f]] }
 0x140   :  { %v1249_v17 = vmul.f32 %v4300_v30, %v1245_v63  ;;  %v1260_v10 = vmul.f32 %v4301_v39, %v1244_v50  ;;  %v1223_v35 = vrot.slane %v1222_v43, 1  ;;  %v4302_v18 = vmov %v4301_v39 }
 0x141   :  { %v1235_v26 = vrot.slane %v1234_v38, 1  ;;  %v1261_v12 = vmul.f32 %v4302_v18, %v1245_v63  ;;  %v1272_v23 = vmul.f32 %v1271_v14, %v1244_v50  ;;  %v1273_v41 = vmul.f32 %v1271_v14, %v1245_v63 }
 0x142   :  { %v1252_v22 = vcombine.low %v1248_v27, %v1249_v17  ;;  %v1284_v28 = vmul.f32 %v1283_v15, %v1244_v50  ;;  %v1285_v53 = vmul.f32 %v1283_v15, %v1245_v63  ;;  %v1307_v11 = vstv %s3556_s30  ;;  %s3681_s30 = sld [smem:[#allocation2 + $0x14]] }
 0x143   :  { %v1264_v46 = vcombine.low %v1260_v10, %v1261_v12  ;;  %v1296_v48 = vmul.f32 %v1295_v13, %v1244_v50  ;;  %v1297_v42 = vmul.f32 %v1295_v13, %v1245_v63  ;;  %v1203_v16 = vadd.f32 %v1199_v25, %v3530_v1 }
 0x144   :  { %v1253_v33 = vrot.slane %v1252_v22, 1  ;;  %v1276_v51 = vcombine.low %v1272_v23, %v1273_v41  ;;  %v1288_v36 = vcombine.low %v1284_v28, %v1285_v53  ;;  %v1215_v58 = vadd.f32 %v1211_v2, %v1137_v54 }
 0x145   :  { %v1226_v7 = vadd.f32 %v1222_v43, %v1148_v20  ;;  %v1227_v49 = vadd.f32 %v1223_v35, %v1149_v19  ;;  %v1265_v3 = vrot.slane %v1264_v46, 1  ;;  %v1238_v52 = vadd.f32 %v1234_v38, %v1160_v59 }
 0x146   :  { %v1239_v34 = vadd.f32 %v1235_v26, %v1161_v9  ;;  %v1256_v57 = vadd.f32 %v1252_v22, %v1178_v56  ;;  %v1308_v29 = vmul.f32 %v1307_v11, %v1244_v50  ;;  %v1257_v0 = vadd.f32 %v1253_v33, %v1179_v6 }
 0x147   :  { %v1268_v1 = vadd.f32 %v1264_v46, %v1190_v60  ;;  %v1277_v47 = vrot.slane %v1276_v51, 1  ;;  %v1300_v44 = vcombine.low %v1296_v48, %v1297_v42  ;;  %v1280_v8 = vadd.f32 %v1276_v51, %v1202_v32 }
 0x148   :  { %v1289_v54 = vrot.slane %v1288_v36, 1  ;;  %v1309_v20 = vmul.f32 %v1307_v11, %v1245_v63  ;;  %v1325_v19 = vstv %s3573_s29  ;;  %v1269_v40 = vadd.f32 %v1265_v3, %v1191_v21  ;;  %v1399_v3 = vpop.permute.xlu1 %1398  ;;  %s3695_s29 = sld [smem:[#allocation2 + $0x4a]] }
 0x149   :  { %v1292_v59 = vadd.f32 %v1288_v36, %v1214_v62  ;;  %v1337_v25 = vstv %s3577_s24  ;;  %v1349_v9 = vstv %s3579_s16  ;;  %v1361_v56 = vstv %s3581_s1  ;;  %s3697_s24 = sld [smem:[#allocation2 + $0x65]]  ;;  %s3699_s16 = sld [smem:[#allocation2 + $0x80]] }
 0x14a   :  { %v1312_v43 = vcombine.low %v1308_v29, %v1309_v20  ;;  %v1373_v37 = vstv %s3583_s14  ;;  %v1322_v6 = vsel %vm592_vm7, %v1319_v31, %v1321_v55  ;;  %v1323_v60 = vsel %vm592_vm7, %v1321_v55, %v1319_v31  ;;  %v1397_v29 = vpop.permute.xlu0 %1396  ;;  %s3701_s1 = sld [smem:[#allocation2 + $0x9b]]  ;;  %s3717_s14 = sld [smem:[#allocation2 + $0x15]] }
 0x14b   :  { %v1326_v24 = vmul.f32 %v1325_v19, %v1322_v6  ;;  %v1338_v2 = vmul.f32 %v1337_v25, %v1322_v6  ;;  %v1350_v32 = vmul.f32 %v1349_v9, %v1322_v6  ;;  %v1301_v14 = vrot.slane %v1300_v44, 1 }
 0x14c   :  { %v1385_v38 = vstv %s3587_s22  ;;  %v1327_v15 = vmul.f32 %v1325_v19, %v1323_v60  ;;  %v1339_v50 = vmul.f32 %v1337_v25, %v1323_v60  ;;  %v1313_v21 = vrot.slane %v1312_v43, 1  ;;  %s3719_s22 = sld [smem:[#allocation2 + $0x30]] }
 0x14d   :  { %v1351_v62 = vmul.f32 %v1349_v9, %v1323_v60  ;;  %v1362_v63 = vmul.f32 %v1361_v56, %v1322_v6  ;;  %v1363_v13 = vmul.f32 %v1361_v56, %v1323_v60  ;;  %v1374_v30 = vmul.f32 %v1373_v37, %v1322_v6 }
 0x14e   :  { %v1330_v61 = vcombine.low %v1326_v24, %v1327_v15  ;;  %v1342_v27 = vcombine.low %v1338_v2, %v1339_v50  ;;  %v1375_v17 = vmul.f32 %v1373_v37, %v1323_v60  ;;  %v1386_v35 = vmul.f32 %v1385_v38, %v1322_v6 }
 0x14f   :  { %v1354_v39 = vcombine.low %v1350_v32, %v1351_v62  ;;  %v1366_v10 = vcombine.low %v1362_v63, %v1363_v13  ;;  %v1387_v26 = vmul.f32 %v1385_v38, %v1323_v60  ;;  %v1281_v18 = vadd.f32 %v1277_v47, %v1203_v16 }
 0x150   :  { %v1304_v12 = vadd.f32 %v1300_v44, %v1226_v7  ;;  %v1331_v23 = vrot.slane %v1330_v61, 1  ;;  %v1343_v22 = vrot.slane %v1342_v27, 1  ;;  %v1293_v41 = vadd.f32 %v1289_v54, %v1215_v58 }
 0x151   :  { %v1305_v28 = vadd.f32 %v1301_v14, %v1227_v49  ;;  %v1316_v53 = vadd.f32 %v1312_v43, %v1238_v52  ;;  %v1317_v11 = vadd.f32 %v1313_v21, %v1239_v34  ;;  %v1334_v46 = vadd.f32 %v1330_v61, %v1256_v57 }
 0x152   :  { %v1346_v48 = vadd.f32 %v1342_v27, %v1268_v1  ;;  %v1378_v42 = vcombine.low %v1374_v30, %v1375_v17  ;;  %v1390_v33 = vcombine.low %v1386_v35, %v1387_v26  ;;  %v1355_v51 = vrot.slane %v1354_v39, 1 }
 0x153   :  { %v1358_v36 = vadd.f32 %v1354_v39, %v1280_v8  ;;  %v1367_v16 = vrot.slane %v1366_v10, 1  ;;  %v1370_v7 = vadd.f32 %v1366_v10, %v1292_v59  ;;  %v1335_v58 = vadd.f32 %v1331_v23, %v1257_v0 }
 0x154   :  { %v1347_v47 = vadd.f32 %v1343_v22, %v1269_v40  ;;  %v1403_v49 = vstv %s3599_s9  ;;  %v1415_v44 = vstv %s3601_s2  ;;  %v1379_v52 = vrot.slane %v1378_v42, 1  ;;  %s3721_s9 = sld [smem:[#allocation2 + $0x4b]]  ;;  %s3723_s2 = sld [smem:[#allocation2 + $0x66]] }
 0x155   :  { %v1391_v34 = vrot.slane %v1390_v33, 1  ;;  %v1427_v57 = vstv %s3603_s18  ;;  %v1439_v55 = vstv %s3605_s20  ;;  %v1451_v1 = vstv %s3607_s15  ;;  %s3725_s18 = sld [smem:[#allocation2 + $0x81]]  ;;  %s3727_s20 = sld [smem:[#allocation2 + $0x9c]] }
 0x156   :  { %v1463_v31 = vstv %s3609_s7  ;;  %v1400_v54 = vsel %vm671_vm8, %v1397_v29, %v1399_v3  ;;  %v1401_v8 = vsel %vm671_vm8, %v1399_v3, %v1397_v29  ;;  %v1359_v38 = vadd.f32 %v1355_v51, %v1281_v18  ;;  %v2570_v3 = vld [vmem:[%s4303_s6] sm:$0x77]  ;;  %s3734_s15 = sld [smem:[#allocation2 + $0x16]]  ;;  %s3743_s7 = sld [smem:[#allocation2 + $0x31]] }
 0x157   :  { %v1404_v20 = vmul.f32 %v1403_v49, %v1400_v54  ;;  %v1405_v19 = vmul.f32 %v1403_v49, %v1401_v8  ;;  %v1416_v59 = vmul.f32 %v1415_v44, %v1400_v54  ;;  %v1417_v25 = vmul.f32 %v1415_v44, %v1401_v8 }
 0x158   :  { %v1428_v0 = vmul.f32 %v1427_v57, %v1400_v54  ;;  %v1429_v40 = vmul.f32 %v1427_v57, %v1401_v8  ;;  %v1440_v9 = vmul.f32 %v1439_v55, %v1400_v54  ;;  %v1441_v43 = vmul.f32 %v1439_v55, %v1401_v8 }
 0x159   :  { %v1408_v56 = vcombine.low %v1404_v20, %v1405_v19  ;;  %v1420_v37 = vcombine.low %v1416_v59, %v1417_v25  ;;  %v1452_v6 = vmul.f32 %v1451_v1, %v1400_v54  ;;  %v1453_v60 = vmul.f32 %v1451_v1, %v1401_v8 }
 0x15a   :  { %v1432_v24 = vcombine.low %v1428_v0, %v1429_v40  ;;  %v1444_v2 = vcombine.low %v1440_v9, %v1441_v43  ;;  %v1464_v32 = vmul.f32 %v1463_v31, %v1400_v54  ;;  %v1465_v14 = vmul.f32 %v1463_v31, %v1401_v8 }
 0x15b   :  { %v1371_v15 = vadd.f32 %v1367_v16, %v1293_v41  ;;  %v1409_v50 = vrot.slane %v1408_v56, 1  ;;  %v1421_v21 = vrot.slane %v1420_v37, 1  ;;  %v1382_v62 = vadd.f32 %v1378_v42, %v1304_v12 }
 0x15c   :  { %v1394_v63 = vadd.f32 %v1390_v33, %v1316_v53  ;;  %v1433_v13 = vrot.slane %v1432_v24, 1  ;;  %v1445_v61 = vrot.slane %v1444_v2, 1  ;;  %v1383_v27 = vadd.f32 %v1379_v52, %v1305_v28  ;;  %v2569_v28 = vld [vmem:[%s4303_s6 + $0x8] sm:$0x77]  ;;  %s3771_s6 = sld [smem:[#allocation2 + $0x83]] }
 0x15d   :  { %v1395_v30 = vadd.f32 %v1391_v34, %v1317_v11  ;;  %v1456_v17 = vcombine.low %v1452_v6, %v1453_v60  ;;  %v1468_v39 = vcombine.low %v1464_v32, %v1465_v14  ;;  %v3633_v10 = vadd.f32 %v1408_v56, %v1334_v46 }
 0x15e   :  { %v3635_v35 = vadd.f32 %v1420_v37, %v1346_v48  ;;  %v3637_v26 = vadd.f32 %v1432_v24, %v1358_v36  ;;  %v3639_v18 = vadd.f32 %v1444_v2, %v1370_v7  ;;  %v1413_v12 = vadd.f32 %v1409_v50, %v1335_v58  ;;  %v1581_v2 = vpop.permute.xlu1 %1580  ;;  %v1579_v50 = vpop.permute.xlu0 %1578 }
 0x15f   :  { %v1425_v23 = vadd.f32 %v1421_v21, %v1347_v47  ;;  %v1475_v22 = vstv %s3621_s27  ;;  %v1489_v41 = vstv %s3623_s12  ;;  %v1437_v53 = vadd.f32 %v1433_v13, %v1359_v38  ;;  %s3745_s27 = sld [smem:[#allocation2 + $0x4c]]  ;;  %s3747_s12 = sld [smem:[#allocation2 + $0x67]] }
 0x160   :  { %v1449_v42 = vadd.f32 %v1445_v61, %v1371_v15  ;;  %v1477_v11 = vmul.f32 %v2569_v28, %v1475_v22  ;;  %v1491_v46 = vmul.f32 %v2569_v28, %v1489_v41  ;;  %v1457_v33 = vrot.slane %v1456_v17, 1 }
 0x161   :  { %v1469_v51 = vrot.slane %v1468_v39, 1  ;;  %v1503_v48 = vstv %s3625_s13  ;;  %v1517_v16 = vstv %s3627_s19  ;;  %v3652_v36 = vadd.f32 %v1456_v17, %v1382_v62  ;;  %s3749_s13 = sld [smem:[#allocation2 + $0x82]]  ;;  %s3751_s19 = sld [smem:[#allocation2 + $0x9d]] }
 0x162   :  { %v3654_v7 = vadd.f32 %v1468_v39, %v1394_v63  ;;  %v1476_v29 = vmul.f32 %v2570_v3, %v1475_v22  ;;  %v1490_v58 = vmul.f32 %v2570_v3, %v1489_v41  ;;  %v2495_v47 = vrot.slane %v1477_v11, 10 }
 0x163   :  { %v2498_v49 = vrot.slane %v1491_v46, 10  ;;  %v1505_v44 = vmul.f32 %v2569_v28, %v1503_v48  ;;  %v1519_v52 = vmul.f32 %v2569_v28, %v1517_v16  ;;  %v1504_v34 = vmul.f32 %v2570_v3, %v1503_v48 }
 0x164   :  { %v1518_v57 = vmul.f32 %v2570_v3, %v1517_v16  ;;  %v1531_v55 = vstv %s3629_s11  ;;  %v1545_v1 = vstv %s3631_s28  ;;  %v1461_v31 = vadd.f32 %v1457_v33, %v1383_v27  ;;  %s3756_s11 = sld [smem:[#allocation2 + $0x17]]  ;;  %s3764_s28 = sld [smem:[#allocation2 + $0x32]] }
 0x165   :  { %v1473_v54 = vadd.f32 %v1469_v51, %v1395_v30  ;;  %v2501_v8 = vrot.slane %v1505_v44, 10  ;;  %v2504_v20 = vrot.slane %v1519_v52, 10  ;;  %v1532_v19 = vmul.f32 %v2570_v3, %v1531_v55 }
 0x166   :  { %v1533_v59 = vmul.f32 %v2569_v28, %v1531_v55  ;;  %v1546_v25 = vmul.f32 %v2570_v3, %v1545_v1  ;;  %v1547_v0 = vmul.f32 %v2569_v28, %v1545_v1  ;;  %v2494_v40 = vrot.slane %v1476_v29, 10 }
 0x167   :  { %v3669_v9 = vadd.f32 %v2495_v47, %v1413_v12  ;;  %v2497_v43 = vrot.slane %v1490_v58, 10  ;;  %v3671_v56 = vadd.f32 %v2498_v49, %v1425_v23  ;;  %v2500_v37 = vrot.slane %v1504_v34, 10 }
 0x168   :  { %v3673_v6 = vadd.f32 %v2501_v8, %v1437_v53  ;;  %v2503_v60 = vrot.slane %v1518_v57, 10  ;;  %v3675_v24 = vadd.f32 %v2504_v20, %v1449_v42  ;;  %v2506_v32 = vrot.slane %v1532_v19, 10 }
 0x169   :  { %v2507_v14 = vrot.slane %v1533_v59, 10  ;;  %v1585_v38 = vstv %s3648_s4  ;;  %v1597_v15 = vstv %s3650_s26  ;;  %v2509_v21 = vrot.slane %v1546_v25, 10  ;;  %v1659_v59 = vpop.permute.xlu1 %1658  ;;  %v1657_v25 = vpop.permute.xlu0 %1656  ;;  %s3773_s4 = sld [smem:[#allocation2 + $0x9e]]  ;;  %s3778_s26 = sld [smem:[#allocation2 + $0x18]] }
 0x16a   :  { %v2510_v62 = vrot.slane %v1547_v0, 10  ;;  %v1609_v63 = vstv %s3659_s10  ;;  %v1621_v13 = vstv %s3661_s3  ;;  %v1633_v61 = vstv %s3663_s25  ;;  %s3791_s10 = sld [smem:[#allocation2 + $0x69]]  ;;  %s3793_s3 = sld [smem:[#allocation2 + $0x84]] }
 0x16b   :  { %v1645_v27 = vstv %s3665_s17  ;;  %v1486_v30 = vadd.f32 %v2494_v40, %v3633_v10  ;;  %v1500_v17 = vadd.f32 %v2497_v43, %v3635_v35  ;;  %v1514_v39 = vadd.f32 %v2500_v37, %v3637_v26  ;;  %s3796_s25 = sld [smem:[#allocation2 + $0x9f]]  ;;  %s3800_s17 = sld [smem:[#allocation2 + $0x19]] }
 0x16c   :  { %v1528_v12 = vadd.f32 %v2503_v60, %v3639_v18  ;;  %v1582_v23 = vsel %vm118_vm2, %v1579_v50, %v1581_v2  ;;  %v1583_v22 = vsel %vm118_vm2, %v1581_v2, %v1579_v50  ;;  %v1543_v58 = vadd.f32 %v2507_v14, %v1461_v31 }
 0x16d   :  { %v1586_v41 = vmul.f32 %v1585_v38, %v1582_v23  ;;  %v1587_v53 = vmul.f32 %v1585_v38, %v1583_v22  ;;  %v1598_v42 = vmul.f32 %v1597_v15, %v1582_v23  ;;  %v1599_v28 = vmul.f32 %v1597_v15, %v1583_v22 }
 0x16e   :  { %v1610_v10 = vmul.f32 %v1609_v63, %v1582_v23  ;;  %v1611_v35 = vmul.f32 %v1609_v63, %v1583_v22  ;;  %v1622_v11 = vmul.f32 %v1621_v13, %v1582_v23  ;;  %v1623_v26 = vmul.f32 %v1621_v13, %v1583_v22 }
 0x16f   :  { %v1590_v18 = vcombine.low %v1586_v41, %v1587_v53  ;;  %v1602_v46 = vcombine.low %v1598_v42, %v1599_v28  ;;  %v1634_v33 = vmul.f32 %v1633_v61, %v1582_v23  ;;  %v1635_v51 = vmul.f32 %v1633_v61, %v1583_v22 }
 0x170   :  { %v1614_v48 = vcombine.low %v1610_v10, %v1611_v35  ;;  %v1626_v16 = vcombine.low %v1622_v11, %v1623_v26  ;;  %v1646_v3 = vmul.f32 %v1645_v27, %v1582_v23  ;;  %v1647_v29 = vmul.f32 %v1645_v27, %v1583_v22 }
 0x171   :  { %v1557_v47 = vadd.f32 %v2510_v62, %v1473_v54  ;;  %v1591_v49 = vrot.slane %v1590_v18, 1  ;;  %v1603_v44 = vrot.slane %v1602_v46, 1  ;;  %v1542_v52 = vadd.f32 %v2506_v32, %v3652_v36 }
 0x172   :  { %v1556_v34 = vadd.f32 %v2509_v21, %v3654_v7  ;;  %v1663_v57 = vstv %s3681_s30  ;;  %v1675_v55 = vstv %s3683_s23  ;;  %v1594_v1 = vadd.f32 %v1590_v18, %v1486_v30  ;;  %s3808_s30 = sld [smem:[#allocation2 + $0x34]]  ;;  %s3810_s23 = sld [smem:[#allocation2 + $0x4f]] }
 0x173   :  { %v1606_v8 = vadd.f32 %v1602_v46, %v1500_v17  ;;  %v1638_v20 = vcombine.low %v1634_v33, %v1635_v51  ;;  %v1650_v19 = vcombine.low %v1646_v3, %v1647_v29  ;;  %v1615_v31 = vrot.slane %v1614_v48, 1  ;;  %v1737_v3 = vpop.permute.xlu1 %1736  ;;  %v1735_v29 = vpop.permute.xlu0 %1734 }
 0x174   :  { %v1618_v54 = vadd.f32 %v1614_v48, %v1514_v39  ;;  %v1627_v0 = vrot.slane %v1626_v16, 1  ;;  %v1630_v40 = vadd.f32 %v1626_v16, %v1528_v12  ;;  %v1595_v36 = vadd.f32 %v1591_v49, %v3669_v9 }
 0x175   :  { %v1607_v43 = vadd.f32 %v1603_v44, %v3671_v56  ;;  %v1687_v7 = vstv %s3695_s29  ;;  %v1699_v37 = vstv %s3697_s24  ;;  %v1639_v60 = vrot.slane %v1638_v20, 1  ;;  %s3812_s29 = sld [smem:[#allocation2 + $0x6a]]  ;;  %s3814_s24 = sld [smem:[#allocation2 + $0x85]] }
 0x176   :  { %v1711_v2 = vstv %s3699_s16  ;;  %v1660_v32 = vsel %vm197_vm1, %v1657_v25, %v1659_v59  ;;  %v1661_v14 = vsel %vm197_vm1, %v1659_v59, %v1657_v25  ;;  %v1651_v38 = vrot.slane %v1650_v19, 1  ;;  %s3817_s16 = sld [smem:[#allocation2 + $0xa0]] }
 0x177   :  { %v1723_v15 = vstv %s3701_s1  ;;  %v1664_v50 = vmul.f32 %v1663_v57, %v1660_v32  ;;  %v1665_v21 = vmul.f32 %v1663_v57, %v1661_v14  ;;  %v1676_v9 = vmul.f32 %v1675_v55, %v1660_v32  ;;  %s3826_s1 = sld [smem:[#allocation2 + $0x1a]] }
 0x178   :  { %v1677_v56 = vmul.f32 %v1675_v55, %v1661_v14  ;;  %v1688_v62 = vmul.f32 %v1687_v7, %v1660_v32  ;;  %v1689_v63 = vmul.f32 %v1687_v7, %v1661_v14  ;;  %v1700_v61 = vmul.f32 %v1699_v37, %v1660_v32 }
 0x179   :  { %v1668_v13 = vcombine.low %v1664_v50, %v1665_v21  ;;  %v1701_v27 = vmul.f32 %v1699_v37, %v1661_v14  ;;  %v1712_v30 = vmul.f32 %v1711_v2, %v1660_v32  ;;  %v1713_v12 = vmul.f32 %v1711_v2, %v1661_v14 }
 0x17a   :  { %v1680_v17 = vcombine.low %v1676_v9, %v1677_v56  ;;  %v1692_v39 = vcombine.low %v1688_v62, %v1689_v63  ;;  %v1724_v23 = vmul.f32 %v1723_v15, %v1660_v32  ;;  %v1619_v22 = vadd.f32 %v1615_v31, %v3673_v6 }
 0x17b   :  { %v1669_v41 = vrot.slane %v1668_v13, 1  ;;  %v1704_v53 = vcombine.low %v1700_v61, %v1701_v27  ;;  %v1725_v42 = vmul.f32 %v1723_v15, %v1661_v14  ;;  %v1631_v28 = vadd.f32 %v1627_v0, %v3675_v24 }
 0x17c   :  { %v1642_v10 = vadd.f32 %v1638_v20, %v1542_v52  ;;  %v1654_v35 = vadd.f32 %v1650_v19, %v1556_v34  ;;  %v1681_v11 = vrot.slane %v1680_v17, 1  ;;  %v1643_v26 = vadd.f32 %v1639_v60, %v1543_v58 }
 0x17d   :  { %v1655_v18 = vadd.f32 %v1651_v38, %v1557_v47  ;;  %v1672_v46 = vadd.f32 %v1668_v13, %v1594_v1  ;;  %v1716_v33 = vcombine.low %v1712_v30, %v1713_v12  ;;  %v1684_v51 = vadd.f32 %v1680_v17, %v1606_v8 }
 0x17e   :  { %v1693_v48 = vrot.slane %v1692_v39, 1  ;;  %v1696_v6 = vadd.f32 %v1692_v39, %v1618_v54  ;;  %v1728_v16 = vcombine.low %v1724_v23, %v1725_v42  ;;  %v1673_v24 = vadd.f32 %v1669_v41, %v1595_v36  ;;  %v1815_v41 = vpop.permute.xlu1 %1814 }
 0x17f   :  { %v1705_v49 = vrot.slane %v1704_v53, 1  ;;  %v1741_v44 = vstv %s3717_s14  ;;  %v1753_v52 = vstv %s3719_s22  ;;  %v1685_v34 = vadd.f32 %v1681_v11, %v1607_v43  ;;  %s3831_s14 = sld [smem:[#allocation2 + $0x35]]  ;;  %s3833_s22 = sld [smem:[#allocation2 + $0x50]] }
 0x180   :  { %v1708_v57 = vadd.f32 %v1704_v53, %v1630_v40  ;;  %v1717_v58 = vrot.slane %v1716_v33, 1  ;;  %v1765_v47 = vstv %s3721_s9  ;;  %v1729_v55 = vrot.slane %v1728_v16, 1  ;;  %v1813_v53 = vpop.permute.xlu0 %1812  ;;  %s3835_s9 = sld [smem:[#allocation2 + $0x6b]] }
 0x181   :  { %v1777_v1 = vstv %s3723_s2  ;;  %v1789_v8 = vstv %s3725_s18  ;;  %v1738_v20 = vsel %vm276_vm3, %v1735_v29, %v1737_v3  ;;  %v1801_v19 = vstv %s3727_s20  ;;  %s3837_s2 = sld [smem:[#allocation2 + $0x86]]  ;;  %s3839_s18 = sld [smem:[#allocation2 + $0xa1]] }
 0x182   :  { %v1739_v59 = vsel %vm276_vm3, %v1737_v3, %v1735_v29  ;;  %v1742_v25 = vmul.f32 %v1741_v44, %v1738_v20  ;;  %v1754_v31 = vmul.f32 %v1753_v52, %v1738_v20  ;;  %v1766_v40 = vmul.f32 %v1765_v47, %v1738_v20 }
 0x183   :  { %v1743_v54 = vmul.f32 %v1741_v44, %v1739_v59  ;;  %v1755_v0 = vmul.f32 %v1753_v52, %v1739_v59  ;;  %v1767_v36 = vmul.f32 %v1765_v47, %v1739_v59  ;;  %v1778_v43 = vmul.f32 %v1777_v1, %v1738_v20 }
 0x184   :  { %v1779_v7 = vmul.f32 %v1777_v1, %v1739_v59  ;;  %v1790_v37 = vmul.f32 %v1789_v8, %v1738_v20  ;;  %v1791_v60 = vmul.f32 %v1789_v8, %v1739_v59  ;;  %v1697_v2 = vadd.f32 %v1693_v48, %v1619_v22 }
 0x185   :  { %v1746_v32 = vcombine.low %v1742_v25, %v1743_v54  ;;  %v1758_v14 = vcombine.low %v1754_v31, %v1755_v0  ;;  %v1770_v38 = vcombine.low %v1766_v40, %v1767_v36  ;;  %v1709_v15 = vadd.f32 %v1705_v49, %v1631_v28 }
 0x186   :  { %v1782_v50 = vcombine.low %v1778_v43, %v1779_v7  ;;  %v1802_v21 = vmul.f32 %v1801_v19, %v1738_v20  ;;  %v1803_v9 = vmul.f32 %v1801_v19, %v1739_v59  ;;  %v1720_v56 = vadd.f32 %v1716_v33, %v1642_v10 }
 0x187   :  { %v1747_v62 = vrot.slane %v1746_v32, 1  ;;  %v1759_v63 = vrot.slane %v1758_v14, 1  ;;  %v1794_v13 = vcombine.low %v1790_v37, %v1791_v60  ;;  %v1721_v61 = vadd.f32 %v1717_v58, %v1643_v26 }
 0x188   :  { %v1732_v27 = vadd.f32 %v1728_v16, %v1654_v35  ;;  %v1733_v30 = vadd.f32 %v1729_v55, %v1655_v18  ;;  %v1819_v17 = vstv %s3734_s15  ;;  %v1750_v39 = vadd.f32 %v1746_v32, %v1672_v46 }
 0x189   :  { %v1762_v12 = vadd.f32 %v1758_v14, %v1684_v51  ;;  %v1771_v23 = vrot.slane %v1770_v38, 1  ;;  %v1774_v22 = vadd.f32 %v1770_v38, %v1696_v6  ;;  %v1783_v42 = vrot.slane %v1782_v50, 1 }
 0x18a   :  { %v1786_v28 = vadd.f32 %v1782_v50, %v1708_v57  ;;  %v1806_v10 = vcombine.low %v1802_v21, %v1803_v9  ;;  %v1831_v11 = vstv %s3743_s7  ;;  %v1751_v33 = vadd.f32 %v1747_v62, %v1673_v24  ;;  %v1893_v21 = vpop.permute.xlu1 %1892  ;;  %v1891_v9 = vpop.permute.xlu0 %1890  ;;  %s4304_s7 = sld [smem:[#allocation66_spill]] }
 0x18b   :  { %v1763_v48 = vadd.f32 %v1759_v63, %v1685_v34  ;;  %v1795_v26 = vrot.slane %v1794_v13, 1  ;;  %v1843_v35 = vstv %s3745_s27  ;;  %v1855_v46 = vstv %s3747_s12 }
 0x18c   :  { %v1807_v18 = vrot.slane %v1806_v10, 1  ;;  %v1867_v16 = vstv %s3749_s13  ;;  %v1816_v51 = vsel %vm355_vm4, %v1813_v53, %v1815_v41  ;;  %v1817_v6 = vsel %vm355_vm4, %v1815_v41, %v1813_v53 }
 0x18d   :  { %v1820_v3 = vmul.f32 %v1819_v17, %v1816_v51  ;;  %v1832_v29 = vmul.f32 %v1831_v11, %v1816_v51  ;;  %v1844_v49 = vmul.f32 %v1843_v35, %v1816_v51  ;;  %v1879_v24 = vstv %s3751_s19 }
 0x18e   :  { %v1821_v44 = vmul.f32 %v1819_v17, %v1817_v6  ;;  %v1833_v52 = vmul.f32 %v1831_v11, %v1817_v6  ;;  %v1845_v34 = vmul.f32 %v1843_v35, %v1817_v6  ;;  %v1856_v57 = vmul.f32 %v1855_v46, %v1816_v51 }
 0x18f   :  { %v1857_v58 = vmul.f32 %v1855_v46, %v1817_v6  ;;  %v1868_v47 = vmul.f32 %v1867_v16, %v1816_v51  ;;  %v1869_v55 = vmul.f32 %v1867_v16, %v1817_v6  ;;  %v1798_v1 = vadd.f32 %v1794_v13, %v1720_v56 }
 0x190   :  { %v1824_v8 = vcombine.low %v1820_v3, %v1821_v44  ;;  %v1836_v20 = vcombine.low %v1832_v29, %v1833_v52  ;;  %v1848_v19 = vcombine.low %v1844_v49, %v1845_v34  ;;  %v1775_v59 = vadd.f32 %v1771_v23, %v1697_v2 }
 0x191   :  { %v1860_v25 = vcombine.low %v1856_v57, %v1857_v58  ;;  %v1880_v31 = vmul.f32 %v1879_v24, %v1816_v51  ;;  %v1881_v54 = vmul.f32 %v1879_v24, %v1817_v6  ;;  %v1787_v0 = vadd.f32 %v1783_v42, %v1709_v15 }
 0x192   :  { %v1825_v40 = vrot.slane %v1824_v8, 1  ;;  %v1837_v36 = vrot.slane %v1836_v20, 1  ;;  %v1872_v43 = vcombine.low %v1868_v47, %v1869_v55  ;;  %v1799_v7 = vadd.f32 %v1795_v26, %v1721_v61 }
 0x193   :  { %v1810_v37 = vadd.f32 %v1806_v10, %v1732_v27  ;;  %v1811_v60 = vadd.f32 %v1807_v18, %v1733_v30  ;;  %v1897_v32 = vstv %s3756_s11  ;;  %v1828_v14 = vadd.f32 %v1824_v8, %v1750_v39 }
 0x194   :  { %v1840_v38 = vadd.f32 %v1836_v20, %v1762_v12  ;;  %v1849_v2 = vrot.slane %v1848_v19, 1  ;;  %v1852_v50 = vadd.f32 %v1848_v19, %v1774_v22  ;;  %v1861_v56 = vrot.slane %v1860_v25, 1 }
 0x195   :  { %v1864_v62 = vadd.f32 %v1860_v25, %v1786_v28  ;;  %v1884_v15 = vcombine.low %v1880_v31, %v1881_v54  ;;  %v1909_v63 = vstv %s3764_s28  ;;  %v1829_v13 = vadd.f32 %v1825_v40, %v1751_v33  ;;  %v1971_v25 = vpop.permute.xlu1 %1970  ;;  %v1969_v31 = vpop.permute.xlu0 %1968 }
 0x196   :  { %v1841_v17 = vadd.f32 %v1837_v36, %v1763_v48  ;;  %v1873_v61 = vrot.slane %v1872_v43, 1  ;;  %v1921_v27 = vstv %s3767_s8  ;;  %v1933_v39 = vstv %s3769_s21 }
 0x197   :  { %v1885_v30 = vrot.slane %v1884_v15, 1  ;;  %v1945_v23 = vstv %s3771_s6  ;;  %v1894_v12 = vsel %vm434_vm5, %v1891_v9, %v1893_v21  ;;  %v1895_v22 = vsel %vm434_vm5, %v1893_v21, %v1891_v9 }
 0x198   :  { %v1898_v41 = vmul.f32 %v1897_v32, %v1894_v12  ;;  %v1910_v53 = vmul.f32 %v1909_v63, %v1894_v12  ;;  %v1922_v42 = vmul.f32 %v1921_v27, %v1894_v12  ;;  %v1957_v28 = vstv %s3773_s4 }
 0x199   :  { %v1899_v10 = vmul.f32 %v1897_v32, %v1895_v22  ;;  %v1911_v11 = vmul.f32 %v1909_v63, %v1895_v22  ;;  %v1923_v33 = vmul.f32 %v1921_v27, %v1895_v22  ;;  %v1934_v48 = vmul.f32 %v1933_v39, %v1894_v12 }
 0x19a   :  { %v1935_v26 = vmul.f32 %v1933_v39, %v1895_v22  ;;  %v1946_v35 = vmul.f32 %v1945_v23, %v1894_v12  ;;  %v1947_v18 = vmul.f32 %v1945_v23, %v1895_v22  ;;  %v1876_v46 = vadd.f32 %v1872_v43, %v1798_v1 }
 0x19b   :  { %v1902_v16 = vcombine.low %v1898_v41, %v1899_v10  ;;  %v1914_v51 = vcombine.low %v1910_v53, %v1911_v11  ;;  %v1926_v6 = vcombine.low %v1922_v42, %v1923_v33  ;;  %v1853_v3 = vadd.f32 %v1849_v2, %v1775_v59 }
 0x19c   :  { %v1938_v29 = vcombine.low %v1934_v48, %v1935_v26  ;;  %v1958_v49 = vmul.f32 %v1957_v28, %v1894_v12  ;;  %v1959_v24 = vmul.f32 %v1957_v28, %v1895_v22  ;;  %v1865_v44 = vadd.f32 %v1861_v56, %v1787_v0 }
 0x19d   :  { %v1903_v52 = vrot.slane %v1902_v16, 1  ;;  %v1915_v34 = vrot.slane %v1914_v51, 1  ;;  %v1950_v57 = vcombine.low %v1946_v35, %v1947_v18  ;;  %v1877_v58 = vadd.f32 %v1873_v61, %v1799_v7 }
 0x19e   :  { %v1888_v47 = vadd.f32 %v1884_v15, %v1810_v37  ;;  %v1889_v55 = vadd.f32 %v1885_v30, %v1811_v60  ;;  %v1975_v8 = vstv %s3778_s26  ;;  %v1906_v1 = vadd.f32 %v1902_v16, %v1828_v14 }
 0x19f   :  { %v1918_v20 = vadd.f32 %v1914_v51, %v1840_v38  ;;  %v1927_v19 = vrot.slane %v1926_v6, 1  ;;  %v1930_v59 = vadd.f32 %v1926_v6, %v1852_v50  ;;  %v1939_v54 = vrot.slane %v1938_v29, 1 }
 0x1a0   :  { %v1942_v0 = vadd.f32 %v1938_v29, %v1864_v62  ;;  %v1962_v40 = vcombine.low %v1958_v49, %v1959_v24  ;;  %v1987_v36 = vstv %s3786_s0  ;;  %v1907_v43 = vadd.f32 %v1903_v52, %v1829_v13  ;;  %v2049_v29 = vpop.permute.xlu1 %2048  ;;  %v2047_v49 = vpop.permute.xlu0 %2046 }
 0x1a1   :  { %v1919_v7 = vadd.f32 %v1915_v34, %v1841_v17  ;;  %v1951_v37 = vrot.slane %v1950_v57, 1  ;;  %v1999_v60 = vstv %s3789_s5  ;;  %v1954_v32 = vadd.f32 %v1950_v57, %v1876_v46 }
 0x1a2   :  { %v2011_v2 = vstv %s3791_s10  ;;  %v2023_v14 = vstv %s3793_s3  ;;  %v1972_v38 = vsel %vm513_vm6, %v1969_v31, %v1971_v25  ;;  %v1973_v50 = vsel %vm513_vm6, %v1971_v25, %v1969_v31 }
 0x1a3   :  { %v1976_v21 = vmul.f32 %v1975_v8, %v1972_v38  ;;  %v1988_v9 = vmul.f32 %v1987_v36, %v1972_v38  ;;  %v2000_v56 = vmul.f32 %v1999_v60, %v1972_v38  ;;  %v1963_v62 = vrot.slane %v1962_v40, 1 }
 0x1a4   :  { %v1977_v15 = vmul.f32 %v1975_v8, %v1973_v50  ;;  %v1989_v63 = vmul.f32 %v1987_v36, %v1973_v50  ;;  %v2001_v13 = vmul.f32 %v1999_v60, %v1973_v50  ;;  %v2012_v17 = vmul.f32 %v2011_v2, %v1972_v38 }
 0x1a5   :  { %v2013_v61 = vmul.f32 %v2011_v2, %v1973_v50  ;;  %v2024_v27 = vmul.f32 %v2023_v14, %v1972_v38  ;;  %v2025_v30 = vmul.f32 %v2023_v14, %v1973_v50  ;;  %v2035_v39 = vstv %s3796_s25 }
 0x1a6   :  { %v1980_v23 = vcombine.low %v1976_v21, %v1977_v15  ;;  %v1992_v12 = vcombine.low %v1988_v9, %v1989_v63  ;;  %v2004_v22 = vcombine.low %v2000_v56, %v2001_v13  ;;  %v1931_v41 = vadd.f32 %v1927_v19, %v1853_v3 }
 0x1a7   :  { %v1943_v53 = vadd.f32 %v1939_v54, %v1865_v44  ;;  %v1955_v42 = vadd.f32 %v1951_v37, %v1877_v58  ;;  %v2016_v28 = vcombine.low %v2012_v17, %v2013_v61  ;;  %v1966_v10 = vadd.f32 %v1962_v40, %v1888_v47 }
 0x1a8   :  { %v1981_v11 = vrot.slane %v1980_v23, 1  ;;  %v1993_v33 = vrot.slane %v1992_v12, 1  ;;  %v2028_v48 = vcombine.low %v2024_v27, %v2025_v30  ;;  %v1967_v26 = vadd.f32 %v1963_v62, %v1889_v55 }
 0x1a9   :  { %v2036_v35 = vmul.f32 %v2035_v39, %v1972_v38  ;;  %v2037_v18 = vmul.f32 %v2035_v39, %v1973_v50  ;;  %v2053_v46 = vstv %s3800_s17  ;;  %v1984_v16 = vadd.f32 %v1980_v23, %v1906_v1 }
 0x1aa   :  { %v1996_v51 = vadd.f32 %v1992_v12, %v1918_v20  ;;  %v2005_v6 = vrot.slane %v2004_v22, 1  ;;  %v2008_v3 = vadd.f32 %v2004_v22, %v1930_v59  ;;  %v1985_v24 = vadd.f32 %v1981_v11, %v1907_v43 }
 0x1ab   :  { %v2017_v44 = vrot.slane %v2016_v28, 1  ;;  %v2020_v52 = vadd.f32 %v2016_v28, %v1942_v0  ;;  %v2065_v34 = vstv %s3808_s30  ;;  %v1997_v57 = vadd.f32 %v1993_v33, %v1919_v7 }
 0x1ac   :  { %v2029_v58 = vrot.slane %v2028_v48, 1  ;;  %v2032_v47 = vadd.f32 %v2028_v48, %v1954_v32  ;;  %v2077_v55 = vstv %s3810_s23  ;;  %v2040_v8 = vcombine.low %v2036_v35, %v2037_v18 }
 0x1ad   :  { %v2089_v19 = vstv %s3812_s29  ;;  %v2101_v25 = vstv %s3814_s24  ;;  %v2050_v1 = vsel %vm592_vm7, %v2047_v49, %v2049_v29  ;;  %v2051_v20 = vsel %vm592_vm7, %v2049_v29, %v2047_v49 }
 0x1ae   :  { %v2054_v59 = vmul.f32 %v2053_v46, %v2050_v1  ;;  %v2066_v31 = vmul.f32 %v2065_v34, %v2050_v1  ;;  %v2078_v54 = vmul.f32 %v2077_v55, %v2050_v1  ;;  %v2113_v0 = vstv %s3817_s16 }
 0x1af   :  { %v2055_v40 = vmul.f32 %v2053_v46, %v2051_v20  ;;  %v2067_v36 = vmul.f32 %v2065_v34, %v2051_v20  ;;  %v2079_v43 = vmul.f32 %v2077_v55, %v2051_v20  ;;  %v2090_v7 = vmul.f32 %v2089_v19, %v2050_v1  ;;  %v2125_v46 = vpop.permute.xlu0 %2124 }
 0x1b0   :  { %v2091_v37 = vmul.f32 %v2089_v19, %v2051_v20  ;;  %v2102_v60 = vmul.f32 %v2101_v25, %v2050_v1  ;;  %v2103_v32 = vmul.f32 %v2101_v25, %v2051_v20  ;;  %v2041_v2 = vrot.slane %v2040_v8, 1 }
 0x1b1   :  { %v2058_v14 = vcombine.low %v2054_v59, %v2055_v40  ;;  %v2070_v38 = vcombine.low %v2066_v31, %v2067_v36  ;;  %v2082_v50 = vcombine.low %v2078_v54, %v2079_v43  ;;  %v2114_v56 = vmul.f32 %v2113_v0, %v2050_v1 }
 0x1b2   :  { %v2094_v21 = vcombine.low %v2090_v7, %v2091_v37  ;;  %v2106_v9 = vcombine.low %v2102_v60, %v2103_v32  ;;  %v2115_v62 = vmul.f32 %v2113_v0, %v2051_v20  ;;  %v2009_v15 = vadd.f32 %v2005_v6, %v1931_v41 }
 0x1b3   :  { %v2021_v63 = vadd.f32 %v2017_v44, %v1943_v53  ;;  %v2059_v13 = vrot.slane %v2058_v14, 1  ;;  %v2071_v17 = vrot.slane %v2070_v38, 1  ;;  %v2033_v61 = vadd.f32 %v2029_v58, %v1955_v42 }
 0x1b4   :  { %v2044_v27 = vadd.f32 %v2040_v8, %v1966_v10  ;;  %v2083_v30 = vrot.slane %v2082_v50, 1  ;;  %v2095_v39 = vrot.slane %v2094_v21, 1  ;;  %v2045_v23 = vadd.f32 %v2041_v2, %v1967_v26  ;;  %v2127_v10 = vpop.permute.xlu1 %2126 }
 0x1b5   :  { %v2062_v12 = vadd.f32 %v2058_v14, %v1984_v16  ;;  %v2107_v22 = vrot.slane %v2106_v9, 1  ;;  %v2131_v28 = vstv %s3826_s1  ;;  %v2074_v11 = vadd.f32 %v2070_v38, %v1996_v51 }
 0x1b6   :  { %v2086_v33 = vadd.f32 %v2082_v50, %v2008_v3  ;;  %v2098_v48 = vadd.f32 %v2094_v21, %v2020_v52  ;;  %v2118_v35 = vcombine.low %v2114_v56, %v2115_v62  ;;  %v2063_v41 = vadd.f32 %v2059_v13, %v1985_v24 }
 0x1b7   :  { %v2075_v53 = vadd.f32 %v2071_v17, %v1997_v57  ;;  %v2087_v18 = vadd.f32 %v2083_v30, %v2009_v15  ;;  %v2110_v42 = vadd.f32 %v2106_v9, %v2032_v47  ;;  %v2099_v6 = vadd.f32 %v2095_v39, %v2021_v63 }
 0x1b8   :  { %v2111_v26 = vadd.f32 %v2107_v22, %v2033_v61  ;;  %v2119_v16 = vrot.slane %v2118_v35, 1  ;;  %v2143_v29 = vstv %s3831_s14  ;;  %v2122_v49 = vadd.f32 %v2118_v35, %v2044_v27 }
 0x1b9   :  { %v2155_v44 = vstv %s3833_s22  ;;  %v2167_v34 = vstv %s3835_s9  ;;  %v2179_v51 = vstv %s3837_s2  ;;  %v2191_v3 = vstv %s3839_s18 }
 0x1ba   :  { %v2123_v58 = vadd.f32 %v2119_v16, %v2045_v23  ;;  %v2128_v52 = vsel %vm671_vm8, %v2125_v46, %v2127_v10  ;;  %v2129_v24 = vsel %vm671_vm8, %v2127_v10, %v2125_v46 }
 0x1bb   :  { %v2132_v57 = vmul.f32 %v2131_v28, %v2128_v52  ;;  %v2133_v47 = vmul.f32 %v2131_v28, %v2129_v24  ;;  %v2144_v55 = vmul.f32 %v2143_v29, %v2128_v52  ;;  %v2145_v8 = vmul.f32 %v2143_v29, %v2129_v24 }
 0x1bc   :  { %v2156_v19 = vmul.f32 %v2155_v44, %v2128_v52  ;;  %v2157_v25 = vmul.f32 %v2155_v44, %v2129_v24  ;;  %v2168_v1 = vmul.f32 %v2167_v34, %v2128_v52  ;;  %v2169_v20 = vmul.f32 %v2167_v34, %v2129_v24 }
 0x1bd   :  { %v2136_v59 = vcombine.low %v2132_v57, %v2133_v47  ;;  %v2148_v31 = vcombine.low %v2144_v55, %v2145_v8  ;;  %v2180_v54 = vmul.f32 %v2179_v51, %v2128_v52  ;;  %v2181_v0 = vmul.f32 %v2179_v51, %v2129_v24 }
 0x1be   :  { %v2160_v40 = vcombine.low %v2156_v19, %v2157_v25  ;;  %v2172_v36 = vcombine.low %v2168_v1, %v2169_v20  ;;  %v2192_v43 = vmul.f32 %v2191_v3, %v2128_v52  ;;  %v2193_v7 = vmul.f32 %v2191_v3, %v2129_v24 }
 0x1bf   :  { %v2137_v37 = vrot.slane %v2136_v59, 1  ;;  %v2140_v45 = vadd.f32 %v2136_v59, %v2062_v12  ;;  %v2149_v60 = vrot.slane %v2148_v31, 1  ;;  %v2152_v32 = vadd.f32 %v2148_v31, %v2074_v11 }
 0x1c0   :  { %v2161_v2 = vrot.slane %v2160_v40, 1  ;;  %v2164_v14 = vadd.f32 %v2160_v40, %v2086_v33  ;;  %v2173_v38 = vrot.slane %v2172_v36, 1  ;;  %v2176_v50 = vadd.f32 %v2172_v36, %v2098_v48 }
 0x1c1   :  { %v2141_v21 = vadd.f32 %v2137_v37, %v2063_v41  ;;  %v2153_v9 = vadd.f32 %v2149_v60, %v2075_v53  ;;  %v2184_v56 = vcombine.low %v2180_v54, %v2181_v0  ;;  %v2196_v62 = vcombine.low %v2192_v43, %v2193_v7 }
 0x1c2   :  { %v2165_v15 = vadd.f32 %v2161_v2, %v2087_v18  ;;  %v2177_v63 = vadd.f32 %v2173_v38, %v2099_v6  ;;  %v2207_v13 = vrot.slane %v2140_v45, %v2646_v4  ;;  %v2211_v17 = vrot.slane %v2140_v45, %v2648_v5 }
 0x1c3   :  { %v2185_v61 = vrot.slane %v2184_v56, 1  ;;  %v2188_v27 = vadd.f32 %v2184_v56, %v2110_v42  ;;  %v2197_v30 = vrot.slane %v2196_v62, 1  ;;  %v2200_v39 = vadd.f32 %v2196_v62, %v2122_v49 }
 0x1c4   :  { %v2215_v23 = vrot.slane %v2141_v21, %v2646_v4  ;;  %v2219_v12 = vrot.slane %v2141_v21, %v2648_v5  ;;  %v2229_v22 = vrot.slane %v2152_v32, %v2646_v4  ;;  %v2233_v28 = vrot.slane %v2152_v32, %v2648_v5 }
 0x1c5   :  { %v2189_v11 = vadd.f32 %v2185_v61, %v2111_v26  ;;  %v2201_v33 = vadd.f32 %v2197_v30, %v2123_v58  ;;  %v2237_v48 = vrot.slane %v2153_v9, %v2646_v4  ;;  %v2241_v35 = vrot.slane %v2153_v9, %v2648_v5 }
 0x1c6   :  { %v2251_v41 = vrot.slane %v2164_v14, %v2646_v4  ;;  %v2255_v53 = vrot.slane %v2164_v14, %v2648_v5  ;;  %v2259_v18 = vrot.slane %v2165_v15, %v2646_v4  ;;  %v2263_v42 = vrot.slane %v2165_v15, %v2648_v5 }
 0x1c7   :  { %v2273_v10 = vrot.slane %v2176_v50, %v2646_v4  ;;  %v2277_v46 = vrot.slane %v2176_v50, %v2648_v5  ;;  %v2281_v6 = vrot.slane %v2177_v63, %v2646_v4  ;;  %v2285_v26 = vrot.slane %v2177_v63, %v2648_v5 }
 0x1c8   :  { %v2295_v16 = vrot.slane %v2188_v27, %v2646_v4  ;;  %v2299_v29 = vrot.slane %v2188_v27, %v2648_v5  ;;  %v2303_v49 = vrot.slane %v2189_v11, %v2646_v4  ;;  %v2307_v44 = vrot.slane %v2189_v11, %v2648_v5 }
 0x1c9   :  { %v2317_v34 = vrot.slane %v2200_v39, %v2646_v4  ;;  %v2321_v51 = vrot.slane %v2200_v39, %v2648_v5  ;;  %v2325_v58 = vrot.slane %v2201_v33, %v2646_v4  ;;  %v2329_v3 = vrot.slane %v2201_v33, %v2648_v5 }
 0x1ca   :  { %v2335_v52 = vsel %vm2334_vm9, %v2207_v13, %v2229_v22  ;;  %v2336_v24 = vsel %vm2334_vm9, %v2211_v17, %v2233_v28  ;;  %v2337_v57 = vsel %vm2334_vm9, %v2215_v23, %v2237_v48  ;;  %v2338_v47 = vsel %vm2334_vm9, %v2219_v12, %v2241_v35 }
 0x1cb   :  { %v2340_v55 = vsel %vm2339_vm10, %v2335_v52, %v2251_v41  ;;  %v2341_v8 = vsel %vm2339_vm10, %v2336_v24, %v2255_v53  ;;  %v2342_v19 = vsel %vm2339_vm10, %v2337_v57, %v2259_v18  ;;  %v2343_v25 = vsel %vm2339_vm10, %v2338_v47, %v2263_v42 }
 0x1cc   :  { %v2345_v4 = vsel %vm2344_vm11, %v2340_v55, %v2273_v10  ;;  %v2346_v5 = vsel %vm2344_vm11, %v2341_v8, %v2277_v46  ;;  %v2347_v1 = vsel %vm2344_vm11, %v2342_v19, %v2281_v6  ;;  %v2348_v20 = vsel %vm2344_vm11, %v2343_v25, %v2285_v26 }
 0x1cd   :  { %v2350_v59 = vsel %vm2349_vm12, %v2345_v4, %v2295_v16  ;;  %v2351_v31 = vsel %vm2349_vm12, %v2346_v5, %v2299_v29  ;;  %v2352_v54 = vsel %vm2349_vm12, %v2347_v1, %v2303_v49  ;;  %v2353_v0 = vsel %vm2349_vm12, %v2348_v20, %v2307_v44 }
 0x1ce   :  { %v2355_v40 = vsel %vm2354_vm13, %v2350_v59, %v2317_v34  ;;  %v2356_v36 = vsel %vm2354_vm13, %v2351_v31, %v2321_v51  ;;  %v2357_v43 = vsel %vm2354_vm13, %v2352_v54, %v2325_v58  ;;  %v2358_v7 = vsel %vm2354_vm13, %v2353_v0, %v2329_v3 }
 0x1cf   :  { %2359 = vst [vmem:[%s4304_s7] sm:$0x3f] %v2355_v40  ;;  %2360 = vst [vmem:[%s4304_s7 + $0x8] sm:$0x3f] %v2356_v36 }
 0x1d0   :  { %2361 = vst [vmem:[%s4304_s7 + $0x10] sm:$0x3f] %v2357_v43  ;;  %2362 = vst [vmem:[%s4304_s7 + $0x18] sm:$0x3f] %v2358_v7 }
 0x1d1   :  { %2367 = vsyncpa [#allocation3], 1 }
 0x1d2   :  { %2368 = vsyncpa [#allocation5], 1 }

</bundles_post_ra>
